<compile_context>
chip_gen: v7x
topology: tpu7x:2x2x1
jax: 0.10.0
libtpu: 0.0.40
codegen_flags: <defaults>
</compile_context>

<pallas_src>
import math
from enum import Enum

import jax
import jax.numpy as jnp
from jax.experimental import pallas as pl
from jax.experimental.pallas import tpu as pltpu


class POMDPAction(Enum):
    GIVE_SIMPLE_EXAMPLE = 0
    GIVE_TECHNICAL_DEFINITION = 1
    ASK_FOR_CLARIFICATION = 2


# ---- module configuration (matches the PyTorch defaults) --------------------
NUM_STATES = 8
HIDDEN_SIZE = 32
EMBED_DIM = 128            # embedding_dim
NUM_HEADS = 4              # nhead
HEAD_DIM = EMBED_DIM // NUM_HEADS
FFN_DIM = 2048             # torch TransformerEncoderLayer default dim_feedforward
NUM_LAYERS = 2
NUM_ACTIONS = len(POMDPAction)
SEQ = 3                    # [belief, action, obs] tokens
SEQ_PAD = 8                # pad to sublane multiple; padded keys masked
LN_EPS = 1e-5              # torch LayerNorm default

# ---- lane offsets of the packed (belief | onehot(action) | obs) input slab ---
C_BELIEF = 0
C_ACT = 8
C_OBS = 16
assert C_ACT + NUM_ACTIONS <= C_OBS and C_OBS + HIDDEN_SIZE <= EMBED_DIM

# ---- global small-parameter slab layout (rows of a (GSLAB_ROWS, 128) f32 array)
R_PROJ = 0                                  # block-diag input projection (E, E)
R_BIAS = R_PROJ + EMBED_DIM                 # per-row input bias slab (SEQ_PAD, E)
R_WOUT = R_BIAS + SEQ_PAD                   # output head weight (S, E) (torch layout)
R_BOUT = R_WOUT + NUM_STATES                # output head bias (lanes 0:S)
GSLAB_USED = R_BOUT + 1
GSLAB_ROWS = ((GSLAB_USED + 7) // 8) * 8    # pad to sublane multiple

# ---- per-layer small-parameter slab layout (rows of a (L, LSLAB_ROWS, 128) f32)
LR_QB, LR_KB, LR_VB = 0, 1, 2               # qkv biases (3 x (1, E))
LR_OB = 3                                   # attn out-proj bias
LR_LN1W, LR_LN1B = 4, 5
LR_LN2W, LR_LN2B = 6, 7
LR_FF2B = 8                                 # ffn second-layer bias
LR_FF2S = 9                                 # ffn second-layer dequant scale (per E)
LSLAB_ROWS = 10


def _layernorm(x, w, b):
    mu = jnp.mean(x, axis=-1, keepdims=True)
    var = jnp.mean((x - mu) ** 2, axis=-1, keepdims=True)
    return (x - mu) * jax.lax.rsqrt(var + LN_EPS) * w + b


# -----------------------------------------------------------------------------
# Pallas kernel: grid over the 2 encoder layers ("arbitrary"); input embedding
# under pl.when(l == 0), output head under pl.when(l == last); x (8, 128) persists
# in a VMEM scratch.  Quantized FFN weights are streamed with manual DMA.
# -----------------------------------------------------------------------------
def belief_updater_kernel(
    x0_ref,       # VMEM (SEQ_PAD, E) f32   packed (belief | onehot(action) | obs)
    gslab_ref,    # VMEM (GSLAB_ROWS, E) f32 (resident: block-diag proj, biases, head)
    lslab_ref,    # VMEM (1, LSLAB_ROWS, E) f32 (this layer's small params)
    ff1_bs_ref,   # VMEM (1, 2, F) f32       [ff1 bias ; ff1 dequant scale]
    w_in_ref,     # VMEM (1, E, 3E) bf16     fused, pre-transposed QKV weight
    w_ao_ref,     # VMEM (1, E, E)  bf16     pre-transposed attn out-proj weight
    w_ff1_hbm,    # ANY  (L, E, F) int8/fp8  quantized, pre-transposed FFN weights
    w_ff2_hbm,    # ANY  (L, F, E) int8/fp8
    out_ref,      # VMEM (1, S) f32
    x_ref,        # scratch VMEM (SEQ_PAD, E) f32   sequence carried across layers
    heads_ref,    # scratch VMEM (SEQ_PAD, E) f32   per-head context concat
    ff1_buf,      # scratch VMEM (2, E, F) qdtype   double-buffered FFN weights
    ff2_buf,      # scratch VMEM (2, F, E) qdtype
    dma_sems,     # DMA semaphores (2, 2)
):
    f32, bf16 = jnp.float32, jnp.bfloat16
    E = EMBED_DIM
    l = pl.program_id(0)
    slot = l % 2

    # --- stream the quantized FFN weights by hand so the ~0.5 MB/layer fetch never
    #     sits in the blocking BlockSpec prologue: layer 0's copy overlaps its own
    #     attention, layer (l+1)'s copy overlaps all of layer l's compute.
    def issue_ffn_copy(layer, s):
        pltpu.make_async_copy(w_ff1_hbm.at[layer], ff1_buf.at[s], dma_sems.at[0, s]).start()
        pltpu.make_async_copy(w_ff2_hbm.at[layer], ff2_buf.at[s], dma_sems.at[1, s]).start()

    @pl.when(l == 0)
    def _prime():
        issue_ffn_copy(0, 0)

    @pl.when(l + 1 < NUM_LAYERS)
    def _prefetch_next():
        nxt = jnp.minimum(l + 1, NUM_LAYERS - 1)
        issue_ffn_copy(nxt, nxt % 2)

    # --- layer 0: whole input embedding = one (8,128)@(128,128) matmul + bias slab
    @pl.when(l == 0)
    def _build_sequence():
        x_ref[...] = (jnp.dot(x0_ref[...], gslab_ref[R_PROJ:R_PROJ + E, :],
                              preferred_element_type=f32)
                      + gslab_ref[R_BIAS:R_BIAS + SEQ_PAD, :])

    x = x_ref[...]                                                        # (SEQ_PAD, E)
    lp = lslab_ref[0]                                                     # (LSLAB_ROWS, E)

    # --- self-attention: fused QKV, per-head softmax, single merged out-projection
    qkv = jnp.dot(x.astype(bf16), w_in_ref[0], preferred_element_type=f32)   # (8, 3E)
    q = qkv[:, 0:E] + lp[LR_QB:LR_QB + 1, :]
    k = qkv[:, E:2 * E] + lp[LR_KB:LR_KB + 1, :]
    v = qkv[:, 2 * E:3 * E] + lp[LR_VB:LR_VB + 1, :]

    key_pos = jax.lax.broadcasted_iota(jnp.int32, (1, SEQ_PAD), 1)
    key_mask = jnp.where(key_pos < SEQ, 0.0, -1e30).astype(f32)           # (1, SEQ_PAD)
    scale = 1.0 / math.sqrt(HEAD_DIM)

    for h in range(NUM_HEADS):
        sl = slice(h * HEAD_DIM, (h + 1) * HEAD_DIM)
        # q @ k^T without materializing a transpose
        s = jax.lax.dot_general(q[:, sl], k[:, sl], (((1,), (1,)), ((), ())),
                                preferred_element_type=f32) * scale + key_mask
        p = jax.nn.softmax(s, axis=-1)
        heads_ref[:, sl] = jnp.dot(p, v[:, sl], preferred_element_type=f32)

    attn = (jnp.dot(heads_ref[...].astype(bf16), w_ao_ref[0],
                    preferred_element_type=f32)
            + lp[LR_OB:LR_OB + 1, :])

    # TODO(synk): dropout inside the encoder layer is omitted (eval mode identity).
    x = _layernorm(x + attn, lp[LR_LN1W:LR_LN1W + 1, :], lp[LR_LN1B:LR_LN1B + 1, :])

    # --- feed-forward with quantized weights: dequant scale folded in AFTER the
    #     f32 accumulate, bias added, then relu.
    pltpu.make_async_copy(w_ff1_hbm.at[0], ff1_buf.at[slot], dma_sems.at[0, slot]).wait()
    pltpu.make_async_copy(w_ff2_hbm.at[0], ff2_buf.at[slot], dma_sems.at[1, slot]).wait()

    ff1b = ff1_bs_ref[0]                                                  # (2, F)
    h1 = jnp.dot(x.astype(bf16), ff1_buf[slot].astype(bf16),
                 preferred_element_type=f32)                              # (8, F)
    h1 = jnp.maximum(h1 * ff1b[1:2, :] + ff1b[0:1, :], 0.0)
    ff = (jnp.dot(h1.astype(bf16), ff2_buf[slot].astype(bf16),
                  preferred_element_type=f32)
          * lp[LR_FF2S:LR_FF2S + 1, :] + lp[LR_FF2B:LR_FF2B + 1, :])
    x = _layernorm(x + ff, lp[LR_LN2W:LR_LN2W + 1, :], lp[LR_LN2B:LR_LN2B + 1, :])
    x_ref[...] = x

    # --- output head on the last real (observation) token, last layer only -----
    @pl.when(l == NUM_LAYERS - 1)
    def _head():
        last = x[SEQ - 1:SEQ, :]                                          # (1, E)
        wout = gslab_ref[R_WOUT:R_WOUT + NUM_STATES, :]                   # (S, E)
        bout = gslab_ref[R_BOUT:R_BOUT + 1, :][:, 0:NUM_STATES]           # (1, S)
        logits = jax.lax.dot_general(last, wout, (((1,), (1,)), ((), ())),
                                     preferred_element_type=f32) + bout
        out_ref[...] = jax.nn.softmax(logits, axis=-1)


# -----------------------------------------------------------------------------
# Parameter init (torch-layout f32 masters) and host-side packing for the kernel.
# -----------------------------------------------------------------------------
def init_params(key):
    def nrm(k, shape, scale=0.02):
        return (scale * jax.random.normal(k, shape)).astype(jnp.float32)

    ks = jax.random.split(key, 16)
    E, S, H, F, L = EMBED_DIM, NUM_STATES, HIDDEN_SIZE, FFN_DIM, NUM_LAYERS
    return {
        "wb": nrm(ks[0], (E, S)),        "bb": nrm(ks[1], (1, E)),
        "act_tab": nrm(ks[2], (NUM_ACTIONS, E)),
        "wo": nrm(ks[3], (E, H)),        "bo": nrm(ks[4], (1, E)),
        "in_w": nrm(ks[5], (L, 3 * E, E)),   "in_b": nrm(ks[6], (L, 1, 3 * E)),
        "outp_w": nrm(ks[7], (L, E, E)),     "outp_b": nrm(ks[8], (L, 1, E)),
        "ln1_w": jnp.ones((L, 1, E), jnp.float32),
        "ln1_b": jnp.zeros((L, 1, E), jnp.float32),
        "ln2_w": jnp.ones((L, 1, E), jnp.float32),
        "ln2_b": jnp.zeros((L, 1, E), jnp.float32),
        "ff1_w": nrm(ks[9], (L, F, E)),      "ff1_b": nrm(ks[10], (L, 1, F)),
        "ff2_w": nrm(ks[11], (L, E, F)),     "ff2_b": nrm(ks[12], (L, 1, E)),
        "wout": nrm(ks[13], (S, E)),         "bout": nrm(ks[14], (1, S)),
    }


def _ffn_weight_dtype():
    """int8 on v5e/v6e (and anything else); fp8 e4m3 on v7x (no int MACs there).
    The kernel upcasts to bf16 before the MXU, so either works on any chip —
    this only decides the storage/DMA format."""
    try:
        kind = jax.devices()[0].device_kind.lower()
    except Exception:
        return jnp.int8
    if "v7" in kind or "7x" in kind or "tpu7" in kind:
        return jnp.float8_e4m3fn
    return jnp.int8


def _quantize_per_channel(w, qdtype):
    """w: (L, K, N) pre-transposed weight.  Symmetric per-output-channel (last axis)
    quantization.  Returns (quantized (L,K,N) qdtype, f32 scale (L,1,N));
    dequantized weight == quantized * scale."""
    amax = jnp.max(jnp.abs(w), axis=1, keepdims=True)
    if qdtype == jnp.int8:
        scale = jnp.where(amax > 0, amax / 127.0, 1.0)
        q = jnp.clip(jnp.round(w / scale), -127, 127).astype(jnp.int8)
    else:
        fp8_max = 448.0  # e4m3 max finite
        scale = jnp.where(amax > 0, amax / fp8_max, 1.0)
        q = (w / scale).astype(qdtype)
    return q, scale.astype(jnp.float32)


def pack_params(p, qdtype=None):
    """One-time host-side repack: pre-transpose, cast attention weights to bf16,
    quantize FFN weights (int8 / fp8) with per-channel scales, and gather all small
    params into lane-dense f32 slabs."""
    E, S, H, F, L = EMBED_DIM, NUM_STATES, HIDDEN_SIZE, FFN_DIM, NUM_LAYERS
    f32, bf16 = jnp.float32, jnp.bfloat16
    if qdtype is None:
        qdtype = _ffn_weight_dtype()

    # Block-diagonal input projection: one (8,128)@(128,128) matmul replaces the
    # belief/action/obs projections + one-hot gather in the exposed first grid step.
    proj = jnp.zeros((E, E), f32)
    proj = proj.at[C_BELIEF:C_BELIEF + S, :].set(p["wb"].T)
    proj = proj.at[C_ACT:C_ACT + NUM_ACTIONS, :].set(p["act_tab"])
    proj = proj.at[C_OBS:C_OBS + H, :].set(p["wo"].T)
    bias_slab = jnp.zeros((SEQ_PAD, E), f32)
    bias_slab = bias_slab.at[0].set(p["bb"][0]).at[2].set(p["bo"][0])
    bout_pad = jnp.zeros((1, E), f32).at[0, :S].set(p["bout"][0])
    gslab = jnp.concatenate([proj, bias_slab, p["wout"], bout_pad], axis=0)
    gslab = jnp.concatenate(
        [gslab, jnp.zeros((GSLAB_ROWS - GSLAB_USED, E), f32)], axis=0)    # (GSLAB_ROWS, E)

    # FFN weights: pre-transpose then quantize per output channel.
    w_ff1_t = jnp.transpose(p["ff1_w"], (0, 2, 1))                        # (L, E, F)
    w_ff2_t = jnp.transpose(p["ff2_w"], (0, 2, 1))                        # (L, F, E)
    w_ff1_q, ff1_s = _quantize_per_channel(w_ff1_t, qdtype)               # scale (L,1,F)
    w_ff2_q, ff2_s = _quantize_per_channel(w_ff2_t, qdtype)               # scale (L,1,E)

    lslab = jnp.stack([
        jnp.concatenate([
            p["in_b"][l].reshape(3, E),       # q_b, k_b, v_b
            p["outp_b"][l],
            p["ln1_w"][l], p["ln1_b"][l],
            p["ln2_w"][l], p["ln2_b"][l],
            p["ff2_b"][l],
            ff2_s[l],                         # ff2 dequant scale
        ], axis=0) for l in range(L)], axis=0)                            # (L, 10, E)

    ff1_bs = jnp.concatenate([p["ff1_b"], ff1_s], axis=1)                 # (L, 2, F)

    return {
        "gslab": gslab.astype(f32),
        "lslab": lslab.astype(f32),
        "ff1_bs": ff1_bs.astype(f32),
        "w_in_t": jnp.transpose(p["in_w"], (0, 2, 1)).astype(bf16),       # (L, E, 3E)
        "w_ao_t": jnp.transpose(p["outp_w"], (0, 2, 1)).astype(bf16),     # (L, E, E)
        "w_ff1_q": w_ff1_q,                                               # (L, E, F) q
        "w_ff2_q": w_ff2_q,                                               # (L, F, E) q
    }


# -----------------------------------------------------------------------------
# Wrapper
# -----------------------------------------------------------------------------
def belief_updater_forward(packed, belief, action_idx, observation_embedding):
    """belief: (1, NUM_STATES) f32, action_idx: (1,) int32, obs: (1, HIDDEN) f32.
    Returns (NUM_STATES,) softmax belief (mirrors .squeeze(0))."""
    E, F = EMBED_DIM, FFN_DIM
    f32 = jnp.float32
    qdt = packed["w_ff1_q"].dtype

    # Pack (belief | one-hot(action) | obs) at disjoint lane offsets of one (8,128)
    # slab; the kernel's block-diagonal projection turns it into the 3 embeddings.
    x0 = jnp.zeros((SEQ_PAD, E), f32)
    x0 = x0.at[0, C_BELIEF:C_BELIEF + NUM_STATES].set(belief[0].astype(f32))
    x0 = x0.at[1, C_ACT + action_idx[0]].set(1.0)
    x0 = x0.at[2, C_OBS:C_OBS + HIDDEN_SIZE].set(observation_embedding[0].astype(f32))

    grid_spec = pltpu.PrefetchScalarGridSpec(
        num_scalar_prefetch=0,
        grid=(NUM_LAYERS,),
        in_specs=[
            pl.BlockSpec((SEQ_PAD, E), lambda l: (0, 0)),                 # x0 (resident)
            pl.BlockSpec((GSLAB_ROWS, E), lambda l: (0, 0)),              # gslab (resident)
            pl.BlockSpec((1, LSLAB_ROWS, E), lambda l: (l, 0, 0)),        # lslab[l]
            pl.BlockSpec((1, 2, F), lambda l: (l, 0, 0)),                 # ff1 bias/scale[l]
            pl.BlockSpec((1, E, 3 * E), lambda l: (l, 0, 0)),             # w_in_t[l]
            pl.BlockSpec((1, E, E), lambda l: (l, 0, 0)),                 # w_ao_t[l]
            pl.BlockSpec(memory_space=pl.ANY),                            # w_ff1_q (manual DMA)
            pl.BlockSpec(memory_space=pl.ANY),                            # w_ff2_q (manual DMA)
        ],
        out_specs=pl.BlockSpec((1, NUM_STATES), lambda l: (0, 0)),
        scratch_shapes=[
            pltpu.VMEM((SEQ_PAD, E), f32),       # x (carried across layers)
            pltpu.VMEM((SEQ_PAD, E), f32),       # head-concat scratch
            pltpu.VMEM((2, E, F), qdt),          # double-buffered quantized ff1
            pltpu.VMEM((2, F, E), qdt),          # double-buffered quantized ff2
            pltpu.SemaphoreType.DMA((2, 2)),
        ],
    )
    out = pl.pallas_call(
        belief_updater_kernel,
        out_shape=jax.ShapeDtypeStruct((1, NUM_STATES), jnp.float32),
        grid_spec=grid_spec,
        compiler_params=pltpu.CompilerParams(
            # layer axis carries x_ref -> must stay "arbitrary"; a batch axis (if
            # added later) is where "parallel"/megacore belongs.
            dimension_semantics=("arbitrary",),
            vmem_limit_bytes=16 * 1024 * 1024),
    )(x0, packed["gslab"], packed["lslab"], packed["ff1_bs"],
      packed["w_in_t"], packed["w_ao_t"], packed["w_ff1_q"], packed["w_ff2_q"])
    return out[0]


# -----------------------------------------------------------------------------
# Pure-JAX reference (mirrors the PyTorch forward, eval mode).  Attention weights
# are round-tripped through bf16 and the FFN weights through the same quantized
# representation the kernel consumes, so the comparison isolates the kernel's
# activation rounding only.
# -----------------------------------------------------------------------------
def reference_forward(params, packed, belief, action_idx, observation_embedding):
    E = EMBED_DIM
    qz = lambda w: w.astype(jnp.bfloat16).astype(jnp.float32)
    belief_emb = belief[0] @ params["wb"].T + params["bb"][0]
    obs_emb = observation_embedding[0] @ params["wo"].T + params["bo"][0]
    act_emb = params["act_tab"][action_idx[0]]
    x = jnp.stack([belief_emb, act_emb, obs_emb], axis=0)                 # (3, E)
    scale = 1.0 / math.sqrt(HEAD_DIM)
    for l in range(NUM_LAYERS):
        w_qkv, b_qkv = qz(params["in_w"][l]), params["in_b"][l][0]
        q = x @ w_qkv[0:E].T + b_qkv[0:E]
        k = x @ w_qkv[E:2 * E].T + b_qkv[E:2 * E]
        v = x @ w_qkv[2 * E:3 * E].T + b_qkv[2 * E:3 * E]
        heads = []
        for h in range(NUM_HEADS):
            sl = slice(h * HEAD_DIM, (h + 1) * HEAD_DIM)
            s = (q[:, sl] @ k[:, sl].T) * scale
            heads.append(jax.nn.softmax(s, axis=-1) @ v[:, sl])
        attn = (jnp.concatenate(heads, axis=-1) @ qz(params["outp_w"][l]).T
                + params["outp_b"][l][0])
        x = _layernorm(x + attn, params["ln1_w"][l][0], params["ln1_b"][l][0])
        w1 = packed["w_ff1_q"][l].astype(jnp.float32) * packed["ff1_bs"][l, 1][None, :]
        w2 = packed["w_ff2_q"][l].astype(jnp.float32) * packed["lslab"][l, LR_FF2S][None, :]
        h1 = jnp.maximum(x @ w1 + params["ff1_b"][l][0], 0.0)
        ff = h1 @ w2 + params["ff2_b"][l][0]
        x = _layernorm(x + ff, params["ln2_w"][l][0], params["ln2_b"][l][0])
    logits = x[-1] @ params["wout"].T + params["bout"][0]
    return jax.nn.softmax(logits, axis=-1)


if __name__ == "__main__":
    key = jax.random.PRNGKey(0)
    kp, kb, ko = jax.random.split(key, 3)

    params = init_params(kp)
    packed = pack_params(params)

    belief = jax.nn.softmax(jax.random.normal(kb, (1, NUM_STATES)), axis=-1).astype(jnp.float32)
    observation_embedding = jax.random.normal(ko, (1, HIDDEN_SIZE)).astype(jnp.float32)
    action = POMDPAction.GIVE_TECHNICAL_DEFINITION
    action_idx = jnp.array([action.value], dtype=jnp.int32)

    fwd = jax.jit(belief_updater_forward)
    out = jax.block_until_ready(fwd(packed, belief, action_idx, observation_embedding))

    ref = reference_forward(params, packed, belief, action_idx, observation_embedding)
    assert out.shape == (NUM_STATES,)
    assert jnp.allclose(jnp.sum(out), 1.0, atol=1e-5)
    assert jnp.allclose(out, ref, rtol=5e-2, atol=1e-2), (out, ref)

    print("KERNEL_OK")
</pallas_src>

<mosaic_0001>
module attributes {stable_mosaic.version = 11 : i64} {
  func.func @belief_updater_kernel(%arg0: i32, %arg1: memref<8x128xf32, #tpu.memory_space<vmem>>, %arg2: memref<152x128xf32, #tpu.memory_space<vmem>>, %arg3: memref<1x10x128xf32, #tpu.memory_space<vmem>>, %arg4: memref<1x2x2048xf32, #tpu.memory_space<vmem>>, %arg5: memref<1x128x384xbf16, #tpu.memory_space<vmem>>, %arg6: memref<1x128x128xbf16, #tpu.memory_space<vmem>>, %arg7: memref<2x128x2048xi8, #tpu.memory_space<any>>, %arg8: memref<2x2048x128xi8, #tpu.memory_space<any>>, %arg9: memref<1x8xf32, #tpu.memory_space<vmem>>, %arg10: memref<8x128xf32, #tpu.memory_space<vmem>>, %arg11: memref<8x128xf32, #tpu.memory_space<vmem>>, %arg12: memref<2x128x2048xi8, #tpu.memory_space<vmem>>, %arg13: memref<2x2048x128xi8, #tpu.memory_space<vmem>>, %arg14: memref<2x2x!tpu.dma_semaphore, #tpu.memory_space<semaphore_mem>>) attributes {dimension_semantics = [#tpu.dimension_semantics<arbitrary>], iteration_bounds = array<i64: 2>, scalar_prefetch = 0 : i64, scratch_operands = 5 : i64, tpu.core_type = #tpu.core_type<tc>, window_params = [{pipeline_mode = #tpu.pipeline_mode<synchronous>, transform_indices = @transform_0, window_bounds = array<i64: 8, 128>}, {pipeline_mode = #tpu.pipeline_mode<synchronous>, transform_indices = @transform_1, window_bounds = array<i64: 152, 128>}, {transform_indices = @transform_2, window_bounds = array<i64: 1, 10, 128>}, {transform_indices = @transform_3, window_bounds = array<i64: 1, 2, 2048>}, {transform_indices = @transform_4, window_bounds = array<i64: 1, 128, 384>}, {transform_indices = @transform_5, window_bounds = array<i64: 1, 128, 128>}, {}, {}, {pipeline_mode = #tpu.pipeline_mode<synchronous>, transform_indices = @transform_8, window_bounds = array<i64: 1, 8>}]} {
    %c2_i32 = arith.constant 2 : i32
    %c0_i32 = arith.constant 0 : i32
    %0 = arith.cmpi eq, %c2_i32, %c0_i32 : i32
    %c1_i32 = arith.constant 1 : i32
    %1 = arith.select %0, %c1_i32, %c2_i32 : i32
    %2 = arith.remsi %arg0, %1 : i32
    %c0_i32_0 = arith.constant 0 : i32
    %3 = arith.cmpi ne, %2, %c0_i32_0 : i32
    %c0_i32_1 = arith.constant 0 : i32
    %4 = arith.cmpi slt, %2, %c0_i32_1 : i32
    %c0_i32_2 = arith.constant 0 : i32
    %5 = arith.cmpi slt, %1, %c0_i32_2 : i32
    %6 = arith.xori %4, %5 : i1
    %7 = arith.andi %6, %3 : i1
    %8 = arith.addi %2, %1 : i32
    %9 = arith.select %7, %8, %2 : i32
    %c0_i32_3 = arith.constant 0 : i32
    %10 = arith.cmpi eq, %arg0, %c0_i32_3 : i32
    %11 = arith.extui %10 : i1 to i32
    %c0_i32_4 = arith.constant 0 : i32
    %12 = arith.cmpi ne, %11, %c0_i32_4 : i32
    scf.if %12 {
      %c0_i32_90 = arith.constant 0 : i32
      %c0_i32_91 = arith.constant 0 : i32
      %c0_i32_92 = arith.constant 0 : i32
      %c0_i32_93 = arith.constant 0 : i32
      %c0_i32_94 = arith.constant 0 : i32
      %c0_i32_95 = arith.constant 0 : i32
      %231 = tpu.memref_slice %arg7[%c0_i32_90, %c0_i32_94, %c0_i32_95] : memref<2x128x2048xi8, #tpu.memory_space<any>> -> memref<1x128x2048xi8, #tpu.memory_space<any>>
      %232 = tpu.memref_squeeze %231 : memref<1x128x2048xi8, #tpu.memory_space<any>> -> memref<128x2048xi8, #tpu.memory_space<any>>
      %c0_i32_96 = arith.constant 0 : i32
      %c0_i32_97 = arith.constant 0 : i32
      %233 = tpu.memref_slice %arg12[%c0_i32_91, %c0_i32_96, %c0_i32_97] : memref<2x128x2048xi8, #tpu.memory_space<vmem>> -> memref<1x128x2048xi8, #tpu.memory_space<vmem>>
      %234 = tpu.memref_squeeze %233 : memref<1x128x2048xi8, #tpu.memory_space<vmem>> -> memref<128x2048xi8, #tpu.memory_space<vmem>>
      %235 = tpu.memref_slice %arg14[%c0_i32_92, %c0_i32_93] : memref<2x2x!tpu.dma_semaphore, #tpu.memory_space<semaphore_mem>> -> memref<1x1x!tpu.dma_semaphore, #tpu.memory_space<semaphore_mem>>
      %236 = tpu.memref_squeeze %235 : memref<1x1x!tpu.dma_semaphore, #tpu.memory_space<semaphore_mem>> -> memref<!tpu.dma_semaphore, #tpu.memory_space<semaphore_mem>>
      tpu.enqueue_dma source(%232 : memref<128x2048xi8, #tpu.memory_space<any>>) target(%234 : memref<128x2048xi8, #tpu.memory_space<vmem>>) target_semaphore(%236 : memref<!tpu.dma_semaphore, #tpu.memory_space<semaphore_mem>>)
      %c0_i32_98 = arith.constant 0 : i32
      %c0_i32_99 = arith.constant 0 : i32
      %c1_i32_100 = arith.constant 1 : i32
      %c0_i32_101 = arith.constant 0 : i32
      %c0_i32_102 = arith.constant 0 : i32
      %c0_i32_103 = arith.constant 0 : i32
      %237 = tpu.memref_slice %arg8[%c0_i32_98, %c0_i32_102, %c0_i32_103] : memref<2x2048x128xi8, #tpu.memory_space<any>> -> memref<1x2048x128xi8, #tpu.memory_space<any>>
      %238 = tpu.memref_squeeze %237 : memref<1x2048x128xi8, #tpu.memory_space<any>> -> memref<2048x128xi8, #tpu.memory_space<any>>
      %c0_i32_104 = arith.constant 0 : i32
      %c0_i32_105 = arith.constant 0 : i32
      %239 = tpu.memref_slice %arg13[%c0_i32_99, %c0_i32_104, %c0_i32_105] : memref<2x2048x128xi8, #tpu.memory_space<vmem>> -> memref<1x2048x128xi8, #tpu.memory_space<vmem>>
      %240 = tpu.memref_squeeze %239 : memref<1x2048x128xi8, #tpu.memory_space<vmem>> -> memref<2048x128xi8, #tpu.memory_space<vmem>>
      %241 = tpu.memref_slice %arg14[%c1_i32_100, %c0_i32_101] : memref<2x2x!tpu.dma_semaphore, #tpu.memory_space<semaphore_mem>> -> memref<1x1x!tpu.dma_semaphore, #tpu.memory_space<semaphore_mem>>
      %242 = tpu.memref_squeeze %241 : memref<1x1x!tpu.dma_semaphore, #tpu.memory_space<semaphore_mem>> -> memref<!tpu.dma_semaphore, #tpu.memory_space<semaphore_mem>>
      tpu.enqueue_dma source(%238 : memref<2048x128xi8, #tpu.memory_space<any>>) target(%240 : memref<2048x128xi8, #tpu.memory_space<vmem>>) target_semaphore(%242 : memref<!tpu.dma_semaphore, #tpu.memory_space<semaphore_mem>>)
    } else {
    }
    %c1_i32_5 = arith.constant 1 : i32
    %13 = arith.addi %arg0, %c1_i32_5 : i32
    %c2_i32_6 = arith.constant 2 : i32
    %14 = arith.cmpi slt, %13, %c2_i32_6 : i32
    %15 = arith.extui %14 : i1 to i32
    %c0_i32_7 = arith.constant 0 : i32
    %16 = arith.cmpi ne, %15, %c0_i32_7 : i32
    scf.if %16 {
      %c1_i32_90 = arith.constant 1 : i32
      %231 = arith.addi %arg0, %c1_i32_90 : i32
      %c1_i32_91 = arith.constant 1 : i32
      %232 = arith.minsi %231, %c1_i32_91 : i32
      %c2_i32_92 = arith.constant 2 : i32
      %c0_i32_93 = arith.constant 0 : i32
      %233 = arith.cmpi eq, %c2_i32_92, %c0_i32_93 : i32
      %c1_i32_94 = arith.constant 1 : i32
      %234 = arith.select %233, %c1_i32_94, %c2_i32_92 : i32
      %235 = arith.remsi %232, %234 : i32
      %c0_i32_95 = arith.constant 0 : i32
      %236 = arith.cmpi ne, %235, %c0_i32_95 : i32
      %c0_i32_96 = arith.constant 0 : i32
      %237 = arith.cmpi slt, %235, %c0_i32_96 : i32
      %c0_i32_97 = arith.constant 0 : i32
      %238 = arith.cmpi slt, %234, %c0_i32_97 : i32
      %239 = arith.xori %237, %238 : i1
      %240 = arith.andi %239, %236 : i1
      %241 = arith.addi %235, %234 : i32
      %242 = arith.select %240, %241, %235 : i32
      %c0_i32_98 = arith.constant 0 : i32
      %c0_i32_99 = arith.constant 0 : i32
      %c0_i32_100 = arith.constant 0 : i32
      %243 = tpu.memref_slice %arg7[%232, %c0_i32_99, %c0_i32_100] : memref<2x128x2048xi8, #tpu.memory_space<any>> -> memref<1x128x2048xi8, #tpu.memory_space<any>>
      %244 = tpu.memref_squeeze %243 : memref<1x128x2048xi8, #tpu.memory_space<any>> -> memref<128x2048xi8, #tpu.memory_space<any>>
      %c0_i32_101 = arith.constant 0 : i32
      %c0_i32_102 = arith.constant 0 : i32
      %245 = tpu.memref_slice %arg12[%242, %c0_i32_101, %c0_i32_102] : memref<2x128x2048xi8, #tpu.memory_space<vmem>> -> memref<1x128x2048xi8, #tpu.memory_space<vmem>>
      %246 = tpu.memref_squeeze %245 : memref<1x128x2048xi8, #tpu.memory_space<vmem>> -> memref<128x2048xi8, #tpu.memory_space<vmem>>
      %247 = tpu.memref_slice %arg14[%c0_i32_98, %242] : memref<2x2x!tpu.dma_semaphore, #tpu.memory_space<semaphore_mem>> -> memref<1x1x!tpu.dma_semaphore, #tpu.memory_space<semaphore_mem>>
      %248 = tpu.memref_squeeze %247 : memref<1x1x!tpu.dma_semaphore, #tpu.memory_space<semaphore_mem>> -> memref<!tpu.dma_semaphore, #tpu.memory_space<semaphore_mem>>
      tpu.enqueue_dma source(%244 : memref<128x2048xi8, #tpu.memory_space<any>>) target(%246 : memref<128x2048xi8, #tpu.memory_space<vmem>>) target_semaphore(%248 : memref<!tpu.dma_semaphore, #tpu.memory_space<semaphore_mem>>)
      %c1_i32_103 = arith.constant 1 : i32
      %c0_i32_104 = arith.constant 0 : i32
      %c0_i32_105 = arith.constant 0 : i32
      %249 = tpu.memref_slice %arg8[%232, %c0_i32_104, %c0_i32_105] : memref<2x2048x128xi8, #tpu.memory_space<any>> -> memref<1x2048x128xi8, #tpu.memory_space<any>>
      %250 = tpu.memref_squeeze %249 : memref<1x2048x128xi8, #tpu.memory_space<any>> -> memref<2048x128xi8, #tpu.memory_space<any>>
      %c0_i32_106 = arith.constant 0 : i32
      %c0_i32_107 = arith.constant 0 : i32
      %251 = tpu.memref_slice %arg13[%242, %c0_i32_106, %c0_i32_107] : memref<2x2048x128xi8, #tpu.memory_space<vmem>> -> memref<1x2048x128xi8, #tpu.memory_space<vmem>>
      %252 = tpu.memref_squeeze %251 : memref<1x2048x128xi8, #tpu.memory_space<vmem>> -> memref<2048x128xi8, #tpu.memory_space<vmem>>
      %253 = tpu.memref_slice %arg14[%c1_i32_103, %242] : memref<2x2x!tpu.dma_semaphore, #tpu.memory_space<semaphore_mem>> -> memref<1x1x!tpu.dma_semaphore, #tpu.memory_space<semaphore_mem>>
      %254 = tpu.memref_squeeze %253 : memref<1x1x!tpu.dma_semaphore, #tpu.memory_space<semaphore_mem>> -> memref<!tpu.dma_semaphore, #tpu.memory_space<semaphore_mem>>
      tpu.enqueue_dma source(%250 : memref<2048x128xi8, #tpu.memory_space<any>>) target(%252 : memref<2048x128xi8, #tpu.memory_space<vmem>>) target_semaphore(%254 : memref<!tpu.dma_semaphore, #tpu.memory_space<semaphore_mem>>)
    } else {
    }
    %c0_i32_8 = arith.constant 0 : i32
    %17 = arith.cmpi eq, %arg0, %c0_i32_8 : i32
    %18 = arith.extui %17 : i1 to i32
    %c0_i32_9 = arith.constant 0 : i32
    %19 = arith.cmpi ne, %18, %c0_i32_9 : i32
    scf.if %19 {
      %c0_90 = arith.constant 0 : index
      %c0_91 = arith.constant 0 : index
      %231 = vector.load %arg1[%c0_90, %c0_91] : memref<8x128xf32, #tpu.memory_space<vmem>>, vector<8x128xf32>
      %c0_92 = arith.constant 0 : index
      %c0_93 = arith.constant 0 : index
      %232 = vector.load %arg2[%c0_92, %c0_93] : memref<152x128xf32, #tpu.memory_space<vmem>>, vector<128x128xf32>
      %cst_94 = arith.constant dense<0.000000e+00> : vector<8x128xf32>
      %233 = tpu.matmul %231, %232, %cst_94 {dimension_numbers = #tpu.dot_dimension_numbers<[1], [0], [0], [1], [0, 0, 1, 1], [], []>} : vector<8x128xf32>, vector<128x128xf32>, vector<8x128xf32> -> vector<8x128xf32>
      %c128 = arith.constant 128 : index
      %c0_95 = arith.constant 0 : index
      %234 = vector.load %arg2[%c128, %c0_95] : memref<152x128xf32, #tpu.memory_space<vmem>>, vector<8x128xf32>
      %235 = arith.addf %233, %234 : vector<8x128xf32>
      %c0_96 = arith.constant 0 : index
      %c0_97 = arith.constant 0 : index
      %236 = vector.load %arg10[%c0_96, %c0_97] : memref<8x128xf32, #tpu.memory_space<vmem>>, vector<8x128xf32>
      tpu.vector_store %arg10[%c0_96, %c0_97], %235 {strides = array<i32>} : memref<8x128xf32, #tpu.memory_space<vmem>>, vector<8x128xf32>,
    } else {
    }
    %c0 = arith.constant 0 : index
    %c0_10 = arith.constant 0 : index
    %20 = vector.load %arg10[%c0, %c0_10] : memref<8x128xf32, #tpu.memory_space<vmem>>, vector<8x128xf32>
    %c0_11 = arith.constant 0 : index
    %c0_12 = arith.constant 0 : index
    %c0_13 = arith.constant 0 : index
    %21 = vector.load %arg3[%c0_11, %c0_12, %c0_13] : memref<1x10x128xf32, #tpu.memory_space<vmem>>, vector<1x10x128xf32>
    %22 = vector.shape_cast %21 : vector<1x10x128xf32> to vector<10x128xf32>
    %23 = arith.truncf %20 : vector<8x128xf32> to vector<8x128xbf16>
    %c0_14 = arith.constant 0 : index
    %c0_15 = arith.constant 0 : index
    %c0_16 = arith.constant 0 : index
    %24 = vector.load %arg5[%c0_14, %c0_15, %c0_16] : memref<1x128x384xbf16, #tpu.memory_space<vmem>>, vector<1x128x384xbf16>
    %25 = vector.shape_cast %24 : vector<1x128x384xbf16> to vector<128x384xbf16>
    %cst = arith.constant dense<0.000000e+00> : vector<8x384xf32>
    %26 = tpu.matmul %23, %25, %cst {dimension_numbers = #tpu.dot_dimension_numbers<[1], [0], [0], [1], [0, 0, 1, 1], [], []>} : vector<8x128xbf16>, vector<128x384xbf16>, vector<8x384xf32> -> vector<8x384xf32>
    %27 = vector.extract_strided_slice %26 {offsets = [0, 0], sizes = [8, 128], strides = [1, 1]} : vector<8x384xf32> to vector<8x128xf32>
    %28 = vector.extract_strided_slice %22 {offsets = [0, 0], sizes = [1, 128], strides = [1, 1]} : vector<10x128xf32> to vector<1x128xf32>
    %29 = vector.broadcast %28 : vector<1x128xf32> to vector<8x128xf32>
    %30 = arith.addf %27, %29 : vector<8x128xf32>
    %31 = vector.extract_strided_slice %26 {offsets = [0, 128], sizes = [8, 128], strides = [1, 1]} : vector<8x384xf32> to vector<8x128xf32>
    %32 = vector.extract_strided_slice %22 {offsets = [1, 0], sizes = [1, 128], strides = [1, 1]} : vector<10x128xf32> to vector<1x128xf32>
    %33 = vector.broadcast %32 : vector<1x128xf32> to vector<8x128xf32>
    %34 = arith.addf %31, %33 : vector<8x128xf32>
    %35 = vector.extract_strided_slice %26 {offsets = [0, 256], sizes = [8, 128], strides = [1, 1]} : vector<8x384xf32> to vector<8x128xf32>
    %36 = vector.extract_strided_slice %22 {offsets = [2, 0], sizes = [1, 128], strides = [1, 1]} : vector<10x128xf32> to vector<1x128xf32>
    %37 = vector.broadcast %36 : vector<1x128xf32> to vector<8x128xf32>
    %38 = arith.addf %35, %37 : vector<8x128xf32>
    %39 = tpu.iota {dimensions = array<i32: 1>} : vector<1x8xi32>
    %c3_i32 = arith.constant 3 : i32
    %40 = vector.broadcast %c3_i32 : i32 to vector<1x8xi32>
    %41 = arith.cmpi slt, %39, %40 : vector<1x8xi32>
    %cst_17 = arith.constant 0.000000e+00 : f32
    %cst_18 = arith.constant -1.000000e+30 : f32
    %42 = vector.broadcast %cst_17 : f32 to vector<1x8xf32>
    %43 = vector.broadcast %cst_18 : f32 to vector<1x8xf32>
    %44 = arith.select %41, %42, %43 : vector<1x8xi1>, vector<1x8xf32>
    %45 = vector.extract_strided_slice %30 {offsets = [0, 0], sizes = [8, 32], strides = [1, 1]} : vector<8x128xf32> to vector<8x32xf32>
    %46 = vector.extract_strided_slice %34 {offsets = [0, 0], sizes = [8, 32], strides = [1, 1]} : vector<8x128xf32> to vector<8x32xf32>
    %cst_19 = arith.constant dense<0.000000e+00> : vector<8x8xf32>
    %47 = tpu.matmul %45, %46, %cst_19 {dimension_numbers = #tpu.dot_dimension_numbers<[1], [1], [0], [0], [0, 0, 1, 0], [], []>} : vector<8x32xf32>, vector<8x32xf32>, vector<8x8xf32> -> vector<8x8xf32>
    %cst_20 = arith.constant 0.176776692 : f32
    %48 = vector.broadcast %cst_20 : f32 to vector<8x8xf32>
    %49 = arith.mulf %47, %48 : vector<8x8xf32>
    %50 = vector.broadcast %44 : vector<1x8xf32> to vector<8x8xf32>
    %51 = arith.addf %49, %50 : vector<8x8xf32>
    %cst_21 = arith.constant dense<0xFF800000> : vector<8xf32>
    %52 = vector.multi_reduction <maximumf>, %51, %cst_21 [1] : vector<8x8xf32> to vector<8xf32>
    %cst_22 = arith.constant 0xFF800000 : f32
    %53 = vector.broadcast %cst_22 : f32 to vector<8xf32>
    %54 = arith.maximumf %53, %52 : vector<8xf32>
    %55 = vector.shape_cast %54 : vector<8xf32> to vector<8x1xf32>
    %56 = vector.broadcast %55 : vector<8x1xf32> to vector<8x8xf32>
    %57 = arith.subf %51, %56 : vector<8x8xf32>
    %58 = math.exp %57 : vector<8x8xf32>
    %cst_23 = arith.constant dense<0.000000e+00> : vector<8xf32>
    %59 = vector.multi_reduction <add>, %58, %cst_23 [1] : vector<8x8xf32> to vector<8xf32>
    %60 = vector.shape_cast %59 : vector<8xf32> to vector<8x1xf32>
    %61 = vector.broadcast %60 : vector<8x1xf32> to vector<8x8xf32>
    %62 = arith.divf %58, %61 : vector<8x8xf32>
    %63 = vector.extract_strided_slice %38 {offsets = [0, 0], sizes = [8, 32], strides = [1, 1]} : vector<8x128xf32> to vector<8x32xf32>
    %cst_24 = arith.constant dense<0.000000e+00> : vector<8x32xf32>
    %64 = tpu.matmul %62, %63, %cst_24 {dimension_numbers = #tpu.dot_dimension_numbers<[1], [0], [0], [1], [0, 0, 1, 1], [], []>} : vector<8x8xf32>, vector<8x32xf32>, vector<8x32xf32> -> vector<8x32xf32>
    %c0_25 = arith.constant 0 : index
    %c0_26 = arith.constant 0 : index
    %65 = vector.load %arg11[%c0_25, %c0_26] : memref<8x128xf32, #tpu.memory_space<vmem>>, vector<8x32xf32>
    tpu.vector_store %arg11[%c0_25, %c0_26], %64 {strides = array<i32>} : memref<8x128xf32, #tpu.memory_space<vmem>>, vector<8x32xf32>,
    %66 = vector.extract_strided_slice %30 {offsets = [0, 32], sizes = [8, 32], strides = [1, 1]} : vector<8x128xf32> to vector<8x32xf32>
    %67 = vector.extract_strided_slice %34 {offsets = [0, 32], sizes = [8, 32], strides = [1, 1]} : vector<8x128xf32> to vector<8x32xf32>
    %cst_27 = arith.constant dense<0.000000e+00> : vector<8x8xf32>
    %68 = tpu.matmul %66, %67, %cst_27 {dimension_numbers = #tpu.dot_dimension_numbers<[1], [1], [0], [0], [0, 0, 1, 0], [], []>} : vector<8x32xf32>, vector<8x32xf32>, vector<8x8xf32> -> vector<8x8xf32>
    %cst_28 = arith.constant 0.176776692 : f32
    %69 = vector.broadcast %cst_28 : f32 to vector<8x8xf32>
    %70 = arith.mulf %68, %69 : vector<8x8xf32>
    %71 = vector.broadcast %44 : vector<1x8xf32> to vector<8x8xf32>
    %72 = arith.addf %70, %71 : vector<8x8xf32>
    %cst_29 = arith.constant dense<0xFF800000> : vector<8xf32>
    %73 = vector.multi_reduction <maximumf>, %72, %cst_29 [1] : vector<8x8xf32> to vector<8xf32>
    %cst_30 = arith.constant 0xFF800000 : f32
    %74 = vector.broadcast %cst_30 : f32 to vector<8xf32>
    %75 = arith.maximumf %74, %73 : vector<8xf32>
    %76 = vector.shape_cast %75 : vector<8xf32> to vector<8x1xf32>
    %77 = vector.broadcast %76 : vector<8x1xf32> to vector<8x8xf32>
    %78 = arith.subf %72, %77 : vector<8x8xf32>
    %79 = math.exp %78 : vector<8x8xf32>
    %cst_31 = arith.constant dense<0.000000e+00> : vector<8xf32>
    %80 = vector.multi_reduction <add>, %79, %cst_31 [1] : vector<8x8xf32> to vector<8xf32>
    %81 = vector.shape_cast %80 : vector<8xf32> to vector<8x1xf32>
    %82 = vector.broadcast %81 : vector<8x1xf32> to vector<8x8xf32>
    %83 = arith.divf %79, %82 : vector<8x8xf32>
    %84 = vector.extract_strided_slice %38 {offsets = [0, 32], sizes = [8, 32], strides = [1, 1]} : vector<8x128xf32> to vector<8x32xf32>
    %cst_32 = arith.constant dense<0.000000e+00> : vector<8x32xf32>
    %85 = tpu.matmul %83, %84, %cst_32 {dimension_numbers = #tpu.dot_dimension_numbers<[1], [0], [0], [1], [0, 0, 1, 1], [], []>} : vector<8x8xf32>, vector<8x32xf32>, vector<8x32xf32> -> vector<8x32xf32>
    %c0_33 = arith.constant 0 : index
    %c32 = arith.constant 32 : index
    %86 = vector.load %arg11[%c0_33, %c32] : memref<8x128xf32, #tpu.memory_space<vmem>>, vector<8x32xf32>
    tpu.vector_store %arg11[%c0_33, %c32], %85 {strides = array<i32>} : memref<8x128xf32, #tpu.memory_space<vmem>>, vector<8x32xf32>,
    %87 = vector.extract_strided_slice %30 {offsets = [0, 64], sizes = [8, 32], strides = [1, 1]} : vector<8x128xf32> to vector<8x32xf32>
    %88 = vector.extract_strided_slice %34 {offsets = [0, 64], sizes = [8, 32], strides = [1, 1]} : vector<8x128xf32> to vector<8x32xf32>
    %cst_34 = arith.constant dense<0.000000e+00> : vector<8x8xf32>
    %89 = tpu.matmul %87, %88, %cst_34 {dimension_numbers = #tpu.dot_dimension_numbers<[1], [1], [0], [0], [0, 0, 1, 0], [], []>} : vector<8x32xf32>, vector<8x32xf32>, vector<8x8xf32> -> vector<8x8xf32>
    %cst_35 = arith.constant 0.176776692 : f32
    %90 = vector.broadcast %cst_35 : f32 to vector<8x8xf32>
    %91 = arith.mulf %89, %90 : vector<8x8xf32>
    %92 = vector.broadcast %44 : vector<1x8xf32> to vector<8x8xf32>
    %93 = arith.addf %91, %92 : vector<8x8xf32>
    %cst_36 = arith.constant dense<0xFF800000> : vector<8xf32>
    %94 = vector.multi_reduction <maximumf>, %93, %cst_36 [1] : vector<8x8xf32> to vector<8xf32>
    %cst_37 = arith.constant 0xFF800000 : f32
    %95 = vector.broadcast %cst_37 : f32 to vector<8xf32>
    %96 = arith.maximumf %95, %94 : vector<8xf32>
    %97 = vector.shape_cast %96 : vector<8xf32> to vector<8x1xf32>
    %98 = vector.broadcast %97 : vector<8x1xf32> to vector<8x8xf32>
    %99 = arith.subf %93, %98 : vector<8x8xf32>
    %100 = math.exp %99 : vector<8x8xf32>
    %cst_38 = arith.constant dense<0.000000e+00> : vector<8xf32>
    %101 = vector.multi_reduction <add>, %100, %cst_38 [1] : vector<8x8xf32> to vector<8xf32>
    %102 = vector.shape_cast %101 : vector<8xf32> to vector<8x1xf32>
    %103 = vector.broadcast %102 : vector<8x1xf32> to vector<8x8xf32>
    %104 = arith.divf %100, %103 : vector<8x8xf32>
    %105 = vector.extract_strided_slice %38 {offsets = [0, 64], sizes = [8, 32], strides = [1, 1]} : vector<8x128xf32> to vector<8x32xf32>
    %cst_39 = arith.constant dense<0.000000e+00> : vector<8x32xf32>
    %106 = tpu.matmul %104, %105, %cst_39 {dimension_numbers = #tpu.dot_dimension_numbers<[1], [0], [0], [1], [0, 0, 1, 1], [], []>} : vector<8x8xf32>, vector<8x32xf32>, vector<8x32xf32> -> vector<8x32xf32>
    %c0_40 = arith.constant 0 : index
    %c64 = arith.constant 64 : index
    %107 = vector.load %arg11[%c0_40, %c64] : memref<8x128xf32, #tpu.memory_space<vmem>>, vector<8x32xf32>
    tpu.vector_store %arg11[%c0_40, %c64], %106 {strides = array<i32>} : memref<8x128xf32, #tpu.memory_space<vmem>>, vector<8x32xf32>,
    %108 = vector.extract_strided_slice %30 {offsets = [0, 96], sizes = [8, 32], strides = [1, 1]} : vector<8x128xf32> to vector<8x32xf32>
    %109 = vector.extract_strided_slice %34 {offsets = [0, 96], sizes = [8, 32], strides = [1, 1]} : vector<8x128xf32> to vector<8x32xf32>
    %cst_41 = arith.constant dense<0.000000e+00> : vector<8x8xf32>
    %110 = tpu.matmul %108, %109, %cst_41 {dimension_numbers = #tpu.dot_dimension_numbers<[1], [1], [0], [0], [0, 0, 1, 0], [], []>} : vector<8x32xf32>, vector<8x32xf32>, vector<8x8xf32> -> vector<8x8xf32>
    %cst_42 = arith.constant 0.176776692 : f32
    %111 = vector.broadcast %cst_42 : f32 to vector<8x8xf32>
    %112 = arith.mulf %110, %111 : vector<8x8xf32>
    %113 = vector.broadcast %44 : vector<1x8xf32> to vector<8x8xf32>
    %114 = arith.addf %112, %113 : vector<8x8xf32>
    %cst_43 = arith.constant dense<0xFF800000> : vector<8xf32>
    %115 = vector.multi_reduction <maximumf>, %114, %cst_43 [1] : vector<8x8xf32> to vector<8xf32>
    %cst_44 = arith.constant 0xFF800000 : f32
    %116 = vector.broadcast %cst_44 : f32 to vector<8xf32>
    %117 = arith.maximumf %116, %115 : vector<8xf32>
    %118 = vector.shape_cast %117 : vector<8xf32> to vector<8x1xf32>
    %119 = vector.broadcast %118 : vector<8x1xf32> to vector<8x8xf32>
    %120 = arith.subf %114, %119 : vector<8x8xf32>
    %121 = math.exp %120 : vector<8x8xf32>
    %cst_45 = arith.constant dense<0.000000e+00> : vector<8xf32>
    %122 = vector.multi_reduction <add>, %121, %cst_45 [1] : vector<8x8xf32> to vector<8xf32>
    %123 = vector.shape_cast %122 : vector<8xf32> to vector<8x1xf32>
    %124 = vector.broadcast %123 : vector<8x1xf32> to vector<8x8xf32>
    %125 = arith.divf %121, %124 : vector<8x8xf32>
    %126 = vector.extract_strided_slice %38 {offsets = [0, 96], sizes = [8, 32], strides = [1, 1]} : vector<8x128xf32> to vector<8x32xf32>
    %cst_46 = arith.constant dense<0.000000e+00> : vector<8x32xf32>
    %127 = tpu.matmul %125, %126, %cst_46 {dimension_numbers = #tpu.dot_dimension_numbers<[1], [0], [0], [1], [0, 0, 1, 1], [], []>} : vector<8x8xf32>, vector<8x32xf32>, vector<8x32xf32> -> vector<8x32xf32>
    %c0_47 = arith.constant 0 : index
    %c96 = arith.constant 96 : index
    %128 = vector.load %arg11[%c0_47, %c96] : memref<8x128xf32, #tpu.memory_space<vmem>>, vector<8x32xf32>
    tpu.vector_store %arg11[%c0_47, %c96], %127 {strides = array<i32>} : memref<8x128xf32, #tpu.memory_space<vmem>>, vector<8x32xf32>,
    %c0_48 = arith.constant 0 : index
    %c0_49 = arith.constant 0 : index
    %129 = vector.load %arg11[%c0_48, %c0_49] : memref<8x128xf32, #tpu.memory_space<vmem>>, vector<8x128xf32>
    %130 = arith.truncf %129 : vector<8x128xf32> to vector<8x128xbf16>
    %c0_50 = arith.constant 0 : index
    %c0_51 = arith.constant 0 : index
    %c0_52 = arith.constant 0 : index
    %131 = vector.load %arg6[%c0_50, %c0_51, %c0_52] : memref<1x128x128xbf16, #tpu.memory_space<vmem>>, vector<1x128x128xbf16>
    %132 = vector.shape_cast %131 : vector<1x128x128xbf16> to vector<128x128xbf16>
    %cst_53 = arith.constant dense<0.000000e+00> : vector<8x128xf32>
    %133 = tpu.matmul %130, %132, %cst_53 {dimension_numbers = #tpu.dot_dimension_numbers<[1], [0], [0], [1], [0, 0, 1, 1], [], []>} : vector<8x128xbf16>, vector<128x128xbf16>, vector<8x128xf32> -> vector<8x128xf32>
    %134 = vector.extract_strided_slice %22 {offsets = [3, 0], sizes = [1, 128], strides = [1, 1]} : vector<10x128xf32> to vector<1x128xf32>
    %135 = vector.broadcast %134 : vector<1x128xf32> to vector<8x128xf32>
    %136 = arith.addf %133, %135 : vector<8x128xf32>
    %137 = arith.addf %20, %136 : vector<8x128xf32>
    %138 = vector.extract_strided_slice %22 {offsets = [4, 0], sizes = [1, 128], strides = [1, 1]} : vector<10x128xf32> to vector<1x128xf32>
    %139 = vector.extract_strided_slice %22 {offsets = [5, 0], sizes = [1, 128], strides = [1, 1]} : vector<10x128xf32> to vector<1x128xf32>
    %cst_54 = arith.constant dense<0.000000e+00> : vector<8xf32>
    %140 = vector.multi_reduction <add>, %137, %cst_54 [1] : vector<8x128xf32> to vector<8xf32>
    %141 = vector.shape_cast %140 : vector<8xf32> to vector<8x1xf32>
    %cst_55 = arith.constant 1.280000e+02 : f32
    %142 = vector.broadcast %cst_55 : f32 to vector<8x1xf32>
    %143 = arith.divf %141, %142 : vector<8x1xf32>
    %144 = vector.broadcast %143 : vector<8x1xf32> to vector<8x128xf32>
    %145 = arith.subf %137, %144 : vector<8x128xf32>
    %146 = arith.mulf %145, %145 : vector<8x128xf32>
    %cst_56 = arith.constant dense<0.000000e+00> : vector<8xf32>
    %147 = vector.multi_reduction <add>, %146, %cst_56 [1] : vector<8x128xf32> to vector<8xf32>
    %148 = vector.shape_cast %147 : vector<8xf32> to vector<8x1xf32>
    %cst_57 = arith.constant 1.280000e+02 : f32
    %149 = vector.broadcast %cst_57 : f32 to vector<8x1xf32>
    %150 = arith.divf %148, %149 : vector<8x1xf32>
    %151 = vector.broadcast %143 : vector<8x1xf32> to vector<8x128xf32>
    %152 = arith.subf %137, %151 : vector<8x128xf32>
    %cst_58 = arith.constant 9.99999974E-6 : f32
    %153 = vector.broadcast %cst_58 : f32 to vector<8x1xf32>
    %154 = arith.addf %150, %153 : vector<8x1xf32>
    %155 = math.rsqrt %154 : vector<8x1xf32>
    %156 = vector.broadcast %155 : vector<8x1xf32> to vector<8x128xf32>
    %157 = arith.mulf %152, %156 : vector<8x128xf32>
    %158 = vector.broadcast %138 : vector<1x128xf32> to vector<8x128xf32>
    %159 = arith.mulf %157, %158 : vector<8x128xf32>
    %160 = vector.broadcast %139 : vector<1x128xf32> to vector<8x128xf32>
    %161 = arith.addf %159, %160 : vector<8x128xf32>
    %c0_i32_59 = arith.constant 0 : i32
    %c0_i32_60 = arith.constant 0 : i32
    %c0_i32_61 = arith.constant 0 : i32
    %c0_i32_62 = arith.constant 0 : i32
    %162 = tpu.memref_slice %arg7[%c0_i32_59, %c0_i32_61, %c0_i32_62] : memref<2x128x2048xi8, #tpu.memory_space<any>> -> memref<1x128x2048xi8, #tpu.memory_space<any>>
    %163 = tpu.memref_squeeze %162 : memref<1x128x2048xi8, #tpu.memory_space<any>> -> memref<128x2048xi8, #tpu.memory_space<any>>
    %c0_i32_63 = arith.constant 0 : i32
    %c0_i32_64 = arith.constant 0 : i32
    %164 = tpu.memref_slice %arg12[%9, %c0_i32_63, %c0_i32_64] : memref<2x128x2048xi8, #tpu.memory_space<vmem>> -> memref<1x128x2048xi8, #tpu.memory_space<vmem>>
    %165 = tpu.memref_squeeze %164 : memref<1x128x2048xi8, #tpu.memory_space<vmem>> -> memref<128x2048xi8, #tpu.memory_space<vmem>>
    %166 = tpu.memref_slice %arg14[%c0_i32_60, %9] : memref<2x2x!tpu.dma_semaphore, #tpu.memory_space<semaphore_mem>> -> memref<1x1x!tpu.dma_semaphore, #tpu.memory_space<semaphore_mem>>
    %167 = tpu.memref_squeeze %166 : memref<1x1x!tpu.dma_semaphore, #tpu.memory_space<semaphore_mem>> -> memref<!tpu.dma_semaphore, #tpu.memory_space<semaphore_mem>>
    tpu.wait_dma2 semaphore(%167 : memref<!tpu.dma_semaphore, #tpu.memory_space<semaphore_mem>>) src(%163 : memref<128x2048xi8, #tpu.memory_space<any>>) dst(%165 : memref<128x2048xi8, #tpu.memory_space<vmem>>)
    %c0_i32_65 = arith.constant 0 : i32
    %c1_i32_66 = arith.constant 1 : i32
    %c0_i32_67 = arith.constant 0 : i32
    %c0_i32_68 = arith.constant 0 : i32
    %168 = tpu.memref_slice %arg8[%c0_i32_65, %c0_i32_67, %c0_i32_68] : memref<2x2048x128xi8, #tpu.memory_space<any>> -> memref<1x2048x128xi8, #tpu.memory_space<any>>
    %169 = tpu.memref_squeeze %168 : memref<1x2048x128xi8, #tpu.memory_space<any>> -> memref<2048x128xi8, #tpu.memory_space<any>>
    %c0_i32_69 = arith.constant 0 : i32
    %c0_i32_70 = arith.constant 0 : i32
    %170 = tpu.memref_slice %arg13[%9, %c0_i32_69, %c0_i32_70] : memref<2x2048x128xi8, #tpu.memory_space<vmem>> -> memref<1x2048x128xi8, #tpu.memory_space<vmem>>
    %171 = tpu.memref_squeeze %170 : memref<1x2048x128xi8, #tpu.memory_space<vmem>> -> memref<2048x128xi8, #tpu.memory_space<vmem>>
    %172 = tpu.memref_slice %arg14[%c1_i32_66, %9] : memref<2x2x!tpu.dma_semaphore, #tpu.memory_space<semaphore_mem>> -> memref<1x1x!tpu.dma_semaphore, #tpu.memory_space<semaphore_mem>>
    %173 = tpu.memref_squeeze %172 : memref<1x1x!tpu.dma_semaphore, #tpu.memory_space<semaphore_mem>> -> memref<!tpu.dma_semaphore, #tpu.memory_space<semaphore_mem>>
    tpu.wait_dma2 semaphore(%173 : memref<!tpu.dma_semaphore, #tpu.memory_space<semaphore_mem>>) src(%169 : memref<2048x128xi8, #tpu.memory_space<any>>) dst(%171 : memref<2048x128xi8, #tpu.memory_space<vmem>>)
    %c0_71 = arith.constant 0 : index
    %c0_72 = arith.constant 0 : index
    %c0_73 = arith.constant 0 : index
    %174 = vector.load %arg4[%c0_71, %c0_72, %c0_73] : memref<1x2x2048xf32, #tpu.memory_space<vmem>>, vector<1x2x2048xf32>
    %175 = vector.shape_cast %174 : vector<1x2x2048xf32> to vector<2x2048xf32>
    %176 = arith.truncf %161 : vector<8x128xf32> to vector<8x128xbf16>
    %177 = arith.index_cast %9 : i32 to index
    %c0_74 = arith.constant 0 : index
    %c0_75 = arith.constant 0 : index
    %178 = vector.load %arg12[%177, %c0_74, %c0_75] : memref<2x128x2048xi8, #tpu.memory_space<vmem>>, vector<1x128x2048xi8>
    %179 = vector.shape_cast %178 : vector<1x128x2048xi8> to vector<128x2048xi8>
    %180 = arith.sitofp %179 : vector<128x2048xi8> to vector<128x2048xbf16>
    %cst_76 = arith.constant dense<0.000000e+00> : vector<8x2048xf32>
    %181 = tpu.matmul %176, %180, %cst_76 {dimension_numbers = #tpu.dot_dimension_numbers<[1], [0], [0], [1], [0, 0, 1, 1], [], []>} : vector<8x128xbf16>, vector<128x2048xbf16>, vector<8x2048xf32> -> vector<8x2048xf32>
    %182 = vector.extract_strided_slice %175 {offsets = [1, 0], sizes = [1, 2048], strides = [1, 1]} : vector<2x2048xf32> to vector<1x2048xf32>
    %183 = vector.broadcast %182 : vector<1x2048xf32> to vector<8x2048xf32>
    %184 = arith.mulf %181, %183 : vector<8x2048xf32>
    %185 = vector.extract_strided_slice %175 {offsets = [0, 0], sizes = [1, 2048], strides = [1, 1]} : vector<2x2048xf32> to vector<1x2048xf32>
    %186 = vector.broadcast %185 : vector<1x2048xf32> to vector<8x2048xf32>
    %187 = arith.addf %184, %186 : vector<8x2048xf32>
    %cst_77 = arith.constant 0.000000e+00 : f32
    %188 = vector.broadcast %cst_77 : f32 to vector<8x2048xf32>
    %189 = arith.maximumf %187, %188 : vector<8x2048xf32>
    %190 = arith.truncf %189 : vector<8x2048xf32> to vector<8x2048xbf16>
    %191 = arith.index_cast %9 : i32 to index
    %c0_78 = arith.constant 0 : index
    %c0_79 = arith.constant 0 : index
    %192 = vector.load %arg13[%191, %c0_78, %c0_79] : memref<2x2048x128xi8, #tpu.memory_space<vmem>>, vector<1x2048x128xi8>
    %193 = vector.shape_cast %192 : vector<1x2048x128xi8> to vector<2048x128xi8>
    %194 = arith.sitofp %193 : vector<2048x128xi8> to vector<2048x128xbf16>
    %cst_80 = arith.constant dense<0.000000e+00> : vector<8x128xf32>
    %195 = tpu.matmul %190, %194, %cst_80 {dimension_numbers = #tpu.dot_dimension_numbers<[1], [0], [0], [1], [0, 0, 1, 1], [], []>} : vector<8x2048xbf16>, vector<2048x128xbf16>, vector<8x128xf32> -> vector<8x128xf32>
    %196 = vector.extract_strided_slice %22 {offsets = [9, 0], sizes = [1, 128], strides = [1, 1]} : vector<10x128xf32> to vector<1x128xf32>
    %197 = vector.broadcast %196 : vector<1x128xf32> to vector<8x128xf32>
    %198 = arith.mulf %195, %197 : vector<8x128xf32>
    %199 = vector.extract_strided_slice %22 {offsets = [8, 0], sizes = [1, 128], strides = [1, 1]} : vector<10x128xf32> to vector<1x128xf32>
    %200 = vector.broadcast %199 : vector<1x128xf32> to vector<8x128xf32>
    %201 = arith.addf %198, %200 : vector<8x128xf32>
    %202 = arith.addf %161, %201 : vector<8x128xf32>
    %203 = vector.extract_strided_slice %22 {offsets = [6, 0], sizes = [1, 128], strides = [1, 1]} : vector<10x128xf32> to vector<1x128xf32>
    %204 = vector.extract_strided_slice %22 {offsets = [7, 0], sizes = [1, 128], strides = [1, 1]} : vector<10x128xf32> to vector<1x128xf32>
    %cst_81 = arith.constant dense<0.000000e+00> : vector<8xf32>
    %205 = vector.multi_reduction <add>, %202, %cst_81 [1] : vector<8x128xf32> to vector<8xf32>
    %206 = vector.shape_cast %205 : vector<8xf32> to vector<8x1xf32>
    %cst_82 = arith.constant 1.280000e+02 : f32
    %207 = vector.broadcast %cst_82 : f32 to vector<8x1xf32>
    %208 = arith.divf %206, %207 : vector<8x1xf32>
    %209 = vector.broadcast %208 : vector<8x1xf32> to vector<8x128xf32>
    %210 = arith.subf %202, %209 : vector<8x128xf32>
    %211 = arith.mulf %210, %210 : vector<8x128xf32>
    %cst_83 = arith.constant dense<0.000000e+00> : vector<8xf32>
    %212 = vector.multi_reduction <add>, %211, %cst_83 [1] : vector<8x128xf32> to vector<8xf32>
    %213 = vector.shape_cast %212 : vector<8xf32> to vector<8x1xf32>
    %cst_84 = arith.constant 1.280000e+02 : f32
    %214 = vector.broadcast %cst_84 : f32 to vector<8x1xf32>
    %215 = arith.divf %213, %214 : vector<8x1xf32>
    %216 = vector.broadcast %208 : vector<8x1xf32> to vector<8x128xf32>
    %217 = arith.subf %202, %216 : vector<8x128xf32>
    %cst_85 = arith.constant 9.99999974E-6 : f32
    %218 = vector.broadcast %cst_85 : f32 to vector<8x1xf32>
    %219 = arith.addf %215, %218 : vector<8x1xf32>
    %220 = math.rsqrt %219 : vector<8x1xf32>
    %221 = vector.broadcast %220 : vector<8x1xf32> to vector<8x128xf32>
    %222 = arith.mulf %217, %221 : vector<8x128xf32>
    %223 = vector.broadcast %203 : vector<1x128xf32> to vector<8x128xf32>
    %224 = arith.mulf %222, %223 : vector<8x128xf32>
    %225 = vector.broadcast %204 : vector<1x128xf32> to vector<8x128xf32>
    %226 = arith.addf %224, %225 : vector<8x128xf32>
    %c0_86 = arith.constant 0 : index
    %c0_87 = arith.constant 0 : index
    %227 = vector.load %arg10[%c0_86, %c0_87] : memref<8x128xf32, #tpu.memory_space<vmem>>, vector<8x128xf32>
    tpu.vector_store %arg10[%c0_86, %c0_87], %226 {strides = array<i32>} : memref<8x128xf32, #tpu.memory_space<vmem>>, vector<8x128xf32>,
    %c1_i32_88 = arith.constant 1 : i32
    %228 = arith.cmpi eq, %arg0, %c1_i32_88 : i32
    %229 = arith.extui %228 : i1 to i32
    %c0_i32_89 = arith.constant 0 : i32
    %230 = arith.cmpi ne, %229, %c0_i32_89 : i32
    scf.if %230 {
      %231 = vector.extract_strided_slice %226 {offsets = [2, 0], sizes = [1, 128], strides = [1, 1]} : vector<8x128xf32> to vector<1x128xf32>
      %c136 = arith.constant 136 : index
      %c0_90 = arith.constant 0 : index
      %232 = vector.load %arg2[%c136, %c0_90] : memref<152x128xf32, #tpu.memory_space<vmem>>, vector<8x128xf32>
      %c144 = arith.constant 144 : index
      %c0_91 = arith.constant 0 : index
      %233 = vector.load %arg2[%c144, %c0_91] : memref<152x128xf32, #tpu.memory_space<vmem>>, vector<1x128xf32>
      %234 = vector.extract_strided_slice %233 {offsets = [0, 0], sizes = [1, 8], strides = [1, 1]} : vector<1x128xf32> to vector<1x8xf32>
      %cst_92 = arith.constant dense<0.000000e+00> : vector<1x8xf32>
      %235 = tpu.matmul %231, %232, %cst_92 {dimension_numbers = #tpu.dot_dimension_numbers<[1], [1], [0], [0], [0, 0, 1, 0], [], []>} : vector<1x128xf32>, vector<8x128xf32>, vector<1x8xf32> -> vector<1x8xf32>
      %236 = arith.addf %235, %234 : vector<1x8xf32>
      %cst_93 = arith.constant dense<0xFF800000> : vector<1xf32>
      %237 = vector.multi_reduction <maximumf>, %236, %cst_93 [1] : vector<1x8xf32> to vector<1xf32>
      %cst_94 = arith.constant 0xFF800000 : f32
      %238 = vector.broadcast %cst_94 : f32 to vector<1xf32>
      %239 = arith.maximumf %238, %237 : vector<1xf32>
      %240 = vector.shape_cast %239 : vector<1xf32> to vector<1x1xf32>
      %241 = vector.broadcast %240 : vector<1x1xf32> to vector<1x8xf32>
      %242 = arith.subf %236, %241 : vector<1x8xf32>
      %243 = math.exp %242 : vector<1x8xf32>
      %cst_95 = arith.constant dense<0.000000e+00> : vector<1xf32>
      %244 = vector.multi_reduction <add>, %243, %cst_95 [1] : vector<1x8xf32> to vector<1xf32>
      %245 = vector.shape_cast %244 : vector<1xf32> to vector<1x1xf32>
      %246 = vector.broadcast %245 : vector<1x1xf32> to vector<1x8xf32>
      %247 = arith.divf %243, %246 : vector<1x8xf32>
      %c0_96 = arith.constant 0 : index
      %c0_97 = arith.constant 0 : index
      %248 = vector.load %arg9[%c0_96, %c0_97] : memref<1x8xf32, #tpu.memory_space<vmem>>, vector<1x8xf32>
      tpu.vector_store %arg9[%c0_96, %c0_97], %247 {strides = array<i32>} : memref<1x8xf32, #tpu.memory_space<vmem>>, vector<1x8xf32>,
    } else {
    }
    return
  }
  func.func @transform_0(%arg0: i32) -> (i32, i32) {
    %c0_i32 = arith.constant 0 : i32
    %c0_i32_0 = arith.constant 0 : i32
    %c0_i32_1 = arith.constant 0 : i32
    return %c0_i32, %c0_i32_0 : i32, i32
  }
  func.func @transform_1(%arg0: i32) -> (i32, i32) {
    %c0_i32 = arith.constant 0 : i32
    %c0_i32_0 = arith.constant 0 : i32
    %c0_i32_1 = arith.constant 0 : i32
    return %c0_i32, %c0_i32_0 : i32, i32
  }
  func.func @transform_2(%arg0: i32) -> (i32, i32, i32) {
    %c0_i32 = arith.constant 0 : i32
    %c0_i32_0 = arith.constant 0 : i32
    %c0_i32_1 = arith.constant 0 : i32
    return %arg0, %c0_i32, %c0_i32_0 : i32, i32, i32
  }
  func.func @transform_3(%arg0: i32) -> (i32, i32, i32) {
    %c0_i32 = arith.constant 0 : i32
    %c0_i32_0 = arith.constant 0 : i32
    %c0_i32_1 = arith.constant 0 : i32
    return %arg0, %c0_i32, %c0_i32_0 : i32, i32, i32
  }
  func.func @transform_4(%arg0: i32) -> (i32, i32, i32) {
    %c0_i32 = arith.constant 0 : i32
    %c0_i32_0 = arith.constant 0 : i32
    %c0_i32_1 = arith.constant 0 : i32
    return %arg0, %c0_i32, %c0_i32_0 : i32, i32, i32
  }
  func.func @transform_5(%arg0: i32) -> (i32, i32, i32) {
    %c0_i32 = arith.constant 0 : i32
    %c0_i32_0 = arith.constant 0 : i32
    %c0_i32_1 = arith.constant 0 : i32
    return %arg0, %c0_i32, %c0_i32_0 : i32, i32, i32
  }
  func.func @transform_8(%arg0: i32) -> (i32, i32) {
    %c0_i32 = arith.constant 0 : i32
    %c0_i32_0 = arith.constant 0 : i32
    %c0_i32_1 = arith.constant 0 : i32
    return %c0_i32, %c0_i32_0 : i32, i32
  }
}

</mosaic_0001>

<bundles_post_ra>
// kernel: belief_updater_forward.1
= control target key start
LH: loop header
LB: loop body
LE: loop exit
PB: predicated region body
PF: predicated region fallthrough
CT: control target
= control target key end

     0   :  { %s5080_s0 = inlined_call_operand.vmem [shape: f32[8,128], index: 0, kind: input, shape index: {}]   ;;  %s5081_s1 = inlined_call_operand.hbm [shape: f32[152,128], index: 1, kind: input, shape index: {}]   ;;  %s5082_s2 = inlined_call_operand.vmem [shape: f32[2,10,128], index: 2, kind: input, shape index: {}]   ;;  %s5083_s3 = inlined_call_operand.vmem [shape: f32[2,2,2048], index: 3, kind: input, shape index: {}]   ;;  %s5084_s4 = inlined_call_operand.hbm [shape: bf16[2,128,384], index: 4, kind: input, shape index: {}]   ;;  %s5085_s5 = inlined_call_operand.hbm [shape: bf16[2,128,128], index: 5, kind: input, shape index: {}]   ;;  %s5086_s6 = inlined_call_operand.hbm [shape: s8[2,128,2048], index: 6, kind: input, shape index: {}]   ;;  %s5087_s7 = inlined_call_operand.hbm [shape: s8[2,2048,128], index: 7, kind: input, shape index: {}]   ;;  %s5088_s8 = inlined_call_operand.hbm [shape: f32[1,8], index: 8, kind: output, shape index: {}]  }
   0x1   :  { %5100 = sst [smem:[#allocation31_spill]] %s5081_s1 }
   0x2   :  { %5101 = sst [smem:[#allocation32_spill]] %s5082_s2 }
   0x3   :  { %5102 = sst [smem:[#allocation33_spill]] %s5083_s3 }
   0x4   :  { %5103 = sst [smem:[#allocation34_spill]] %s5084_s4 }
   0x5   :  { %5104 = sst [smem:[#allocation35_spill]] %s5085_s5 }
   0x6   :  { %13 = vsyncpa [#allocation8], 0 }
   0x7   :  { %14 = vsyncpa [#allocation11], 0 }
   0x8   :  { %16 = vsyncpa [#allocation11 + $0x1], 0 }
   0x9   :  { %17 = vsyncpa [#allocation9], 0  ;;  %s4278_s27 = smov 0   ;;  %s4280_s28 = smov 0  }
   0xa   :  { %s4282_s29 = smov 0   ;;  %s4284_s30 = smov 0  }
   0xb LB: > { %5105 = sst [smem:[#allocation29_spill]] %s4203_s29  ;;  %s4299_s9 = sadd.s32 1, %s4207_s30   ;;  %s4207_s30 = sphi %s4284_s30, %s5138_s30   ;;  %s4203_s29 = sphi %s4282_s29, %s5135_s29   ;;  %s4199_s28 = sphi %s4280_s28, %s5137_s28   ;;  %s4195_s27 = sphi %s4278_s27, %s5136_s27  }
   0xc   : > { %s124_s10 = sadd.s32 1, %s4203_s29  ;;  %s121_s11 = ssub.s32 %s4207_s30, %s4299_s9 }
   0xd   : > { %p131_p0 = scmp.ne.s32.totalorder %s4203_s29, %s4199_s28  ;;  %p122_p1 = scmp.eq.s32.totalorder %s121_s11, 0 }
   0xe   : > { %p132_p2 = scmp.eq.s32.totalorder %s4207_s30, 0  ;;  %p3815_p3 = scmp.lt.s32.totalorder %s4207_s30, 2 }
   0xf   : > { %s4309_s12 = scalar_select %p122_p1, %s4203_s29, %s124_s10  }
  0x10   : > { %p133_p4 = por %p132_p2, %p131_p0  ;;  %s240_s13 = sand.u32 1, %s4207_s30  }
  0x11   : > { %5106 = sst [smem:[#allocation30_spill]] %s4309_s12  ;;  %s242_s14 = sand.u32 1, %s4203_s29  }
  0x12   : > { %s3782_s15 = smul.u32 192, %s242_s14  ;;  %p4315_p5 = pnand %p3815_p3, %p133_p4 }
  0x13   : > { %s3783_s17 = smul.u32 3072, %s4207_s30  ;;  %s5108_s4 = sld [smem:[#allocation34_spill]] }
  0x14   : > { %s5107_s16 = scalar_select %p4315_p5, 1, 0 }
  0x15   : > { %s244_s21 = scalar_lea.vmem [#allocation10], %s3782_s15  ;;  %s4327_s23 = scalar_lea.sflag [#allocation11], %s240_s13 }
  0x16   : > { %s251_s22 = sshll.u32 %s244_s21, 4  ;;  %p5090_p7 = pneg %p4315_p5  ;;  %s4325_s22 = int_to_ptr.vmem [resolvable:$true] %s251_s22 }
  0x19   : > { %s4323_s20 = scalar_lea.hbm %s5108_s4, %s3783_s17  ;;  %s3944_s10 = scalar_lea.hbm %s5108_s4, 6144 }
  0x1a   : > { %s3939_s24 = scalar_lea.hbm %s4323_s20, 3072  ;;  %p3945_p10 = scmp.lt.u32.totalorder %s4323_s20, %s5108_s4 }
  0x1b   : > { %p3940_p6 = scmp.ne.s32.totalorder %s4323_s20, %s3939_s24  ;;  %p3946_p11 = scmp.lt.u32.totalorder %s3944_s10, %s3939_s24 }
  0x1c   : > { %p3948_p13 = scmp.lt.u32.totalorder %s3939_s24, %s4323_s20 }
  0x1d   : > { %p3942_p8 = pnand %p5090_p7, %p3940_p6  ;;  %p3947_p12 = por %p3946_p11, %p3945_p10 }
  0x1f   : > { %p3943_p9 = pneg %p3942_p8  ;;  %p3949_p0 = por %p3948_p13, %p3947_p12 }
  0x21   : > { %p3950_p1 = pnand %p3949_p0, %p3943_p9 }
  0x23   : > { %3953 = shalt.err (!%p3950_p1)
}
  0x24   : > { %s3954_s13 = scalar_lea.vmem %s4325_s22, 3072  ;;  %s4209_s15 = smov [#allocation10]  }
  0x25   : > { %p3955_p2 = scmp.ne.s32.totalorder %s4325_s22, %s3954_s13  ;;  %s3959_s18 = sshll.u32 %s4209_s15, 4  ;;  %s3960_s18 = int_to_ptr.vmem [resolvable:$false] %s3959_s18 }
  0x26   : > { %s3961_s19 = scalar_lea.vmem %s3960_s18, 6144  ;;  %p3962_p6 = scmp.lt.s32.totalorder %s4325_s22, %s3960_s18 }
  0x27   : > { %p3957_p3 = pnand %p3955_p2, %p5090_p7  ;;  %p3963_p8 = scmp.lt.s32.totalorder %s3961_s19, %s3954_s13 }
  0x29   : > { %p3958_p4 = pneg %p3957_p3  ;;  %p3964_p10 = por %p3963_p8, %p3962_p6 }
  0x2b   : > { %p3965_p11 = pnand %p3964_p10, %p3958_p4 }
  0x2d   : > { %3968 = shalt.err (!%p3965_p11)
}
  0x2e   : > { %s4210_s21 = smov 192   ;;  %s4211_s24 = smov 12  }
  0x2f   : > { %3810 = dma.hbm_to_vmem [thread:$0]  (!%p4315_p5), %s4323_s20, 3072, %s4325_s22, %s4327_s23, %s4210_s21, %s4210_s21, %s4211_s24  }
  0x30   : > { %s3317_s25 = sshll.u32 %s242_s14, 6  ;;  %s4358_s26 = sadd.s32 4294967295, %s4207_s30  }
  0x31   : > { %p137_p9 = scmp.ne.s32.totalorder %s4199_s28, %s4195_s27  ;;  %p5089_p12 = scmp.eq.s32.totalorder %s4358_s26, 0 }
  0x32   : > { %p3313_p13 = scmp.ge.s32.totalorder %s4207_s30, 1  ;;  %p195_p0 = scmp.lt.s32.totalorder %s4207_s30, 3 }
  0x33   : > { %p4368_p2 = por %p5089_p12, %p137_p9  ;;  %s4212_s14 = smov [#allocation7]  }
  0x34   : > { %p4372_p3 = pnand %p3313_p13, %p195_p0  ;;  %s210_s22 = sshll.u32 %s4212_s14, 4  ;;  %s4376_s22 = int_to_ptr.vmem [resolvable:$true] %s210_s22 }
  0x35   : > { %s5109_s10 = scalar_select %p4368_p2, 1, 0 }
  0x36   : > { %s5110_s20 = scalar_select %p4372_p3, 1, 0 }
  0x37   : > { %p3803_p4 = pneg %p4372_p3  ;;  %s3400_s27 = sshll.u32 %s4207_s30, 10 }
  0x38   : > { %s265_s11 = scalar_lea.vmem [#allocation12], %s3317_s25  ;;  %s5112_s5 = sld [smem:[#allocation35_spill]] }
  0x39   : > { %s272_s17 = sshll.u32 %s265_s11, 4  ;;  %p4383_p6 = pnand %p3803_p4, %p5089_p12  ;;  %s4392_s17 = int_to_ptr.vmem [resolvable:$true] %s272_s17 }
  0x3a   : > { %s5113_s1 = sld [smem:[#allocation31_spill]] }
  0x3b   : > { %p3971_p10 = pneg %p4383_p6 }
  0x3e   : > { %s4390_s19 = scalar_lea.hbm %s5112_s5, %s3400_s27 }
  0x40   : > { %s3969_s14 = scalar_lea.hbm %s5113_s1, 2432 }
  0x41   : > { %p3970_p8 = scmp.ne.s32.totalorder %s5113_s1, %s3969_s14  ;;  %p3976_p13 = scmp.lt.u32.totalorder %s3969_s14, %s5113_s1 }
  0x43   : > { %p3972_p11 = pnand %p3971_p10, %p3970_p8 }
  0x45   : > { %p3973_p9 = pneg %p3972_p11 }
  0x47   : > { %p3978_p0 = pnand %p3976_p13, %p3973_p9 }
  0x49   : > { %3981 = shalt.err (!%p3978_p0)
}
  0x4a   : > { %s3982_s27 = scalar_lea.vmem %s4376_s22, 2432  ;;  %p3990_p7 = scmp.lt.s32.totalorder %s4376_s22, %s4376_s22 }
  0x4b   : > { %p3983_p4 = scmp.ne.s32.totalorder %s4376_s22, %s3982_s27  ;;  %p3991_p2 = scmp.lt.s32.totalorder %s3982_s27, %s3982_s27 }
  0x4d   : > { %p3985_p1 = pnand %p3983_p4, %p3971_p10  ;;  %p3992_p3 = por %p3991_p2, %p3990_p7 }
  0x4f   : > { %p3986_p12 = pneg %p3985_p1 }
  0x51   : > { %p3993_p5 = pnand %p3992_p3, %p3986_p12 }
  0x53   : > { %3996 = shalt.err (!%p3993_p5)
}
  0x54   : > { %s4213_s15 = smov 128   ;;  %s4214_s4 = smov 8  }
  0x55   : > { %3806 = dma.hbm_to_vmem [thread:$0]  (!%p4383_p6), %s5113_s1, 2432, %s4376_s22, [#allocation8], %s4213_s15, %s4213_s15, %s4214_s4  }
  0x56   : > { %s3997_s24 = scalar_lea.hbm %s4390_s19, 1024  ;;  %p5114_p8 = scmp.ne.s32.totalorder %s5107_s16, 0 }
  0x57   : > { %p3998_p1 = scmp.ne.s32.totalorder %s4390_s19, %s3997_s24  ;;  %s4002_s25 = scalar_lea.hbm %s5112_s5, 2048 }
  0x58   : > { %p5115_p7 = pneg %p5114_p8  ;;  %p4003_p2 = scmp.lt.u32.totalorder %s4390_s19, %s5112_s5 }
  0x59   : > { %p4004_p3 = scmp.lt.u32.totalorder %s4002_s25, %s3997_s24  ;;  %p4006_p11 = scmp.lt.u32.totalorder %s3997_s24, %s4390_s19 }
  0x5a   : > { %p4000_p12 = pnand %p3998_p1, %p5115_p7 }
  0x5b   : > { %p4005_p10 = por %p4004_p3, %p4003_p2 }
  0x5c   : > { %p4001_p5 = pneg %p4000_p12 }
  0x5d   : > { %p4007_p9 = por %p4006_p11, %p4005_p10 }
  0x5f   : > { %p4008_p13 = pnand %p4007_p9, %p4001_p5 }
  0x61   : > { %4011 = shalt.err (!%p4008_p13)
}
  0x62   : > { %s4012_s22 = scalar_lea.vmem %s4392_s17, 1024  ;;  %p5116_p0 = pmov %p5115_p7 }
  0x63   : > { %p4013_p6 = scmp.ne.s32.totalorder %s4392_s17, %s4012_s22  ;;  %s4215_s13 = smov [#allocation12]  }
  0x64   : > { %s4017_s15 = sshll.u32 %s4215_s13, 4  ;;  %s4018_s15 = int_to_ptr.vmem [resolvable:$false] %s4017_s15 }
  0x65   : > { %p4015_p4 = pnand %p4013_p6, %p5116_p0  ;;  %s4019_s4 = scalar_lea.vmem %s4018_s15, 2048 }
  0x66   : > { %p4020_p7 = scmp.lt.s32.totalorder %s4392_s17, %s4018_s15  ;;  %p4021_p12 = scmp.lt.s32.totalorder %s4019_s4, %s4012_s22 }
  0x67   : > { %p4016_p1 = pneg %p4015_p4 }
  0x68   : > { %p4022_p2 = por %p4021_p12, %p4020_p7 }
  0x6a   : > { %p4023_p3 = pnand %p4022_p2, %p4016_p1 }
  0x6c   : > { %4026 = shalt.err (!%p4023_p3)
}
  0x6d   : > { %s4216_s18 = smov 64   ;;  %s4217_s21 = smov 4  }
  0x6e   : > { %3813 = dma.hbm_to_vmem [thread:$0]  (!%p5114_p8), %s4390_s19, 1024, %s4392_s17, %s4327_s23, %s4216_s18, %s4216_s18, %s4217_s21  }
  0x6f   : > { %p5117_p5 = scmp.ne.s32.totalorder %s5110_s20, 0 }
  0x70   : > { %p5118_p10 = scmp.eq.s32.totalorder (!%p5117_p5), %s4358_s26, 0 }
  0x71   : > { %284 = sbr.rel (%p5117_p5) target bundleno = 5181 (0x143d), region = 44 }
  0x78   : > { %4178 = dma.done.wait (%p5118_p10), [#allocation8], 2432   ;;  %p5119_p11 = pmov %p5118_p10 }
  0x79   : > { %s290_s24 = sand.u32 1, %s4358_s26   ;;  %s292_s14 = sand.u32 1, %s4199_s28  }
  0x7a   : > { %4180 = vsyncadd (%p5119_p11), [#allocation8], 4294964864  ;;  %s3784_s30 = smul.u32 192, %s292_s14  ;;  %s291_s25 = scalar_lea.sflag [#allocation11], %s290_s24 }
  0x7b   : > { %p5120_p9 = scmp.ne.s32.totalorder %s5109_s10, 0 }
  0x7c   : > { %s4447_s11 = scalar_lea.vmem [#allocation10], %s3784_s30 }
  0x7d   : > { %4182 = dma.done.wait (%p5120_p9), %s291_s25, 4096  }
  0x7e   : > { %4184 = vsyncadd (%p5120_p9), %s291_s25, 4294963200  ;;  %s4453_s16 = sshll.u32 %s292_s14, 6  ;;  %p342_p8 = scmp.lt.s32.totalorder %s4358_s26, 1 }
  0x7f   : > { %p353_p13 = scmp.lt.s32.totalorder %s4358_s26, 0  ;;  %s354_s20 = ssub.s32 0, %s4358_s26 }
  0x80   : > { %s343_s23 = scalar_select %p342_p8, %s4358_s26, 1 }
  0x81   : > { %s5121_s2 = sld [smem:[#allocation32_spill]]  ;;  %s5122_s3 = sld [smem:[#allocation33_spill]] }
  0x82   : > { %s3401_s17 = sshll.u32 %s343_s23, 4  ;;  %s3402_s19 = sshll.u32 %s343_s23, 5 }
  0x83   : > { %s3327_s18 = smin.u32 %s4358_s26, %s354_s20  ;;  %s4218_s21 = smov [#allocation4]  }
  0x84   : > { %s376_s24 = sshll.u32 %s4218_s21, 4  ;;  %s356_s14 = sand.u32 1, %s3327_s18   ;;  %s4470_s24 = int_to_ptr.vmem [resolvable:$true] %s376_s24 }
  0x85   : > { %s357_s30 = ssub.s32 0, %s356_s14  ;;  %s4027_s1 = scalar_lea.hbm %s5086_s6, 8192 }
  0x86   : > { %s5140_s30 = smov (!%p353_p13, %s357_s30), %s356_s14  ;;  %p4028_p6 = scmp.ne.s32.totalorder %s5086_s6, %s4027_s1 }
  0x87   : > { %s4462_s13 = scalar_lea.vmem %s5121_s2, %s3401_s17  ;;  %s4467_s4 = scalar_lea.vmem %s5122_s3, %s3402_s19 }
  0x88   : > { %p5123_p0 = pmov %p5118_p10  ;;  %s5096_s22 = scalar_lea.hbm %s5086_s6, 16384 }
  0x89   : > { %p4032_p7 = scmp.lt.u32.totalorder %s5096_s22, %s4027_s1  ;;  %p4033_p12 = scmp.lt.u32.totalorder %s4027_s1, %s5086_s6 }
  0x8a   : > { %p4029_p4 = pnand %p4028_p6, %p5123_p0 }
  0x8b   : > { %p4034_p2 = por %p4033_p12, %p4032_p7 }
  0x8c   : > { %p4030_p1 = pneg %p4029_p4 }
  0x8e   : > { %p4035_p3 = pnand %p4034_p2, %p4030_p1 }
  0x90   : > { %4038 = shalt.err (!%p4035_p3)  }
  0x91   : > { %s4039_s14 = scalar_lea.vmem %s4470_s24, 8192  ;;  %p5124_p10 = pmov %p5123_p0 }
  0x92   : > { %p4040_p5 = scmp.ne.s32.totalorder %s4470_s24, %s4039_s14  ;;  %s5095_s25 = scalar_lea.vmem %s4470_s24, 16384 }
  0x93   : > { %p4046_p8 = scmp.lt.s32.totalorder %s4470_s24, %s4470_s24  ;;  %p4047_p13 = scmp.lt.s32.totalorder %s5095_s25, %s4039_s14 }
  0x94   : > { %p4041_p11 = pnand %p4040_p5, %p5124_p10 }
  0x95   : > { %p4048_p6 = por %p4047_p13, %p4046_p8 }
  0x96   : > { %p4042_p9 = pneg %p4041_p11 }
  0x98   : > { %p4049_p0 = pnand %p4048_p6, %p4042_p9 }
  0x9a   : > { %4052 = shalt.err (!%p4049_p0)  }
  0x9b   : > { %p5125_p4 = pmov %p5124_p10  ;;  %p3329_p1 = scmp.lt.s32.totalorder %s5140_s30, 0 }
  0x9c   : > { %s363_s27 = sadd.s32 2, %s5140_s30  ;;  %s4219_s17 = smov [#allocation5]  }
  0x9d   : > { %3794 = dma.hbm_to_vmem [thread:$0]  (%p5125_p4), %s5086_s6, 8192, %s4470_s24, [#allocation6] }
  0x9e   : > { %s388_s19 = sshll.u32 %s4219_s17, 4  ;;  %s4506_s20 = sadd.s32 1, %s4358_s26  ;;  %s4510_s19 = int_to_ptr.vmem [resolvable:$true] %s388_s19 }
  0x9f   : > { %s5142_s27 = smov (!%p3329_p1, %s363_s27), %s5140_s30  ;;  %s4053_s18 = scalar_lea.hbm %s5087_s7, 8192 }
  0xa0   : > { %p4054_p7 = scmp.ne.s32.totalorder %s5087_s7, %s4053_s18  ;;  %p5126_p12 = pmov %p5125_p4 }
  0xa1   : > { %s5098_s17 = scalar_lea.hbm %s5087_s7, 16384  ;;  %p4059_p10 = scmp.lt.u32.totalorder %s4053_s18, %s5087_s7 }
  0xa2   : > { %p4055_p2 = pnand %p4054_p7, %p5126_p12  ;;  %p4058_p5 = scmp.lt.u32.totalorder %s5098_s17, %s4053_s18 }
  0xa4   : > { %p4056_p3 = pneg %p4055_p2  ;;  %p4060_p11 = por %p4059_p10, %p4058_p5 }
  0xa6   : > { %p4061_p9 = pnand %p4060_p11, %p4056_p3 }
  0xa8   : > { %4064 = shalt.err (!%p4061_p9)  }
  0xa9   : > { %s4065_s10 = scalar_lea.vmem %s4510_s19, 8192  ;;  %p5127_p13 = pmov %p5125_p4 }
  0xaa   : > { %p4066_p8 = scmp.ne.s32.totalorder %s4510_s19, %s4065_s10  ;;  %s5097_s25 = scalar_lea.vmem %s4510_s19, 16384 }
  0xab   : > { %p4072_p4 = scmp.lt.s32.totalorder %s4510_s19, %s4510_s19  ;;  %p4073_p1 = scmp.lt.s32.totalorder %s5097_s25, %s4065_s10 }
  0xac   : > { %p4067_p6 = pnand %p4066_p8, %p5127_p13 }
  0xad   : > { %p4074_p7 = por %p4073_p1, %p4072_p4 }
  0xae   : > { %p4068_p0 = pneg %p4067_p6 }
  0xb0   : > { %p4075_p12 = pnand %p4074_p7, %p4068_p0 }
  0xb2   : > { %4078 = shalt.err (!%p4075_p12)  }
  0xb3   : > { %p5128_p2 = pmov %p5127_p13  ;;  %p397_p3 = scmp.lt.s32.totalorder %s4506_s20, 1 }
  0xb4   : > { %p3332_p5 = scmp.lt.s32.totalorder %s4506_s20, 0  ;;  %p3818_p11 = scmp.lt.s32.totalorder %s4506_s20, 2 }
  0xb5   : > { %3795 = dma.hbm_to_vmem [thread:$0]  (%p5128_p2), %s5087_s7, 8192, %s4510_s19, [#allocation6 + $0x2] }
  0xb6   : > { %s398_s15 = scalar_select %p397_p3, %s4506_s20, 1 }
  0xb7   : > { %s5129_s29 = scalar_lea.hbm %s5086_s6, 16384 }
  0xb8   : > { %s400_s18 = ssub.s32 0, %s398_s15  ;;  %s3403_s1 = sshll.u32 %s398_s15, 13 }
  0xb9   : > { %s5144_s18 = smov (!%p3332_p5, %s400_s18), %s398_s15  ;;  %s4554_s2 = scalar_lea.hbm %s5086_s6, %s3403_s1 }
  0xba   : > { %s402_s21 = sand.u32 1, %s5144_s18   ;;  %s4559_s15 = scalar_lea.hbm %s5087_s7, %s3403_s1 }
  0xbb   : > { %s403_s14 = ssub.s32 0, %s402_s21  ;;  %s4079_s5 = scalar_lea.hbm %s4554_s2, 8192 }
  0xbc   : > { %s5146_s14 = smov (!%p3332_p5, %s403_s14), %s402_s21  ;;  %p4080_p9 = scmp.ne.s32.totalorder %s4554_s2, %s4079_s5 }
  0xbd   : > { %p3336_p10 = scmp.lt.s32.totalorder %s5146_s14, 0  ;;  %s409_s23 = sadd.s32 2, %s5146_s14 }
  0xbe   : > { %p4081_p8 = pnand %p4080_p9, %p3818_p11  ;;  %p4084_p6 = scmp.lt.u32.totalorder %s4554_s2, %s5086_s6 }
  0xbf   : > { %s5148_s23 = smov (!%p3336_p10, %s409_s23), %s5146_s14  ;;  %p4085_p0 = scmp.lt.u32.totalorder %s5129_s29, %s4079_s5 }
  0xc0   : > { %s3404_s18 = sshll.u32 %s5148_s23, 9  ;;  %s417_s17 = scalar_lea.sflag [#allocation6], %s5148_s23 }
  0xc1   : > { %s416_s21 = scalar_lea.vmem [#allocation4], %s3404_s18  ;;  %s4563_s3 = scalar_lea.sflag %s417_s17, 2 [#allocation6] }
  0xc2   : > { %s425_s14 = sshll.u32 %s416_s21, 4  ;;  %s432_s30 = scalar_lea.vmem [#allocation5], %s3404_s18  ;;  %s426_s14 = int_to_ptr.vmem [resolvable:$true] %s425_s14 }
  0xc3   : > { %s442_s10 = sshll.u32 %s432_s30, 4  ;;  %p4082_p13 = pneg %p4081_p8  ;;  %s443_s10 = int_to_ptr.vmem [resolvable:$true] %s442_s10 }
  0xc4   : > { %p4086_p4 = por %p4085_p0, %p4084_p6  ;;  %p4087_p1 = scmp.lt.u32.totalorder %s4079_s5, %s4554_s2 }
  0xc6   : > { %p4088_p7 = por %p4087_p1, %p4086_p4 }
  0xc8   : > { %p4089_p12 = pnand %p4088_p7, %p4082_p13 }
  0xca   : > { %4092 = shalt.err (!%p4089_p12)  }
  0xcb   : > { %s4093_s23 = scalar_lea.vmem %s426_s14, 8192  ;;  %p4100_p10 = scmp.lt.s32.totalorder %s426_s14, %s4470_s24 }
  0xcc   : > { %p4094_p2 = scmp.ne.s32.totalorder %s426_s14, %s4093_s23  ;;  %s5130_s18 = scalar_lea.vmem %s4470_s24, 16384 }
  0xcd   : > { %p4101_p9 = scmp.lt.s32.totalorder %s5130_s18, %s4093_s23 }
  0xce   : > { %p4095_p3 = pnand %p4094_p2, %p3818_p11 }
  0xcf   : > { %p4102_p8 = por %p4101_p9, %p4100_p10 }
  0xd0   : > { %p4096_p5 = pneg %p4095_p3 }
  0xd2   : > { %p4103_p0 = pnand %p4102_p8, %p4096_p5 }
  0xd4   : > { %4106 = shalt.err (!%p4103_p0)  }
  0xd5   : > { %3797 = dma.hbm_to_vmem [thread:$0]  (%p3818_p11), %s4554_s2, 8192, %s426_s14, %s417_s17 }
  0xd6   : > { %s4107_s5 = scalar_lea.hbm %s4559_s15, 8192  ;;  %p4112_p1 = scmp.lt.u32.totalorder %s4559_s15, %s5087_s7 }
  0xd7   : > { %p4108_p13 = scmp.ne.s32.totalorder %s4559_s15, %s4107_s5  ;;  %s5131_s30 = scalar_lea.hbm %s5087_s7, 16384 }
  0xd8   : > { %p4113_p7 = scmp.lt.u32.totalorder %s5131_s30, %s4107_s5  ;;  %p4115_p2 = scmp.lt.u32.totalorder %s4107_s5, %s4559_s15 }
  0xd9   : > { %p4109_p6 = pnand %p4108_p13, %p3818_p11 }
  0xda   : > { %p4114_p12 = por %p4113_p7, %p4112_p1 }
  0xdb   : > { %p4110_p4 = pneg %p4109_p6 }
  0xdc   : > { %p4116_p3 = por %p4115_p2, %p4114_p12 }
  0xde   : > { %p4117_p5 = pnand %p4116_p3, %p4110_p4 }
  0xe0   : > { %4120 = shalt.err (!%p4117_p5)  }
  0xe1   : > { %s4121_s17 = scalar_lea.vmem %s443_s10, 8192  ;;  %p4128_p0 = scmp.lt.s32.totalorder %s443_s10, %s4510_s19 }
  0xe2   : > { %p4122_p10 = scmp.ne.s32.totalorder %s443_s10, %s4121_s17  ;;  %s5132_s2 = scalar_lea.vmem %s4510_s19, 16384 }
  0xe3   : > { %p4129_p13 = scmp.lt.s32.totalorder %s5132_s2, %s4121_s17 }
  0xe4   : > { %p4123_p9 = pnand %p4122_p10, %p3818_p11 }
  0xe5   : > { %p4130_p6 = por %p4129_p13, %p4128_p0 }
  0xe6   : > { %p4124_p8 = pneg %p4123_p9 }
  0xe8   : > { %p4131_p1 = pnand %p4130_p6, %p4124_p8 }
  0xea   : > { %4134 = shalt.err (!%p4131_p1)  }
  0xeb   : > { %3798 = dma.hbm_to_vmem [thread:$0]  (%p3818_p11), %s4559_s15, 8192, %s443_s10, %s4563_s3 }
  0xec   : > { %s4609_s14 = scalar_lea.vmem [#allocation12], %s4453_s16  ;;  %p5133_p4 = scmp.ne.s32.totalorder %s4358_s26, 0 }
  0xed   : > { %v450_v0 = vld [vmem:[#allocation7] sm:$0xff] (!%p5133_p4)  ;;  %v451_v1 = vld [vmem:[#allocation7 + $0x8] sm:$0xff] (!%p5133_p4)  ;;  %v452_v2 = vld [vmem:[#allocation7 + $0x10] sm:$0xff] (!%p5133_p4)  ;;  %v4220_v3 = vmov (!%p5133_p4), 0.0|0.0   ;;  %vm4221_vm0 = vmmov (!%p5133_p4), 0   ;;  %v4222_v6 = vmov (!%p5133_p4), 0.0  }
  0xee   : > { %448 = sbr.rel (%p5133_p4) target bundleno = 486 (0x1e6), region = 84  ;;  %3758 = vmatprep.subr.bf16.mxu0 (!%p5133_p4), %v4220_v3  ;;  %v3759_v4 = vpack.c.bf16 (!%p5133_p4), %v451_v1, %v450_v0  ;;  %v453_v5 = vld [vmem:[#allocation7 + $0x18] sm:$0xff] (!%p5133_p4)  ;;  %3670 = vmatprep.mubr.msk.f32.mxu0 (!%p5133_p4), %vm4221_vm0, %v4222_v6  ;;  %v454_v8 = vld [vmem:[#allocation7 + $0x20] sm:$0xff] (!%p5133_p4)  ;;  %v455_v9 = vld [vmem:[#allocation7 + $0x28] sm:$0xff] (!%p5133_p4) }
  0xef   : > { %v3762_v7 = vpack.c.bf16 (!%p5133_p4), %v453_v5, %v452_v2  ;;  %v3765_v10 = vpack.c.bf16 (!%p5133_p4), %v455_v9, %v454_v8  ;;  %v456_v11 = vld [vmem:[#allocation7 + $0x30] sm:$0xff] (!%p5133_p4)  ;;  %v457_v12 = vld [vmem:[#allocation7 + $0x38] sm:$0xff] (!%p5133_p4)  ;;  %v458_v14 = vld [vmem:[#allocation7 + $0x40] sm:$0xff] (!%p5133_p4) }
  0xf0   : > { %3760 = vmatpush3.bf16.msra.mxu0 (!%p5133_p4), %v3759_v4  ;;  %v3768_v13 = vpack.c.bf16 (!%p5133_p4), %v457_v12, %v456_v11  ;;  %v459_v15 = vld [vmem:[#allocation7 + $0x48] sm:$0xff] (!%p5133_p4)  ;;  %v460_v17 = vld [vmem:[#allocation7 + $0x50] sm:$0xff] (!%p5133_p4)  ;;  %v461_v18 = vld [vmem:[#allocation7 + $0x58] sm:$0xff] (!%p5133_p4) }
  0xf1   : > { %3761 = vmatprep.subr.bf16.mxu0 (!%p5133_p4), %v4220_v3  ;;  %v3771_v16 = vpack.c.bf16 (!%p5133_p4), %v459_v15, %v458_v14  ;;  %v3774_v19 = vpack.c.bf16 (!%p5133_p4), %v461_v18, %v460_v17  ;;  %v462_v20 = vld [vmem:[#allocation7 + $0x60] sm:$0xff] (!%p5133_p4)  ;;  %v463_v21 = vld [vmem:[#allocation7 + $0x68] sm:$0xff] (!%p5133_p4)  ;;  %v464_v23 = vld [vmem:[#allocation7 + $0x70] sm:$0xff] (!%p5133_p4) }
  0xf2   : > { %v3777_v22 = vpack.c.bf16 (!%p5133_p4), %v463_v21, %v462_v20  ;;  %v465_v24 = vld [vmem:[#allocation7 + $0x78] sm:$0xff] (!%p5133_p4)  ;;  %v449_v26 = vld [vmem:[%s5080_s0] sm:$0xff] (!%p5133_p4)  ;;  %v466_v27 = vld [vmem:[#allocation7 + $0x80] sm:$0xff] (!%p5133_p4) }
  0xf3   : > { %v3780_v25 = vpack.c.bf16 (!%p5133_p4), %v465_v24, %v464_v23 }
  0xf4   : > { %3763 = vmatpush3.bf16.msra.mxu0 (!%p5133_p4), %v3762_v7 }
  0xf5   : > { %3764 = vmatprep.subr.bf16.mxu0 %v4220_v3 }
  0xf8   : > { %3766 = vmatpush3.bf16.msra.mxu0 %v3765_v10 }
  0xf9   : > { %3767 = vmatprep.subr.bf16.mxu0 %v4220_v3 }
  0xfc   : > { %3769 = vmatpush3.bf16.msra.mxu0 %v3768_v13 }
  0xfd   : > { %3770 = vmatprep.subr.bf16.mxu0 %v4220_v3 }
 0x100   : > { %3772 = vmatpush3.bf16.msra.mxu0 %v3771_v16 }
 0x101   : > { %3773 = vmatprep.subr.bf16.mxu0 %v4220_v3 }
 0x104   : > { %3775 = vmatpush3.bf16.msra.mxu0 %v3774_v19 }
 0x105   : > { %3776 = vmatprep.subr.bf16.mxu0 %v4220_v3 }
 0x108   : > { %3778 = vmatpush3.bf16.msra.mxu0 %v3777_v22 }
 0x109   : > { %3779 = vmatprep.subr.bf16.mxu0 %v4220_v3 }
 0x10c   : > { %3781 = vmatpush3.bf16.msra.mxu0 %v3780_v25 }
 0x10f   : > { %3671 = vmatmul.mubr.f32.vlgmr.msra.gmra.mrb[0].mxu0 %v449_v26 }
 0x1e2   : > { %v533_v28 = vpop.f32.mrb[0].mxu0 }
 0x1e3   : > { %v534_v29 = vadd.f32 %v533_v28, %v466_v27  ;;  %v3672_v30 = vpop.f32.mrb[1].mxu0 }
 0x1e5   : > { %537 = vst [vmem:[#allocation2] sm:$0xff] %v534_v29 }
 0x1e6 PF: > { %v4617_v31 = vld [vmem:[%s4462_s13 + $0x8] sm:$0x3]  ;;  %v3875_v32 = vld [vmem:[%s4447_s11 + $0x4] ss:$12 sps:$4 sm:$0xff]   ;;  %v4223_v34 = vmov 0   ;;  %v4224_v35 = vmov 0.0   ;;  %v783_v60 = vlaneseq }
 0x1e7   : > { %v3877_v33 = vld [vmem:[%s4447_s11] ss:$12 sps:$4 sm:$0xff]   ;;  %734 = vmatprep.mubr.bf16.mxu0 %v4223_v34  ;;  %3673 = vmatprep.subr.bf16.mxu1 %v4224_v35  ;;  %v3878_v36 = vld [vmem:[%s4447_s11 + $0x1c] ss:$12 sps:$4 sm:$0xff]   ;;  %vm4225_vm1 = vmmov 0   ;;  %vm802_vm2 = vcmask 261120  }
 0x1e8   : > { %3689 = vmatprep.mubr.msk.bf16.mxu1 %vm4225_vm1, %v4224_v35  ;;  %702 = vmatprep.subr.bf16.mxu0 %v3875_v32  ;;  %v3880_v37 = vld [vmem:[%s4447_s11 + $0x18] ss:$12 sps:$4 sm:$0xff]   ;;  %v3881_v38 = vld [vmem:[%s4447_s11 + $0x34] ss:$12 sps:$4 sm:$0xff]   ;;  %v3883_v39 = vld [vmem:[%s4447_s11 + $0x30] ss:$12 sps:$4 sm:$0xff]  }
 0x1e9   : > { %703 = vmatpush1.bf16.msra.mxu0 %v3877_v33  ;;  %v3884_v40 = vld [vmem:[%s4447_s11 + $0x4c] ss:$12 sps:$4 sm:$0xff]   ;;  %v3886_v41 = vld [vmem:[%s4447_s11 + $0x48] ss:$12 sps:$4 sm:$0xff]   ;;  %v3887_v43 = vld [vmem:[%s4447_s11 + $0x64] ss:$12 sps:$4 sm:$0xff]  }
 0x1ea   : > { %704 = vmatprep.subr.bf16.mxu0 %v3878_v36  ;;  %v3899_v42 = vld [vmem:[%s4447_s11 + $0x8] ss:$12 sps:$4 sm:$0xff]   ;;  %v3900_v44 = vld [vmem:[%s4447_s11 + $0x20] ss:$12 sps:$4 sm:$0xff]   ;;  %v3901_v47 = vld [vmem:[%s4447_s11 + $0x38] ss:$12 sps:$4 sm:$0xff]  }
 0x1eb   : > { %3674 = vmatpush3.bf16.msra.mxu1 %v3899_v42  ;;  %v3889_v45 = vld [vmem:[%s4447_s11 + $0x60] ss:$12 sps:$4 sm:$0xff]   ;;  %v3890_v46 = vld [vmem:[%s4447_s11 + $0x7c] ss:$12 sps:$4 sm:$0xff]   ;;  %v3892_v48 = vld [vmem:[%s4447_s11 + $0x78] ss:$12 sps:$4 sm:$0xff]  }
 0x1ec   : > { %3675 = vmatprep.subr.bf16.mxu1 %v4224_v35  ;;  %v3893_v49 = vld [vmem:[%s4447_s11 + $0x94] ss:$12 sps:$4 sm:$0xff]   ;;  %v3902_v50 = vld [vmem:[%s4447_s11 + $0x50] ss:$12 sps:$4 sm:$0xff]   ;;  %v3896_v52 = vld [vmem:[%s4447_s11 + $0xac] ss:$12 sps:$4 sm:$0xff]  }
 0x1ed   : > { %705 = vmatpush1.bf16.msra.mxu0 %v3880_v37  ;;  %v3895_v51 = vld [vmem:[%s4447_s11 + $0x90] ss:$12 sps:$4 sm:$0xff]   ;;  %v3903_v53 = vld [vmem:[%s4447_s11 + $0x68] ss:$12 sps:$4 sm:$0xff]   ;;  %v3904_v56 = vld [vmem:[%s4447_s11 + $0x80] ss:$12 sps:$4 sm:$0xff]  }
 0x1ee   : > { %706 = vmatprep.subr.bf16.mxu0 %v3881_v38  ;;  %v3898_v54 = vld [vmem:[%s4447_s11 + $0xa8] ss:$12 sps:$4 sm:$0xff]   ;;  %v4648_v55 = vld [vmem:[#allocation2] sm:$0xff]  ;;  %v4664_v61 = vshrl.u32 %v783_v60, 7  ;;  %v799_v16 = vand.u32 127, %v783_v60  ;;  %vm881_vm4 = vcmask 64512  }
 0x1ef   : > { %3676 = vmatpush3.bf16.msra.mxu1 %v3900_v44  ;;  %v541_v57 = vpack.c.bf16 %v4648_v55, %v4648_v55  ;;  %v3905_v58 = vld [vmem:[%s4447_s11 + $0x98] ss:$12 sps:$4 sm:$0xff]   ;;  %v3906_v59 = vld [vmem:[%s4447_s11 + $0xb0] ss:$12 sps:$4 sm:$0xff]   ;;  %s4226_s11 = smov 96   ;;  %s4229_s19 = smov 32  }
 0x1f0   : > { %3677 = vmatprep.subr.bf16.mxu1 %v4224_v35  ;;  %v4667_v62 = vsub.s32 1, %v4664_v61  ;;  %v4670_v63 = vld [vmem:[%s4462_s13] sm:$0xff]  ;;  %v4673_v0 = vsub.s32 0, %v4664_v61  ;;  %v4682_v8 = vsub.s32 2, %v4664_v61  ;;  %vm800_vm3 = vcmp.lt.s32.totalorder %v799_v16, 3  ;;  %s4228_s13 = smov 64  }
 0x1f1   : > { %707 = vmatpush1.bf16.msra.mxu0 %v3883_v39  ;;  %v4227_v18 = vmov -1e+30   ;;  %vm1139_vm5 = vcmask 523520   ;;  %vm1312_vm6 = vcmask 785920   ;;  %vm1485_vm7 = vcmask 1048320   ;;  %s3407_s20 = sshll.u32 %s5142_s27, 9 }
 0x1f2   : > { %708 = vmatprep.subr.bf16.mxu0 %v3884_v40  ;;  %v791_v1 = vrot.slane %v4670_v63, %v4667_v62  ;;  %v786_v3 = vrot.slane %v4670_v63, %v4673_v0  ;;  %v796_v10 = vrot.slane %v4670_v63, %v4682_v8  ;;  %v4703_v19 = vsel %vm800_vm3, 0.0, %v4227_v18  ;;  %s4796_s15 = scalar_lea.vmem [#allocation4], %s3407_s20  ;;  %s1623_s10 = scalar_lea.sflag [#allocation6], %s5142_s27 }
 0x1f3   : > { %3678 = vmatpush3.bf16.msra.mxu1 %v3901_v47 }
 0x1f4   : > { %3679 = vmatprep.subr.bf16.mxu1 %v4224_v35 }
 0x1f5   : > { %709 = vmatpush1.bf16.msra.mxu0 %v3886_v41 }
 0x1f6   : > { %710 = vmatprep.subr.bf16.mxu0 %v3887_v43 }
 0x1f7   : > { %3680 = vmatpush3.bf16.msra.mxu1 %v3902_v50 }
 0x1f8   : > { %3681 = vmatprep.subr.bf16.mxu1 %v4224_v35 }
 0x1f9   : > { %711 = vmatpush1.bf16.msra.mxu0 %v3889_v45 }
 0x1fa   : > { %712 = vmatprep.subr.bf16.mxu0 %v3890_v46 }
 0x1fb   : > { %3682 = vmatpush3.bf16.msra.mxu1 %v3903_v53 }
 0x1fc   : > { %3683 = vmatprep.subr.bf16.mxu1 %v4224_v35 }
 0x1fd   : > { %713 = vmatpush1.bf16.msra.mxu0 %v3892_v48 }
 0x1fe   : > { %714 = vmatprep.subr.bf16.mxu0 %v3893_v49 }
 0x1ff   : > { %3684 = vmatpush3.bf16.msra.mxu1 %v3904_v56 }
 0x200   : > { %3685 = vmatprep.subr.bf16.mxu1 %v4224_v35 }
 0x201   : > { %715 = vmatpush1.bf16.msra.mxu0 %v3895_v51 }
 0x202   : > { %716 = vmatprep.subr.bf16.mxu0 %v3896_v52 }
 0x203   : > { %3686 = vmatpush3.bf16.msra.mxu1 %v3905_v58 }
 0x204   : > { %3687 = vmatprep.subr.bf16.mxu1 %v4224_v35 }
 0x205   : > { %717 = vmatpush1.bf16.msra.mxu0 %v3898_v54 }
 0x206   : > { %3733 = vmatprep.subr.bf16.mxu0 %v4224_v35 }
 0x207   : > { %3688 = vmatpush3.bf16.msra.mxu1 %v3906_v59 }
 0x208   : > { %735 = vmatmul.mubr.bf16.vlgmr.msra.gmra.mrb[0].mxu0 %v541_v57  ;;  %3693 = vmatprep.subr.mxu1 %v4224_v35 }
 0x209   : > { %3749 = vmatprep.mubr.msk.bf16.mxu0 %vm4225_vm1, %v4224_v35 }
 0x20a   : > { %3690 = vmatmul.mubr.bf16.vlgmr.msra.gmra.mrb[0].mxu1 %v541_v57 }
 0x20b   : > { %3695 = vmatprep.mubr.msk.f32.mxu1 %vm4225_vm1, %v4224_v35 }
 0x2db   : > { %v736_v2 = vpop.f32.mrb[0].mxu0 }
 0x2dc   : > { %v738_v4 = vpop.f32.mrb[1].mxu0  ;;  %v4688_v9 = vadd.f32 %v786_v3, %v736_v2 }
 0x2dd   : > { %v4679_v5 = vadd.f32 %v791_v1, %v738_v4  ;;  %v740_v6 = vpop.f32.mrb[2].mxu0  ;;  %v777_v11 = vpop.f32.mrb[0].mxu1 }
 0x2de   : > { %v741_v7 = vpop.f32.mrb[3].mxu0  ;;  %v4699_v12 = vadd.f32 %v796_v10, %v777_v11  ;;  %v3691_v13 = vpop.f32.mrb[1].mxu1 }
 0x2df   : > { %969 = vrot.lane.b32.xlu1 %v4679_v5, %s4226_s11  ;;  %3694 = vmatpush3.xpose.msk.msra.mxu1 %vm802_vm2, %v4679_v5  ;;  %v780_v14 = vpop.f32.mrb[2].mxu1 }
 0x2e0   : > { %3698 = vmatprep.subr.mxu1 %v4224_v35  ;;  %v3692_v15 = vpop.f32.mrb[3].mxu1 }
 0x2e2   : > { %3696 = vmatmul.mubr.msk.f32.vlgmr.msra.gmra.mrb[4].mxu1 %vm802_vm2, %v4688_v9 }
 0x2e3   : > { %967 = vrot.lane.b32.xlu1 %v4688_v9, %s4226_s11  ;;  %3700 = vmatprep.mubr.msk.f32.mxu1 %vm4225_vm1, %v4224_v35 }
 0x2e4   : > { %3699 = vmatpush3.msra.mxu1 %v4699_v12 }
 0x2e5   : > { %3703 = vmatprep.subr.mxu1 %v4224_v35 }
 0x351   : > { %v970_v32 = vpop.permute.xlu1 %969 }
 0x355   : > { %v968_v36 = vpop.permute.xlu1 %967 }
 0x3b5   : > { %v875_v17 = vpop.f32.mrb[4].mxu1 }
 0x3b6   : > { %v879_v20 = vmul.f32 0.17677669, %v875_v17  ;;  %v3697_v21 = vpop.f32.mrb[5].mxu1 }
 0x3b8   : > { %v880_v22 = vadd.f32 %v879_v20, %v4703_v19 }
 0x3ba   : > { %v882_v23 = vsel %vm881_vm4, %v880_v22, -inf }
 0x3bb   : > { %883 = vmax.xlane.f32.xlu0 %v882_v23 }
 0x448   : > { %v884_v24 = vpop.xlane.xlu0 %883 }
 0x449   : > { %v885_v25 = vsub.f32 %v880_v22, %v884_v24 }
 0x44b   : > { %v886_v26 = vmul.f32 1.442695, %v885_v25 }
 0x44d   : > { %3915 = vpow2.f32 %v886_v26 }
 0x457   : > { %v3916_v27 = vpop.eup %3915 }
 0x458   : > { %v888_v28 = vsel %vm881_vm4, %v3916_v27, 0.0 }
 0x459   : > { %889 = vadd.xlane.f32.xlu0 %v888_v28 }
 0x4e6   : > { %v890_v29 = vpop.xlane.xlu0 %889 }
 0x4e7   : > { %3917 = vrcp.f32 %v890_v29 }
 0x4f1   : > { %v3918_v30 = vpop.eup %3917 }
 0x4f2   : > { %v892_v33 = vmul.f32 %v3918_v30, %v3916_v27 }
 0x4f4   : > { %3701 = vmatmul.mubr.msk.f32.vlgmr.msra.gmra.mrb[6].mxu1 %vm881_vm4, %v892_v33 }
 0x4f5   : > { %3704 = vmatpush3.xpose.msk.msra.mxu1 %vm802_vm2, %v970_v32  ;;  %3705 = vmatprep.mubr.msk.f32.mxu1 %vm4225_vm1, %v4224_v35 }
 0x4f6   : > { %3708 = vmatprep.subr.mxu1 %v4224_v35 }
 0x4f8   : > { %3706 = vmatmul.mubr.msk.f32.vlgmr.msra.gmra.mrb[8].mxu1 %vm802_vm2, %v968_v36  ;;  %v3907_v36 = vld [vmem:[%s4609_s14] sm:$0xff]  }
 0x4f9   : > { %3710 = vmatprep.mubr.msk.f32.mxu1 %vm4225_vm1, %v4224_v35  ;;  %3734 = vmatpush3.bf16.msra.mxu0 %v3907_v36 }
 0x4fa   : > { %3735 = vmatprep.subr.bf16.mxu0 %v4224_v35 }
 0x5c7   : > { %v962_v37 = vpop.f32.mrb[6].mxu1 }
 0x5c8   : > { %966 = vst.msk [vmem:[#allocation3] sm:$0xff] %vm802_vm2, %v962_v37  ;;  %v3702_v38 = vpop.f32.mrb[7].mxu1  ;;  %v3908_v37 = vld [vmem:[%s4609_s14 + $0x8] sm:$0xff]  }
 0x5c9   : > { %3736 = vmatpush3.bf16.msra.mxu0 %v3908_v37  ;;  %v3909_v38 = vld [vmem:[%s4609_s14 + $0x10] sm:$0xff]  }
 0x5ca   : > { %3737 = vmatprep.subr.bf16.mxu0 %v4224_v35 }
 0x5cb   : > { %v1041_v39 = vpop.f32.mrb[8].mxu1 }
 0x5cc   : > { %v1045_v40 = vmul.f32 0.17677669, %v1041_v39  ;;  %v3707_v41 = vpop.f32.mrb[9].mxu1  ;;  %v3910_v39 = vld [vmem:[%s4609_s14 + $0x18] sm:$0xff]  }
 0x5cd   : > { %3738 = vmatpush3.bf16.msra.mxu0 %v3909_v38  ;;  %v3912_v41 = vld [vmem:[%s4609_s14 + $0x28] sm:$0xff]  }
 0x5ce   : > { %v1046_v42 = vadd.f32 %v1045_v40, %v4703_v19  ;;  %3739 = vmatprep.subr.bf16.mxu0 %v4224_v35  ;;  %v3911_v40 = vld [vmem:[%s4609_s14 + $0x20] sm:$0xff]  }
 0x5d0   : > { %v1047_v43 = vsel %vm881_vm4, %v1046_v42, -inf }
 0x5d1   : > { %1048 = vmax.xlane.f32.xlu0 %v1047_v43  ;;  %3740 = vmatpush3.bf16.msra.mxu0 %v3910_v39  ;;  %v3914_v43 = vld [vmem:[%s4609_s14 + $0x38] sm:$0xff]  }
 0x5d2   : > { %3741 = vmatprep.subr.bf16.mxu0 %v4224_v35 }
 0x5d5   : > { %3742 = vmatpush3.bf16.msra.mxu0 %v3911_v40 }
 0x5d6   : > { %3743 = vmatprep.subr.bf16.mxu0 %v4224_v35 }
 0x5d9   : > { %3744 = vmatpush3.bf16.msra.mxu0 %v3912_v41 }
 0x5da   : > { %3745 = vmatprep.subr.bf16.mxu0 %v4224_v35 }
 0x5e7   : > { %1059 = vrot.lane.b32.xlu0 %v4699_v12, %s4226_s11 }
 0x5eb   : > { %1143 = vrot.lane.b32.xlu0 %v4679_v5, %s4228_s13 }
 0x5ef   : > { %1141 = vrot.lane.b32.xlu0 %v4688_v9, %s4228_s13 }
 0x65e   : > { %v1049_v44 = vpop.xlane.xlu0 %1048 }
 0x65f   : > { %v1050_v45 = vsub.f32 %v1046_v42, %v1049_v44  ;;  %v3913_v42 = vld [vmem:[%s4609_s14 + $0x30] sm:$0xff]  }
 0x660   : > { %3746 = vmatpush3.bf16.msra.mxu0 %v3913_v42 }
 0x661   : > { %v1051_v46 = vmul.f32 1.442695, %v1050_v45  ;;  %3747 = vmatprep.subr.bf16.mxu0 %v4224_v35 }
 0x662   : > { %v1060_v47 = vpop.permute.xlu0 %1059 }
 0x663   : > { %3919 = vpow2.f32 %v1051_v46  ;;  %3709 = vmatpush3.msra.mxu1 %v1060_v47 }
 0x664   : > { %3713 = vmatprep.subr.mxu1 %v4224_v35  ;;  %3748 = vmatpush3.bf16.msra.mxu0 %v3914_v43 }
 0x666   : > { %v1144_v52 = vpop.permute.xlu0 %1143 }
 0x66a   : > { %v1142_v54 = vpop.permute.xlu0 %1141 }
 0x66d   : > { %v3920_v48 = vpop.eup %3919 }
 0x66e   : > { %v1053_v49 = vsel %vm881_vm4, %v3920_v48, 0.0 }
 0x66f   : > { %1054 = vadd.xlane.f32.xlu1 %v1053_v49  ;;  %v4778_v49 = vsub.s32 3, %v4664_v61 }
 0x680   : > { %1232 = vrot.lane.b32.xlu1 %v4699_v12, %s4228_s13 }
 0x684   : > { %1316 = vrot.lane.b32.xlu1 %v4679_v5, %s4229_s19 }
 0x6fc   : > { %v1055_v50 = vpop.xlane.xlu1 %1054 }
 0x6fd   : > { %3921 = vrcp.f32 %v1055_v50  ;;  %v1508_v50 = vrot.slane %v4670_v63, %v4778_v49 }
 0x700   : > { %v1233_v56 = vpop.permute.xlu1 %1232 }
 0x704   : > { %v1317_v11 = vpop.permute.xlu1 %1316 }
 0x707   : > { %v3922_v51 = vpop.eup %3921 }
 0x708   : > { %v1057_v53 = vmul.f32 %v3922_v51, %v3920_v48 }
 0x70a   : > { %3711 = vmatmul.mubr.msk.f32.vlgmr.msra.gmra.mrb[10].mxu1 %vm881_vm4, %v1057_v53 }
 0x70b   : > { %3714 = vmatpush3.xpose.msk.msra.mxu1 %vm802_vm2, %v1144_v52  ;;  %3715 = vmatprep.mubr.msk.f32.mxu1 %vm4225_vm1, %v4224_v35 }
 0x70c   : > { %3718 = vmatprep.subr.mxu1 %v4224_v35 }
 0x70e   : > { %3716 = vmatmul.mubr.msk.f32.vlgmr.msra.gmra.mrb[12].mxu1 %vm802_vm2, %v1142_v54 }
 0x70f   : > { %3719 = vmatpush3.msra.mxu1 %v1233_v56  ;;  %3720 = vmatprep.mubr.msk.f32.mxu1 %vm4225_vm1, %v4224_v35 }
 0x710   : > { %3723 = vmatprep.subr.mxu1 %v4224_v35 }
 0x7dd   : > { %v1131_v57 = vpop.f32.mrb[10].mxu1 }
 0x7de   : > { %v3712_v58 = vpop.f32.mrb[11].mxu1 }
 0x7e1   : > { %v1215_v59 = vpop.f32.mrb[12].mxu1 }
 0x7e2   : > { %v1219_v60 = vmul.f32 0.17677669, %v1215_v59  ;;  %v3717_v1 = vpop.f32.mrb[13].mxu1 }
 0x7e4   : > { %v1220_v2 = vadd.f32 %v1219_v60, %v4703_v19 }
 0x7e6   : > { %v1221_v3 = vsel %vm881_vm4, %v1220_v2, -inf }
 0x7e7   : > { %1222 = vmax.xlane.f32.xlu0 %v1221_v3 }
 0x874   : > { %v1223_v4 = vpop.xlane.xlu0 %1222 }
 0x875   : > { %v1224_v5 = vsub.f32 %v1220_v2, %v1223_v4  ;;  %v4785_v4 = vsub.s32 4, %v4664_v61 }
 0x877   : > { %v1225_v6 = vmul.f32 1.442695, %v1224_v5  ;;  %v4788_v5 = vsub.s32 5, %v4664_v61 }
 0x879   : > { %3923 = vpow2.f32 %v1225_v6 }
 0x883   : > { %v3924_v7 = vpop.eup %3923 }
 0x884   : > { %v1227_v10 = vsel %vm881_vm4, %v3924_v7, 0.0 }
 0x885   : > { %1228 = vadd.xlane.f32.xlu1 %v1227_v10 }
 0x896   : > { %1314 = vrot.lane.b32.xlu1 %v4688_v9, %s4229_s19 }
 0x912   : > { %v1229_v13 = vpop.xlane.xlu1 %1228 }
 0x913   : > { %3925 = vrcp.f32 %v1229_v13 }
 0x916   : > { %v1315_v16 = vpop.permute.xlu1 %1314 }
 0x91d   : > { %v3926_v14 = vpop.eup %3925 }
 0x91e   : > { %v1231_v15 = vmul.f32 %v3926_v14, %v3924_v7  ;;  %v1618_v7 = vrot.slane %v4670_v63, %v4788_v5 }
 0x920   : > { %3721 = vmatmul.mubr.msk.f32.vlgmr.msra.gmra.mrb[14].mxu1 %vm881_vm4, %v1231_v15 }
 0x921   : > { %3724 = vmatpush3.xpose.msk.msra.mxu1 %vm802_vm2, %v1317_v11  ;;  %3725 = vmatprep.mubr.msk.f32.mxu1 %vm4225_vm1, %v4224_v35 }
 0x922   : > { %3728 = vmatprep.subr.mxu1 %v4224_v35 }
 0x924   : > { %3726 = vmatmul.mubr.msk.f32.vlgmr.msra.gmra.mrb[16].mxu1 %vm802_vm2, %v1315_v16 }
 0x925   : > { %3730 = vmatprep.mubr.msk.f32.mxu1 %vm4225_vm1, %v4224_v35 }
 0x9f3   : > { %v1304_v9 = vpop.f32.mrb[14].mxu1 }
 0x9f4   : > { %v3722_v17 = vpop.f32.mrb[15].mxu1 }
 0x9f7   : > { %v1388_v18 = vpop.f32.mrb[16].mxu1 }
 0x9f8   : > { %v1392_v20 = vmul.f32 0.17677669, %v1388_v18  ;;  %v3727_v21 = vpop.f32.mrb[17].mxu1 }
 0x9fa   : > { %v1393_v22 = vadd.f32 %v1392_v20, %v4703_v19 }
 0x9fc   : > { %v1394_v23 = vsel %vm881_vm4, %v1393_v22, -inf }
 0x9fd   : > { %1395 = vmax.xlane.f32.xlu0 %v1394_v23 }
 0xa13   : > { %1405 = vrot.lane.b32.xlu0 %v4699_v12, %s4229_s19 }
 0xa17   : > { %1136 = vrot.lane.b32.xlu0 %v1131_v57, %s4229_s19 }
 0xa1b   : > { %1309 = vrot.lane.b32.xlu0 %v1304_v9, %s4228_s13 }
 0xa8a   : > { %v1396_v24 = vpop.xlane.xlu0 %1395 }
 0xa8b   : > { %v1397_v25 = vsub.f32 %v1393_v22, %v1396_v24 }
 0xa8d   : > { %v1398_v26 = vmul.f32 1.442695, %v1397_v25 }
 0xa8e   : > { %v1406_v27 = vpop.permute.xlu0 %1405 }
 0xa8f   : > { %3927 = vpow2.f32 %v1398_v26  ;;  %3729 = vmatpush3.msra.mxu1 %v1406_v27 }
 0xa92   : > { %v1137_v19 = vpop.permute.xlu0 %1136 }
 0xa93   : > { %1140 = vst.msk [vmem:[#allocation3] sm:$0xff] %vm1139_vm5, %v1137_v19 }
 0xa96   : > { %v1310_v28 = vpop.permute.xlu0 %1309 }
 0xa97   : > { %1313 = vst.msk [vmem:[#allocation3] sm:$0xff] %vm1312_vm6, %v1310_v28 }
 0xa99   : > { %v3928_v12 = vpop.eup %3927 }
 0xa9a   : > { %v1400_v29 = vsel %vm881_vm4, %v3928_v12, 0.0 }
 0xa9b   : > { %1401 = vadd.xlane.f32.xlu1 %v1400_v29 }
 0xb28   : > { %v1402_v30 = vpop.xlane.xlu1 %1401 }
 0xb29   : > { %3929 = vrcp.f32 %v1402_v30 }
 0xb33   : > { %v3930_v32 = vpop.eup %3929 }
 0xb34   : > { %v1404_v33 = vmul.f32 %v3930_v32, %v3928_v12 }
 0xb36   : > { %3731 = vmatmul.mubr.msk.f32.vlgmr.msra.gmra.mrb[18].mxu1 %vm881_vm4, %v1404_v33 }
 0xc09   : > { %v1477_v44 = vpop.f32.mrb[18].mxu1 }
 0xc0a   : > { %1482 = vrot.lane.b32.xlu0 %v1477_v44, %s4226_s11  ;;  %v3732_v45 = vpop.f32.mrb[19].mxu1 }
 0xc7c   : > { %v1483_v46 = vpop.permute.xlu0 %1482 }
 0xc7d   : > { %1486 = vst.msk [vmem:[#allocation3] sm:$0xff] %vm1485_vm7, %v1483_v46 }
 0xc84   : > { %v1487_v47 = vld [vmem:[#allocation3] sm:$0xff] }
 0xc85   : > { %v1488_v48 = vpack.c.bf16 %v1487_v47, %v1487_v47 }
 0xc87   : > { %3750 = vmatmul.mubr.bf16.vlgmr.msra.gmra.mrb[4].mxu0 %v1488_v48 }
 0xd5a   : > { %v1591_v51 = vpop.f32.mrb[4].mxu0 }
 0xd5b   : > { %v1592_v35 = vadd.f32 %v1591_v51, %v1508_v50  ;;  %v3751_v52 = vpop.f32.mrb[5].mxu0 }
 0xd5c   : > { %v1594_v53 = vpop.f32.mrb[6].mxu0 }
 0xd5d   : > { %v3752_v54 = vpop.f32.mrb[7].mxu0  ;;  %v1597_v56 = vadd.f32 %v1592_v35, %v4648_v55  ;;  %v1613_v55 = vrot.slane %v4670_v63, %v4785_v4 }
 0xd5f   : > { %1598 = vadd.xlane.f32.xlu1 %v1597_v56 }
 0xdec   : > { %v1599_v57 = vpop.xlane.xlu1 %1598 }
 0xded   : > { %v1601_v58 = vmul.f32 0.0078125, %v1599_v57 }
 0xdef   : > { %v1602_v59 = vsub.f32 %v1597_v56, %v1601_v58 }
 0xdf1   : > { %v1603_v60 = vmul.f32 %v1602_v59, %v1602_v59 }
 0xdf3   : > { %1604 = vadd.xlane.f32.xlu0 %v1603_v60 }
 0xe80   : > { %v1605_v1 = vpop.xlane.xlu0 %1604 }
 0xe81   : > { %v1606_v2 = vmul.f32 0.0078125, %v1605_v1 }
 0xe83   : > { %v1607_v3 = vadd.f32 1e-05, %v1606_v2 }
 0xe85   : > { %3931 = vrsqrt.f32 %v1607_v3 }
 0xe8f   : > { %v3932_v6 = vpop.eup %3931 }
 0xe90   : > { %v1609_v10 = vmul.f32 %v3932_v6, %v1602_v59 }
 0xe92   : > { %v1614_v11 = vmul.f32 %v1613_v55, %v1609_v10 }
 0xe94   : > { %v4794_v13 = vadd.f32 %v1618_v7, %v1614_v11 }
 0xe95   : > { %4185 = dma.done.wait %s1623_s10, 8192 }
 0xe96   : > { %4186 = vsyncadd %s1623_s10, 4294959104  ;;  %s3261_s25 = scalar_lea.sflag %s1623_s10, 2 [#allocation6]  ;;  %s4799_s22 = scalar_lea.vmem [#allocation5], %s3407_s20 }
 0xe97   : > { %4187 = dma.done.wait %s3261_s25, 8192 }
 0xe98   : > { %4188 = vsyncadd %s3261_s25, 4294959104  ;;  %1865 = vmatprep.mubr.bf16.mxu1 %v4223_v34  ;;  %1906 = vmatprep.mubr.bf16.mxu0 %v4223_v34  ;;  %v1642_v14 = vld [vmem:[%s4796_s15 + $0x8] sm:$0xff]  ;;  %v1644_v15 = vld [vmem:[%s4796_s15 + $0x18] sm:$0xff]  ;;  %p3391_p11 = scmp.ne.s32.totalorder %s4358_s26, 1 }
 0xe99   : > { %v1641_v16 = vld [vmem:[%s4796_s15] sm:$0xff]  ;;  %v1706_v9 = vunpack.c.l.s8.bf16 %v1642_v14  ;;  %v1722_v17 = vunpack.c.h.s8.bf16 %v1642_v14  ;;  %v1708_v18 = vunpack.c.l.s8.bf16 %v1644_v15  ;;  %v1724_v20 = vunpack.c.h.s8.bf16 %v1644_v15  ;;  %v1643_v21 = vld [vmem:[%s4796_s15 + $0x10] sm:$0xff]  ;;  %v1658_v24 = vld [vmem:[%s4796_s15 + $0x88] sm:$0xff] }
 0xe9a   : > { %v1705_v22 = vunpack.c.l.s8.bf16 %v1641_v16  ;;  %v1707_v23 = vunpack.c.l.s8.bf16 %v1643_v21  ;;  %v1660_v25 = vld [vmem:[%s4796_s15 + $0x98] sm:$0xff]  ;;  %v1721_v26 = vunpack.c.h.s8.bf16 %v1641_v16  ;;  %v1723_v27 = vunpack.c.h.s8.bf16 %v1643_v21  ;;  %v1657_v12 = vld [vmem:[%s4796_s15 + $0x80] sm:$0xff]  ;;  %v1659_v29 = vld [vmem:[%s4796_s15 + $0x90] sm:$0xff] }
 0xe9b   : > { %1833 = vmatprep.subr.bf16.mxu1 %v1706_v9  ;;  %1874 = vmatprep.subr.bf16.mxu0 %v1708_v18  ;;  %v1738_v19 = vunpack.c.l.s8.bf16 %v1658_v24  ;;  %v1740_v28 = vunpack.c.l.s8.bf16 %v1660_v25  ;;  %v1737_v30 = vunpack.c.l.s8.bf16 %v1657_v12  ;;  %v1739_v32 = vunpack.c.l.s8.bf16 %v1659_v29  ;;  %v1674_v37 = vld [vmem:[%s4796_s15 + $0x108] sm:$0xff]  ;;  %v1676_v38 = vld [vmem:[%s4796_s15 + $0x118] sm:$0xff]  ;;  %v1673_v43 = vld [vmem:[%s4796_s15 + $0x100] sm:$0xff] }
 0xe9c   : > { %1834 = vmatpush1.bf16.msra.mxu1 %v1705_v22  ;;  %1875 = vmatpush1.bf16.msra.mxu0 %v1707_v23  ;;  %v1754_v33 = vunpack.c.h.s8.bf16 %v1658_v24  ;;  %v1756_v36 = vunpack.c.h.s8.bf16 %v1660_v25  ;;  %v1753_v39 = vunpack.c.h.s8.bf16 %v1657_v12  ;;  %v1755_v40 = vunpack.c.h.s8.bf16 %v1659_v29  ;;  %v1675_v44 = vld [vmem:[%s4796_s15 + $0x110] sm:$0xff]  ;;  %v1690_v50 = vld [vmem:[%s4796_s15 + $0x188] sm:$0xff]  ;;  %v1692_v51 = vld [vmem:[%s4796_s15 + $0x198] sm:$0xff] }
 0xe9d   : > { %1835 = vmatprep.subr.bf16.mxu1 %v1722_v17  ;;  %1876 = vmatprep.subr.bf16.mxu0 %v1724_v20  ;;  %v1770_v41 = vunpack.c.l.s8.bf16 %v1674_v37  ;;  %v1772_v42 = vunpack.c.l.s8.bf16 %v1676_v38  ;;  %v1769_v45 = vunpack.c.l.s8.bf16 %v1673_v43  ;;  %v1771_v46 = vunpack.c.l.s8.bf16 %v1675_v44  ;;  %v1689_v56 = vld [vmem:[%s4796_s15 + $0x180] sm:$0xff]  ;;  %v1691_v57 = vld [vmem:[%s4796_s15 + $0x190] sm:$0xff]  ;;  %v1646_v2 = vld [vmem:[%s4796_s15 + $0x28] sm:$0xff] }
 0xe9e   : > { %v1786_v47 = vunpack.c.h.s8.bf16 %v1674_v37  ;;  %v1788_v48 = vunpack.c.h.s8.bf16 %v1676_v38  ;;  %v1785_v35 = vunpack.c.h.s8.bf16 %v1673_v43  ;;  %v1787_v52 = vunpack.c.h.s8.bf16 %v1675_v44  ;;  %v1648_v3 = vld [vmem:[%s4796_s15 + $0x38] sm:$0xff]  ;;  %v1645_v11 = vld [vmem:[%s4796_s15 + $0x20] sm:$0xff]  ;;  %v1647_v14 = vld [vmem:[%s4796_s15 + $0x30] sm:$0xff] }
 0xe9f   : > { %v1802_v53 = vunpack.c.l.s8.bf16 %v1690_v50  ;;  %v1804_v54 = vunpack.c.l.s8.bf16 %v1692_v51  ;;  %v1801_v58 = vunpack.c.l.s8.bf16 %v1689_v56  ;;  %v1803_v59 = vunpack.c.l.s8.bf16 %v1691_v57  ;;  %v1662_v20 = vld [vmem:[%s4796_s15 + $0xa8] sm:$0xff]  ;;  %v1664_v21 = vld [vmem:[%s4796_s15 + $0xb8] sm:$0xff] }
 0xea0   : > { %1836 = vmatpush1.bf16.msra.mxu1 %v1721_v26  ;;  %1877 = vmatpush1.bf16.msra.mxu0 %v1723_v27  ;;  %v1818_v60 = vunpack.c.h.s8.bf16 %v1690_v50  ;;  %v1820_v1 = vunpack.c.h.s8.bf16 %v1692_v51  ;;  %v1817_v55 = vunpack.c.h.s8.bf16 %v1689_v56  ;;  %v1819_v6 = vunpack.c.h.s8.bf16 %v1691_v57  ;;  %v1661_v26 = vld [vmem:[%s4796_s15 + $0xa0] sm:$0xff]  ;;  %v1663_v27 = vld [vmem:[%s4796_s15 + $0xb0] sm:$0xff] }
 0xea1   : > { %1837 = vmatprep.subr.bf16.mxu1 %v1738_v19  ;;  %1878 = vmatprep.subr.bf16.mxu0 %v1740_v28  ;;  %v1710_v7 = vunpack.c.l.s8.bf16 %v1646_v2  ;;  %v1712_v10 = vunpack.c.l.s8.bf16 %v1648_v3  ;;  %v4825_v15 = vpack.c.bf16 %v4794_v13, %v4794_v13  ;;  %v1709_v16 = vunpack.c.l.s8.bf16 %v1645_v11 }
 0xea2   : > { %v1711_v9 = vunpack.c.l.s8.bf16 %v1647_v14  ;;  %v1726_v17 = vunpack.c.h.s8.bf16 %v1646_v2  ;;  %v1728_v18 = vunpack.c.h.s8.bf16 %v1648_v3  ;;  %v1725_v22 = vunpack.c.h.s8.bf16 %v1645_v11 }
 0xea3   : > { %v1727_v23 = vunpack.c.h.s8.bf16 %v1647_v14  ;;  %v1742_v24 = vunpack.c.l.s8.bf16 %v1662_v20  ;;  %v1744_v25 = vunpack.c.l.s8.bf16 %v1664_v21  ;;  %v1741_v19 = vunpack.c.l.s8.bf16 %v1661_v26 }
 0xea4   : > { %1838 = vmatpush1.bf16.msra.mxu1 %v1737_v30  ;;  %1879 = vmatpush1.bf16.msra.mxu0 %v1739_v32  ;;  %v1743_v28 = vunpack.c.l.s8.bf16 %v1663_v27  ;;  %v1758_v12 = vunpack.c.h.s8.bf16 %v1662_v20  ;;  %v1760_v29 = vunpack.c.h.s8.bf16 %v1664_v21  ;;  %v1678_v30 = vld [vmem:[%s4796_s15 + $0x128] sm:$0xff]  ;;  %v1680_v32 = vld [vmem:[%s4796_s15 + $0x138] sm:$0xff]  ;;  %vm4231_vm8 = vmmov (!%p3391_p11), 0  }
 0xea5   : > { %1839 = vmatprep.subr.bf16.mxu1 %v1754_v33  ;;  %1880 = vmatprep.subr.bf16.mxu0 %v1756_v36  ;;  %v1757_v33 = vunpack.c.h.s8.bf16 %v1661_v26  ;;  %v1759_v36 = vunpack.c.h.s8.bf16 %v1663_v27  ;;  %v1774_v37 = vunpack.c.l.s8.bf16 %v1678_v30  ;;  %v1776_v38 = vunpack.c.l.s8.bf16 %v1680_v32 }
 0xea6   : > { %v1790_v43 = vunpack.c.h.s8.bf16 %v1678_v30  ;;  %v1792_v44 = vunpack.c.h.s8.bf16 %v1680_v32  ;;  %vm3141_vm9 = vcmask (!%p3391_p11), 57344  }
 0xea8   : > { %1840 = vmatpush1.bf16.msra.mxu1 %v1753_v39  ;;  %1881 = vmatpush1.bf16.msra.mxu0 %v1755_v40  ;;  %v1677_v39 = vld [vmem:[%s4796_s15 + $0x120] sm:$0xff]  ;;  %v1679_v40 = vld [vmem:[%s4796_s15 + $0x130] sm:$0xff] }
 0xea9   : > { %1841 = vmatprep.subr.bf16.mxu1 %v1770_v41  ;;  %1882 = vmatprep.subr.bf16.mxu0 %v1772_v42  ;;  %v1773_v41 = vunpack.c.l.s8.bf16 %v1677_v39  ;;  %v1775_v42 = vunpack.c.l.s8.bf16 %v1679_v40 }
 0xeac   : > { %1842 = vmatpush1.bf16.msra.mxu1 %v1769_v45  ;;  %1883 = vmatpush1.bf16.msra.mxu0 %v1771_v46  ;;  %v1694_v45 = vld [vmem:[%s4796_s15 + $0x1a8] sm:$0xff]  ;;  %v1696_v46 = vld [vmem:[%s4796_s15 + $0x1b8] sm:$0xff] }
 0xead   : > { %1843 = vmatprep.subr.bf16.mxu1 %v1786_v47  ;;  %1884 = vmatprep.subr.bf16.mxu0 %v1788_v48  ;;  %v1789_v47 = vunpack.c.h.s8.bf16 %v1677_v39  ;;  %v1791_v48 = vunpack.c.h.s8.bf16 %v1679_v40  ;;  %v1806_v50 = vunpack.c.l.s8.bf16 %v1694_v45  ;;  %v1808_v51 = vunpack.c.l.s8.bf16 %v1696_v46 }
 0xeae   : > { %v1822_v56 = vunpack.c.h.s8.bf16 %v1694_v45  ;;  %v1824_v57 = vunpack.c.h.s8.bf16 %v1696_v46 }
 0xeb0   : > { %1844 = vmatpush1.bf16.msra.mxu1 %v1785_v35  ;;  %1885 = vmatpush1.bf16.msra.mxu0 %v1787_v52  ;;  %v1693_v35 = vld [vmem:[%s4796_s15 + $0x1a0] sm:$0xff]  ;;  %v1695_v52 = vld [vmem:[%s4796_s15 + $0x1b0] sm:$0xff] }
 0xeb1   : > { %1845 = vmatprep.subr.bf16.mxu1 %v1802_v53  ;;  %1886 = vmatprep.subr.bf16.mxu0 %v1804_v54  ;;  %v1805_v53 = vunpack.c.l.s8.bf16 %v1693_v35  ;;  %v1807_v54 = vunpack.c.l.s8.bf16 %v1695_v52 }
 0xeb4   : > { %1846 = vmatpush1.bf16.msra.mxu1 %v1801_v58  ;;  %1887 = vmatpush1.bf16.msra.mxu0 %v1803_v59  ;;  %v1650_v58 = vld [vmem:[%s4796_s15 + $0x48] sm:$0xff]  ;;  %v1652_v59 = vld [vmem:[%s4796_s15 + $0x58] sm:$0xff] }
 0xeb5   : > { %1847 = vmatprep.subr.bf16.mxu1 %v1818_v60  ;;  %1888 = vmatprep.subr.bf16.mxu0 %v1820_v1  ;;  %v1821_v60 = vunpack.c.h.s8.bf16 %v1693_v35  ;;  %v1823_v1 = vunpack.c.h.s8.bf16 %v1695_v52  ;;  %v1714_v2 = vunpack.c.l.s8.bf16 %v1650_v58  ;;  %v1716_v3 = vunpack.c.l.s8.bf16 %v1652_v59 }
 0xeb6   : > { %v1730_v11 = vunpack.c.h.s8.bf16 %v1650_v58  ;;  %v1732_v14 = vunpack.c.h.s8.bf16 %v1652_v59 }
 0xeb8   : > { %1848 = vmatpush1.bf16.msra.mxu1 %v1817_v55  ;;  %1889 = vmatpush1.bf16.msra.mxu0 %v1819_v6  ;;  %v1649_v55 = vld [vmem:[%s4796_s15 + $0x40] sm:$0xff]  ;;  %v1651_v6 = vld [vmem:[%s4796_s15 + $0x50] sm:$0xff] }
 0xeb9   : > { %1915 = vmatprep.subr.bf16.mxu1 %v1710_v7  ;;  %1956 = vmatprep.subr.bf16.mxu0 %v1712_v10  ;;  %v1713_v7 = vunpack.c.l.s8.bf16 %v1649_v55  ;;  %v1715_v10 = vunpack.c.l.s8.bf16 %v1651_v6 }
 0xebb   : > { %1866 = vmatmul.mubr.bf16.vlgmr.msra.gmra.mrb[20].mxu1 %v4825_v15  ;;  %1907 = vmatmul.mubr.bf16.vlgmr.msra.gmra.mrb[8].mxu0 %v4825_v15 }
 0xebc   : > { %1916 = vmatpush1.bf16.msra.mxu1 %v1709_v16  ;;  %1957 = vmatpush1.bf16.msra.mxu0 %v1711_v9  ;;  %v1666_v16 = vld [vmem:[%s4796_s15 + $0xc8] sm:$0xff]  ;;  %v1668_v9 = vld [vmem:[%s4796_s15 + $0xd8] sm:$0xff] }
 0xebd   : > { %1917 = vmatprep.subr.bf16.mxu1 %v1726_v17  ;;  %1958 = vmatprep.subr.bf16.mxu0 %v1728_v18  ;;  %v1729_v17 = vunpack.c.h.s8.bf16 %v1649_v55  ;;  %v1731_v18 = vunpack.c.h.s8.bf16 %v1651_v6  ;;  %v1746_v20 = vunpack.c.l.s8.bf16 %v1666_v16  ;;  %v1748_v21 = vunpack.c.l.s8.bf16 %v1668_v9 }
 0xebe   : > { %1947 = vmatprep.mubr.bf16.mxu1 %v4223_v34  ;;  %1988 = vmatprep.mubr.bf16.mxu0 %v4223_v34  ;;  %v1762_v26 = vunpack.c.h.s8.bf16 %v1666_v16  ;;  %v1764_v27 = vunpack.c.h.s8.bf16 %v1668_v9 }
 0xec0   : > { %1918 = vmatpush1.bf16.msra.mxu1 %v1725_v22  ;;  %1959 = vmatpush1.bf16.msra.mxu0 %v1727_v23  ;;  %v1665_v22 = vld [vmem:[%s4796_s15 + $0xc0] sm:$0xff]  ;;  %v1667_v23 = vld [vmem:[%s4796_s15 + $0xd0] sm:$0xff] }
 0xec1   : > { %1919 = vmatprep.subr.bf16.mxu1 %v1742_v24  ;;  %1960 = vmatprep.subr.bf16.mxu0 %v1744_v25  ;;  %v1745_v24 = vunpack.c.l.s8.bf16 %v1665_v22  ;;  %v1747_v25 = vunpack.c.l.s8.bf16 %v1667_v23 }
 0xec4   : > { %1920 = vmatpush1.bf16.msra.mxu1 %v1741_v19  ;;  %1961 = vmatpush1.bf16.msra.mxu0 %v1743_v28  ;;  %v1682_v19 = vld [vmem:[%s4796_s15 + $0x148] sm:$0xff]  ;;  %v1684_v28 = vld [vmem:[%s4796_s15 + $0x158] sm:$0xff] }
 0xec5   : > { %1921 = vmatprep.subr.bf16.mxu1 %v1758_v12  ;;  %1962 = vmatprep.subr.bf16.mxu0 %v1760_v29  ;;  %v1761_v12 = vunpack.c.h.s8.bf16 %v1665_v22  ;;  %v1763_v29 = vunpack.c.h.s8.bf16 %v1667_v23  ;;  %v1778_v30 = vunpack.c.l.s8.bf16 %v1682_v19  ;;  %v1780_v32 = vunpack.c.l.s8.bf16 %v1684_v28 }
 0xec6   : > { %v1794_v39 = vunpack.c.h.s8.bf16 %v1682_v19  ;;  %v1796_v40 = vunpack.c.h.s8.bf16 %v1684_v28  ;;  %v1685_v28 = vld [vmem:[%s4796_s15 + $0x160] sm:$0xff] }
 0xec8   : > { %1922 = vmatpush1.bf16.msra.mxu1 %v1757_v33  ;;  %1963 = vmatpush1.bf16.msra.mxu0 %v1759_v36  ;;  %v1681_v33 = vld [vmem:[%s4796_s15 + $0x140] sm:$0xff]  ;;  %v1683_v36 = vld [vmem:[%s4796_s15 + $0x150] sm:$0xff] }
 0xec9   : > { %1923 = vmatprep.subr.bf16.mxu1 %v1774_v37  ;;  %1964 = vmatprep.subr.bf16.mxu0 %v1776_v38  ;;  %v1777_v37 = vunpack.c.l.s8.bf16 %v1681_v33  ;;  %v1779_v38 = vunpack.c.l.s8.bf16 %v1683_v36 }
 0xecc   : > { %1924 = vmatpush1.bf16.msra.mxu1 %v1773_v41  ;;  %1965 = vmatpush1.bf16.msra.mxu0 %v1775_v42  ;;  %v1698_v41 = vld [vmem:[%s4796_s15 + $0x1c8] sm:$0xff]  ;;  %v1700_v42 = vld [vmem:[%s4796_s15 + $0x1d8] sm:$0xff] }
 0xecd   : > { %1925 = vmatprep.subr.bf16.mxu1 %v1790_v43  ;;  %1966 = vmatprep.subr.bf16.mxu0 %v1792_v44  ;;  %v1793_v43 = vunpack.c.h.s8.bf16 %v1681_v33  ;;  %v1795_v44 = vunpack.c.h.s8.bf16 %v1683_v36  ;;  %v1810_v45 = vunpack.c.l.s8.bf16 %v1698_v41  ;;  %v1812_v46 = vunpack.c.l.s8.bf16 %v1700_v42  ;;  %v1702_v36 = vld [vmem:[%s4796_s15 + $0x1e8] sm:$0xff] }
 0xece   : > { %v1826_v35 = vunpack.c.h.s8.bf16 %v1698_v41  ;;  %v1828_v52 = vunpack.c.h.s8.bf16 %v1700_v42  ;;  %v1701_v42 = vld [vmem:[%s4796_s15 + $0x1e0] sm:$0xff] }
 0xed0   : > { %1926 = vmatpush1.bf16.msra.mxu1 %v1789_v47  ;;  %1967 = vmatpush1.bf16.msra.mxu0 %v1791_v48  ;;  %v1697_v47 = vld [vmem:[%s4796_s15 + $0x1c0] sm:$0xff]  ;;  %v1699_v48 = vld [vmem:[%s4796_s15 + $0x1d0] sm:$0xff] }
 0xed1   : > { %1927 = vmatprep.subr.bf16.mxu1 %v1806_v50  ;;  %1968 = vmatprep.subr.bf16.mxu0 %v1808_v51  ;;  %v1809_v50 = vunpack.c.l.s8.bf16 %v1697_v47  ;;  %v1811_v51 = vunpack.c.l.s8.bf16 %v1699_v48 }
 0xed4   : > { %1928 = vmatpush1.bf16.msra.mxu1 %v1805_v53  ;;  %1969 = vmatpush1.bf16.msra.mxu0 %v1807_v54  ;;  %v1654_v53 = vld [vmem:[%s4796_s15 + $0x68] sm:$0xff]  ;;  %v1656_v54 = vld [vmem:[%s4796_s15 + $0x78] sm:$0xff] }
 0xed5   : > { %1929 = vmatprep.subr.bf16.mxu1 %v1822_v56  ;;  %1970 = vmatprep.subr.bf16.mxu0 %v1824_v57  ;;  %v1825_v56 = vunpack.c.h.s8.bf16 %v1697_v47  ;;  %v1827_v57 = vunpack.c.h.s8.bf16 %v1699_v48  ;;  %v1718_v58 = vunpack.c.l.s8.bf16 %v1654_v53  ;;  %v1720_v59 = vunpack.c.l.s8.bf16 %v1656_v54  ;;  %v2521_v48 = vld [vmem:[%s4799_s22 + $0x20] sm:$0xff] }
 0xed6   : > { %v1734_v55 = vunpack.c.h.s8.bf16 %v1654_v53  ;;  %v1736_v6 = vunpack.c.h.s8.bf16 %v1656_v54  ;;  %v2517_v54 = vld [vmem:[%s4799_s22] sm:$0xff] }
 0xed8   : > { %1930 = vmatpush1.bf16.msra.mxu1 %v1821_v60  ;;  %1971 = vmatpush1.bf16.msra.mxu0 %v1823_v1  ;;  %v1653_v60 = vld [vmem:[%s4796_s15 + $0x60] sm:$0xff]  ;;  %v1655_v1 = vld [vmem:[%s4796_s15 + $0x70] sm:$0xff] }
 0xed9   : > { %1997 = vmatprep.subr.bf16.mxu1 %v1714_v2  ;;  %2038 = vmatprep.subr.bf16.mxu0 %v1716_v3  ;;  %v1717_v2 = vunpack.c.l.s8.bf16 %v1653_v60  ;;  %v1719_v3 = vunpack.c.l.s8.bf16 %v1655_v1 }
 0xedb   : > { %1948 = vmatmul.mubr.bf16.vlgmr.msra.gmra.mrb[24].mxu1 %v4825_v15  ;;  %1989 = vmatmul.mubr.bf16.vlgmr.msra.gmra.mrb[12].mxu0 %v4825_v15 }
 0xedc   : > { %1998 = vmatpush1.bf16.msra.mxu1 %v1713_v7  ;;  %2039 = vmatpush1.bf16.msra.mxu0 %v1715_v10  ;;  %v1670_v7 = vld [vmem:[%s4796_s15 + $0xe8] sm:$0xff]  ;;  %v1672_v10 = vld [vmem:[%s4796_s15 + $0xf8] sm:$0xff] }
 0xedd   : > { %1999 = vmatprep.subr.bf16.mxu1 %v1730_v11  ;;  %2040 = vmatprep.subr.bf16.mxu0 %v1732_v14  ;;  %v1733_v11 = vunpack.c.h.s8.bf16 %v1653_v60  ;;  %v1735_v14 = vunpack.c.h.s8.bf16 %v1655_v1  ;;  %v1750_v16 = vunpack.c.l.s8.bf16 %v1670_v7  ;;  %v1752_v9 = vunpack.c.l.s8.bf16 %v1672_v10  ;;  %v2522_v1 = vld [vmem:[%s4799_s22 + $0x28] sm:$0xff] }
 0xede   : > { %2029 = vmatprep.mubr.bf16.mxu1 %v4223_v34  ;;  %2070 = vmatprep.mubr.bf16.mxu0 %v4223_v34  ;;  %v1766_v22 = vunpack.c.h.s8.bf16 %v1670_v7  ;;  %v1768_v23 = vunpack.c.h.s8.bf16 %v1672_v10  ;;  %v2518_v10 = vld [vmem:[%s4799_s22 + $0x8] sm:$0xff] }
 0xee0   : > { %2000 = vmatpush1.bf16.msra.mxu1 %v1729_v17  ;;  %2041 = vmatpush1.bf16.msra.mxu0 %v1731_v18  ;;  %v1669_v17 = vld [vmem:[%s4796_s15 + $0xe0] sm:$0xff]  ;;  %v1671_v18 = vld [vmem:[%s4796_s15 + $0xf0] sm:$0xff] }
 0xee1   : > { %2001 = vmatprep.subr.bf16.mxu1 %v1746_v20  ;;  %2042 = vmatprep.subr.bf16.mxu0 %v1748_v21  ;;  %v1749_v20 = vunpack.c.l.s8.bf16 %v1669_v17  ;;  %v1751_v21 = vunpack.c.l.s8.bf16 %v1671_v18 }
 0xee4   : > { %2002 = vmatpush1.bf16.msra.mxu1 %v1745_v24  ;;  %2043 = vmatpush1.bf16.msra.mxu0 %v1747_v25  ;;  %v1686_v24 = vld [vmem:[%s4796_s15 + $0x168] sm:$0xff]  ;;  %v1688_v25 = vld [vmem:[%s4796_s15 + $0x178] sm:$0xff] }
 0xee5   : > { %2003 = vmatprep.subr.bf16.mxu1 %v1762_v26  ;;  %2044 = vmatprep.subr.bf16.mxu0 %v1764_v27  ;;  %v1765_v26 = vunpack.c.h.s8.bf16 %v1669_v17  ;;  %v1767_v27 = vunpack.c.h.s8.bf16 %v1671_v18  ;;  %v1784_v19 = vunpack.c.l.s8.bf16 %v1688_v25  ;;  %v1800_v33 = vunpack.c.h.s8.bf16 %v1688_v25  ;;  %v2523_v17 = vld [vmem:[%s4799_s22 + $0x30] sm:$0xff] }
 0xee6   : > { %v2531_v18 = vld [vmem:[%s4799_s22 + $0x70] sm:$0xff] }
 0xee7   : > { %v2527_v25 = vld [vmem:[%s4799_s22 + $0x50] sm:$0xff] }
 0xee8   : > { %2004 = vmatpush1.bf16.msra.mxu1 %v1761_v12  ;;  %2045 = vmatpush1.bf16.msra.mxu0 %v1763_v29  ;;  %v1687_v12 = vld [vmem:[%s4796_s15 + $0x170] sm:$0xff]  ;;  %v1781_v29 = vunpack.c.l.s8.bf16 %v1685_v28 }
 0xee9   : > { %2005 = vmatprep.subr.bf16.mxu1 %v1778_v30  ;;  %2046 = vmatprep.subr.bf16.mxu0 %v1780_v32  ;;  %v1783_v30 = vunpack.c.l.s8.bf16 %v1687_v12  ;;  %v1798_v32 = vunpack.c.h.s8.bf16 %v1686_v24 }
 0xeec   : > { %2006 = vmatpush1.bf16.msra.mxu1 %v1777_v37  ;;  %2047 = vmatpush1.bf16.msra.mxu0 %v1779_v38  ;;  %v1704_v37 = vld [vmem:[%s4796_s15 + $0x1f8] sm:$0xff]  ;;  %v1797_v38 = vunpack.c.h.s8.bf16 %v1685_v28 }
 0xeed   : > { %2007 = vmatprep.subr.bf16.mxu1 %v1794_v39  ;;  %2048 = vmatprep.subr.bf16.mxu0 %v1796_v40  ;;  %v1799_v39 = vunpack.c.h.s8.bf16 %v1687_v12  ;;  %v1814_v40 = vunpack.c.l.s8.bf16 %v1702_v36  ;;  %v1816_v41 = vunpack.c.l.s8.bf16 %v1704_v37  ;;  %v1832_v47 = vunpack.c.h.s8.bf16 %v1704_v37  ;;  %v2524_v28 = vld [vmem:[%s4799_s22 + $0x38] sm:$0xff] }
 0xeee   : > { %v2532_v12 = vld [vmem:[%s4799_s22 + $0x78] sm:$0xff] }
 0xeef   : > { %v2528_v37 = vld [vmem:[%s4799_s22 + $0x58] sm:$0xff] }
 0xef0   : > { %2008 = vmatpush1.bf16.msra.mxu1 %v1793_v43  ;;  %2049 = vmatpush1.bf16.msra.mxu0 %v1795_v44  ;;  %v1703_v43 = vld [vmem:[%s4796_s15 + $0x1f0] sm:$0xff]  ;;  %v1813_v44 = vunpack.c.l.s8.bf16 %v1701_v42 }
 0xef1   : > { %2009 = vmatprep.subr.bf16.mxu1 %v1810_v45  ;;  %2050 = vmatprep.subr.bf16.mxu0 %v1812_v46  ;;  %v1815_v45 = vunpack.c.l.s8.bf16 %v1703_v43  ;;  %v1830_v46 = vunpack.c.h.s8.bf16 %v1702_v36  ;;  %v2520_v36 = vld [vmem:[%s4799_s22 + $0x18] sm:$0xff] }
 0xef4   : > { %2010 = vmatpush1.bf16.msra.mxu1 %v1809_v50  ;;  %2051 = vmatpush1.bf16.msra.mxu0 %v1811_v51  ;;  %v2529_v50 = vld [vmem:[%s4799_s22 + $0x60] sm:$0xff]  ;;  %v1829_v51 = vunpack.c.h.s8.bf16 %v1701_v42 }
 0xef5   : > { %2011 = vmatprep.subr.bf16.mxu1 %v1826_v35  ;;  %2052 = vmatprep.subr.bf16.mxu0 %v1828_v52  ;;  %v1831_v35 = vunpack.c.h.s8.bf16 %v1703_v43  ;;  %v2589_v52 = vunpack.c.l.s8.bf16 %v2521_v48  ;;  %v2605_v53 = vunpack.c.l.s8.bf16 %v2529_v50  ;;  %v2606_v60 = vunpack.c.h.s8.bf16 %v2529_v50  ;;  %v4902_v42 = vld [vmem:[%s4799_s22 + $0xa0] sm:$0xff] }
 0xef6   : > { %v4905_v43 = vld [vmem:[%s4799_s22 + $0xe0] sm:$0xff]  ;;  %v4911_v50 = vsub.s32 7, %v4664_v61 }
 0xef8   : > { %2012 = vmatpush1.bf16.msra.mxu1 %v1825_v56  ;;  %2053 = vmatpush1.bf16.msra.mxu0 %v1827_v57  ;;  %v2525_v56 = vld [vmem:[%s4799_s22 + $0x40] sm:$0xff]  ;;  %v2581_v57 = vunpack.c.l.s8.bf16 %v2517_v54 }
 0xef9   : > { %2079 = vmatprep.subr.bf16.mxu1 %v1718_v58  ;;  %2120 = vmatprep.subr.bf16.mxu0 %v1720_v59  ;;  %v2597_v58 = vunpack.c.l.s8.bf16 %v2525_v56  ;;  %v2590_v59 = vunpack.c.h.s8.bf16 %v2521_v48  ;;  %v1636_v48 = vld [vmem:[%s4467_s4] sm:$0xff] }
 0xefb   : > { %2030 = vmatmul.mubr.bf16.vlgmr.msra.gmra.mrb[28].mxu1 %v4825_v15  ;;  %2071 = vmatmul.mubr.bf16.vlgmr.msra.gmra.mrb[16].mxu0 %v4825_v15 }
 0xefc   : > { %2080 = vmatpush1.bf16.msra.mxu1 %v1717_v2  ;;  %2121 = vmatpush1.bf16.msra.mxu0 %v1719_v3  ;;  %v2530_v2 = vld [vmem:[%s4799_s22 + $0x68] sm:$0xff]  ;;  %v2582_v3 = vunpack.c.h.s8.bf16 %v2517_v54  ;;  %v2180_v54 = vrot.slane %v1636_v48, %v4911_v50 }
 0xefd   : > { %2081 = vmatprep.subr.bf16.mxu1 %v1734_v55  ;;  %2122 = vmatprep.subr.bf16.mxu0 %v1736_v6  ;;  %v2598_v55 = vunpack.c.h.s8.bf16 %v2525_v56  ;;  %v2591_v6 = vunpack.c.l.s8.bf16 %v2522_v1  ;;  %v2607_v7 = vunpack.c.l.s8.bf16 %v2530_v2  ;;  %v2328_v56 = vrot.slane %v1636_v48, %v4673_v0 }
 0xefe   : > { %2111 = vmatprep.mubr.bf16.mxu1 %v4223_v34  ;;  %2152 = vmatprep.mubr.bf16.mxu0 %v4223_v34  ;;  %v1782_v34 = vunpack.c.l.s8.bf16 %v1686_v24  ;;  %v2519_v24 = vld [vmem:[%s4799_s22 + $0x10] sm:$0xff] }
 0xf00   : > { %2082 = vmatpush1.bf16.msra.mxu1 %v1733_v11  ;;  %2123 = vmatpush1.bf16.msra.mxu0 %v1735_v14  ;;  %v2526_v11 = vld [vmem:[%s4799_s22 + $0x48] sm:$0xff]  ;;  %v2583_v14 = vunpack.c.l.s8.bf16 %v2518_v10 }
 0xf01   : > { %2083 = vmatprep.subr.bf16.mxu1 %v1750_v16  ;;  %2124 = vmatprep.subr.bf16.mxu0 %v1752_v9  ;;  %v2599_v16 = vunpack.c.l.s8.bf16 %v2526_v11  ;;  %v2608_v9 = vunpack.c.h.s8.bf16 %v2530_v2  ;;  %v2260_v2 = vrot.slane %v2180_v54, %v4667_v62 }
 0xf04   : > { %2084 = vmatpush1.bf16.msra.mxu1 %v1749_v20  ;;  %2125 = vmatpush1.bf16.msra.mxu0 %v1751_v21  ;;  %v2584_v20 = vunpack.c.h.s8.bf16 %v2518_v10  ;;  %v2600_v21 = vunpack.c.h.s8.bf16 %v2526_v11 }
 0xf05   : > { %2085 = vmatprep.subr.bf16.mxu1 %v1766_v22  ;;  %2126 = vmatprep.subr.bf16.mxu0 %v1768_v23  ;;  %v2593_v22 = vunpack.c.l.s8.bf16 %v2523_v17  ;;  %v2609_v23 = vunpack.c.l.s8.bf16 %v2531_v18 }
 0xf08   : > { %2086 = vmatpush1.bf16.msra.mxu1 %v1765_v26  ;;  %2127 = vmatpush1.bf16.msra.mxu0 %v1767_v27  ;;  %v2585_v26 = vunpack.c.l.s8.bf16 %v2519_v24  ;;  %v2601_v27 = vunpack.c.l.s8.bf16 %v2527_v25 }
 0xf09   : > { %2087 = vmatprep.subr.bf16.mxu1 %v1782_v34  ;;  %2128 = vmatprep.subr.bf16.mxu0 %v1784_v19  ;;  %v2594_v34 = vunpack.c.h.s8.bf16 %v2523_v17  ;;  %v2610_v19 = vunpack.c.h.s8.bf16 %v2531_v18 }
 0xf0c   : > { %2088 = vmatpush1.bf16.msra.mxu1 %v1781_v29  ;;  %2129 = vmatpush1.bf16.msra.mxu0 %v1783_v30  ;;  %v2586_v29 = vunpack.c.h.s8.bf16 %v2519_v24  ;;  %v2602_v30 = vunpack.c.h.s8.bf16 %v2527_v25 }
 0xf0d   : > { %2089 = vmatprep.subr.bf16.mxu1 %v1798_v32  ;;  %2130 = vmatprep.subr.bf16.mxu0 %v1800_v33  ;;  %v2595_v32 = vunpack.c.l.s8.bf16 %v2524_v28  ;;  %v2611_v33 = vunpack.c.l.s8.bf16 %v2532_v12 }
 0xf10   : > { %2090 = vmatpush1.bf16.msra.mxu1 %v1797_v38  ;;  %2131 = vmatpush1.bf16.msra.mxu0 %v1799_v39  ;;  %v2587_v38 = vunpack.c.l.s8.bf16 %v2520_v36  ;;  %v2603_v39 = vunpack.c.l.s8.bf16 %v2528_v37 }
 0xf11   : > { %2091 = vmatprep.subr.bf16.mxu1 %v1814_v40  ;;  %2132 = vmatprep.subr.bf16.mxu0 %v1816_v41  ;;  %v2596_v40 = vunpack.c.h.s8.bf16 %v2524_v28  ;;  %v2612_v41 = vunpack.c.h.s8.bf16 %v2532_v12  ;;  %v2533_v28 = vld [vmem:[%s4799_s22 + $0x80] sm:$0xff] }
 0xf12   : > { %v2541_v12 = vld [vmem:[%s4799_s22 + $0xc0] sm:$0xff] }
 0xf14   : > { %2092 = vmatpush1.bf16.msra.mxu1 %v1813_v44  ;;  %2133 = vmatpush1.bf16.msra.mxu0 %v1815_v45  ;;  %v2588_v44 = vunpack.c.h.s8.bf16 %v2520_v36  ;;  %v2604_v45 = vunpack.c.h.s8.bf16 %v2528_v37 }
 0xf15   : > { %2093 = vmatprep.subr.bf16.mxu1 %v1830_v46  ;;  %2134 = vmatprep.subr.bf16.mxu0 %v1832_v47  ;;  %v2621_v46 = vunpack.c.l.s8.bf16 %v4902_v42  ;;  %v2637_v47 = vunpack.c.l.s8.bf16 %v4905_v43 }
 0xf18   : > { %2094 = vmatpush1.bf16.msra.mxu1 %v1829_v51  ;;  %2135 = vmatpush1.bf16.msra.mxu0 %v1831_v35  ;;  %v4914_v51 = vsub.s32 6, %v4664_v61  ;;  %v2168_v35 = vrot.slane %v1636_v48, %v4667_v62 }
 0xf19   : > { %3460 = vmatprep.subr.bf16.mxu1 %v2589_v52  ;;  %3482 = vmatprep.subr.bf16.mxu0 %v2605_v53  ;;  %v2176_v52 = vrot.slane %v1636_v48, %v4788_v5  ;;  %v2172_v53 = vrot.slane %v1636_v48, %v4778_v49 }
 0xf1b   : > { %2112 = vmatmul.mubr.bf16.vlgmr.msra.gmra.mrb[32].mxu1 %v4825_v15  ;;  %2153 = vmatmul.mubr.bf16.vlgmr.msra.gmra.mrb[20].mxu0 %v4825_v15  ;;  %v2592_v15 = vunpack.c.h.s8.bf16 %v2522_v1  ;;  %v2256_v61 = vrot.slane %v2176_v52, %v4667_v62  ;;  %v2252_v1 = vrot.slane %v2172_v53, %v4667_v62  ;;  %v2542_v52 = vld [vmem:[%s4799_s22 + $0xc8] sm:$0xff] }
 0xf1c   : > { %3461 = vmatpush3.bf16.msra.mxu1 %v2581_v57  ;;  %3483 = vmatpush3.bf16.msra.mxu0 %v2597_v58  ;;  %v2336_v57 = vrot.slane %v1636_v48, %v4785_v4  ;;  %v2332_v58 = vrot.slane %v1636_v48, %v4682_v8  ;;  %v2631_v53 = vunpack.c.l.s8.bf16 %v2542_v52 }
 0xf1d   : > { %3462 = vmatprep.subr.bf16.mxu1 %v2590_v59  ;;  %3484 = vmatprep.subr.bf16.mxu0 %v2606_v60  ;;  %v2340_v59 = vrot.slane %v1636_v48, %v4914_v51  ;;  %v2248_v60 = vrot.slane %v2168_v35, %v4667_v62  ;;  %v2534_v35 = vld [vmem:[%s4799_s22 + $0x88] sm:$0xff] }
 0xf1e   : > { %v2412_v10 = vrot.slane %v2332_v58, %v4673_v0  ;;  %v2547_v58 = vld [vmem:[%s4799_s22 + $0xf0] sm:$0xff] }
 0xf1f   : > { %v2420_v11 = vrot.slane %v2340_v59, %v4673_v0  ;;  %v2616_v59 = vunpack.c.h.s8.bf16 %v2534_v35 }
 0xf20   : > { %3463 = vmatpush3.bf16.msra.mxu1 %v2582_v3  ;;  %3485 = vmatpush3.bf16.msra.mxu0 %v2598_v55  ;;  %v2408_v3 = vrot.slane %v2328_v56, %v4673_v0  ;;  %v2416_v55 = vrot.slane %v2336_v57, %v4673_v0  ;;  %v2539_v57 = vld [vmem:[%s4799_s22 + $0xb0] sm:$0xff] }
 0xf21   : > { %3464 = vmatprep.subr.bf16.mxu1 %v2591_v6  ;;  %3486 = vmatprep.subr.bf16.mxu0 %v2607_v7 }
 0xf24   : > { %3465 = vmatpush3.bf16.msra.mxu1 %v2583_v14  ;;  %3487 = vmatpush3.bf16.msra.mxu0 %v2599_v16 }
 0xf25   : > { %3466 = vmatprep.subr.bf16.mxu1 %v2592_v15  ;;  %3488 = vmatprep.subr.bf16.mxu0 %v2608_v9 }
 0xf28   : > { %3467 = vmatpush3.bf16.msra.mxu1 %v2584_v20  ;;  %3489 = vmatpush3.bf16.msra.mxu0 %v2600_v21 }
 0xf29   : > { %3468 = vmatprep.subr.bf16.mxu1 %v2593_v22  ;;  %3490 = vmatprep.subr.bf16.mxu0 %v2609_v23 }
 0xf2c   : > { %3469 = vmatpush3.bf16.msra.mxu1 %v2585_v26  ;;  %3491 = vmatpush3.bf16.msra.mxu0 %v2601_v27 }
 0xf2d   : > { %3470 = vmatprep.subr.bf16.mxu1 %v2594_v34  ;;  %3492 = vmatprep.subr.bf16.mxu0 %v2610_v19 }
 0xf30   : > { %3471 = vmatpush3.bf16.msra.mxu1 %v2586_v29  ;;  %3493 = vmatpush3.bf16.msra.mxu0 %v2602_v30 }
 0xf31   : > { %3472 = vmatprep.subr.bf16.mxu1 %v2595_v32  ;;  %3494 = vmatprep.subr.bf16.mxu0 %v2611_v33 }
 0xf34   : > { %3473 = vmatpush3.bf16.msra.mxu1 %v2587_v38  ;;  %3495 = vmatpush3.bf16.msra.mxu0 %v2603_v39  ;;  %v2613_v38 = vunpack.c.l.s8.bf16 %v2533_v28  ;;  %v2629_v39 = vunpack.c.l.s8.bf16 %v2541_v12 }
 0xf35   : > { %3474 = vmatprep.subr.bf16.mxu1 %v2596_v40  ;;  %3496 = vmatprep.subr.bf16.mxu0 %v2612_v41  ;;  %v2622_v40 = vunpack.c.h.s8.bf16 %v4902_v42  ;;  %v2638_v41 = vunpack.c.h.s8.bf16 %v4905_v43  ;;  %v2615_v43 = vunpack.c.l.s8.bf16 %v2534_v35 }
 0xf38   : > { %3475 = vmatpush3.bf16.msra.mxu1 %v2588_v44  ;;  %3497 = vmatpush3.bf16.msra.mxu0 %v2604_v45  ;;  %v2538_v44 = vld [vmem:[%s4799_s22 + $0xa8] sm:$0xff] }
 0xf39   : > { %3504 = vmatprep.subr.bf16.mxu1 %v2621_v46  ;;  %3526 = vmatprep.subr.bf16.mxu0 %v2637_v47  ;;  %v2546_v45 = vld [vmem:[%s4799_s22 + $0xe8] sm:$0xff]  ;;  %v2614_v46 = vunpack.c.h.s8.bf16 %v2533_v28  ;;  %v2630_v47 = vunpack.c.h.s8.bf16 %v2541_v12  ;;  %v2623_v48 = vunpack.c.l.s8.bf16 %v2538_v44  ;;  %v2624_v54 = vunpack.c.h.s8.bf16 %v2538_v44  ;;  %v2536_v28 = vld [vmem:[%s4799_s22 + $0x98] sm:$0xff] }
 0xf3a   : > { %v2639_v42 = vunpack.c.l.s8.bf16 %v2546_v45  ;;  %v2640_v56 = vunpack.c.h.s8.bf16 %v2546_v45  ;;  %v2544_v12 = vld [vmem:[%s4799_s22 + $0xd8] sm:$0xff] }
 0xf8e   : > { %v1867_v6 = vpop.f32.mrb[20].mxu1  ;;  %v1908_v7 = vpop.f32.mrb[8].mxu0 }
 0xf8f   : > { %v2309_v14 = vmul.f32 %v2248_v60, %v1867_v6  ;;  %v2311_v16 = vmul.f32 %v2256_v61, %v1908_v7  ;;  %v1869_v15 = vpop.f32.mrb[21].mxu1  ;;  %v1910_v9 = vpop.f32.mrb[9].mxu0  ;;  %v2632_v60 = vunpack.c.h.s8.bf16 %v2542_v52  ;;  %v2625_v61 = vunpack.c.l.s8.bf16 %v2539_v57 }
 0xf90   : > { %v2310_v17 = vmul.f32 %v2252_v1, %v1869_v15  ;;  %v2312_v18 = vmul.f32 %v2260_v2, %v1910_v9  ;;  %v1871_v20 = vpop.f32.mrb[22].mxu1  ;;  %v1912_v21 = vpop.f32.mrb[10].mxu0  ;;  %v2641_v1 = vunpack.c.l.s8.bf16 %v2547_v58  ;;  %v2535_v2 = vld [vmem:[%s4799_s22 + $0x90] sm:$0xff] }
 0xf91   : > { %v2469_v22 = vadd.f32 %v2408_v3, %v2309_v14  ;;  %v2471_v23 = vadd.f32 %v2416_v55, %v2311_v16  ;;  %v1872_v24 = vpop.f32.mrb[23].mxu1  ;;  %v1913_v25 = vpop.f32.mrb[11].mxu0  ;;  %v2543_v3 = vld [vmem:[%s4799_s22 + $0xd0] sm:$0xff]  ;;  %v1637_v55 = vld [vmem:[%s4467_s4 + $0x8] sm:$0xff]  ;;  %v2617_v6 = vunpack.c.l.s8.bf16 %v2535_v2 }
 0xf92   : > { %v2470_v26 = vadd.f32 %v2412_v10, %v2310_v17  ;;  %v2472_v27 = vadd.f32 %v2420_v11, %v2312_v18  ;;  %v2633_v7 = vunpack.c.l.s8.bf16 %v2543_v3  ;;  %v2626_v10 = vunpack.c.h.s8.bf16 %v2539_v57  ;;  %v2540_v17 = vld [vmem:[%s4799_s22 + $0xb8] sm:$0xff] }
 0xf93   : > { %v2485_v34 = vmax.f32 %v2469_v22, 0.0  ;;  %v2487_v19 = vmax.f32 %v2471_v23, 0.0  ;;  %v2642_v11 = vunpack.c.h.s8.bf16 %v2547_v58  ;;  %v2184_v14 = vrot.slane %v1637_v55, %v4667_v62  ;;  %v2548_v18 = vld [vmem:[%s4799_s22 + $0xf8] sm:$0xff] }
 0xf94   : > { %v2486_v29 = vmax.f32 %v2470_v26, 0.0  ;;  %v2488_v30 = vmax.f32 %v2472_v27, 0.0  ;;  %v2192_v16 = vrot.slane %v1637_v55, %v4788_v5  ;;  %v2188_v15 = vrot.slane %v1637_v55, %v4778_v49 }
 0xf95   : > { %v2501_v32 = vpack.c.bf16 %v2485_v34, %v2485_v34  ;;  %v2503_v33 = vpack.c.bf16 %v2487_v19, %v2487_v19  ;;  %v2196_v9 = vrot.slane %v1637_v55, %v4911_v50  ;;  %v2344_v20 = vrot.slane %v1637_v55, %v4673_v0 }
 0xf96   : > { %v2502_v36 = vpack.c.bf16 %v2486_v29, %v2486_v29  ;;  %v2504_v37 = vpack.c.bf16 %v2488_v30, %v2488_v30  ;;  %v2352_v21 = vrot.slane %v1637_v55, %v4785_v4  ;;  %v2618_v22 = vunpack.c.h.s8.bf16 %v2535_v2 }
 0xf97   : > { %v2634_v23 = vunpack.c.h.s8.bf16 %v2543_v3  ;;  %v2348_v24 = vrot.slane %v1637_v55, %v4682_v8  ;;  %v2356_v25 = vrot.slane %v1637_v55, %v4914_v51  ;;  %v2264_v26 = vrot.slane %v2184_v14, %v4667_v62  ;;  %v2557_v14 = vld [vmem:[%s4799_s22 + $0x140] sm:$0xff] }
 0xf98   : > { %2741 = vmatprep.mubr.bf16.mxu1 %v2502_v36  ;;  %2781 = vmatprep.mubr.bf16.mxu0 %v2504_v37  ;;  %v2272_v27 = vrot.slane %v2192_v16, %v4667_v62  ;;  %v2627_v34 = vunpack.c.l.s8.bf16 %v2540_v17  ;;  %v2643_v19 = vunpack.c.l.s8.bf16 %v2548_v18  ;;  %v2268_v29 = vrot.slane %v2188_v15, %v4667_v62 }
 0xf99   : > { %2742 = vmatmul.mubr.bf16.vlgmr.msra.gmra.mrb[36].mxu1 %v2501_v32  ;;  %2782 = vmatmul.mubr.bf16.vlgmr.msra.gmra.mrb[24].mxu0 %v2503_v33  ;;  %v2276_v30 = vrot.slane %v2196_v9, %v4667_v62  ;;  %v2424_v32 = vrot.slane %v2344_v20, %v4673_v0  ;;  %v2432_v33 = vrot.slane %v2352_v21, %v4673_v0  ;;  %v2620_v2 = vunpack.c.h.s8.bf16 %v2536_v28 }
 0xf9a   : > { %3505 = vmatpush3.bf16.msra.mxu1 %v2613_v38  ;;  %3527 = vmatpush3.bf16.msra.mxu0 %v2629_v39  ;;  %v2428_v38 = vrot.slane %v2348_v24, %v4673_v0  ;;  %v2436_v39 = vrot.slane %v2356_v25, %v4673_v0  ;;  %v2636_v3 = vunpack.c.h.s8.bf16 %v2544_v12  ;;  %v2554_v25 = vld [vmem:[%s4799_s22 + $0x128] sm:$0xff] }
 0xf9b   : > { %3506 = vmatprep.subr.bf16.mxu1 %v2622_v40  ;;  %3528 = vmatprep.subr.bf16.mxu0 %v2638_v41  ;;  %v2619_v40 = vunpack.c.l.s8.bf16 %v2536_v28  ;;  %v2635_v41 = vunpack.c.l.s8.bf16 %v2544_v12  ;;  %v2550_v12 = vld [vmem:[%s4799_s22 + $0x108] sm:$0xff] }
 0xf9e   : > { %3507 = vmatpush3.bf16.msra.mxu1 %v2614_v46  ;;  %3529 = vmatpush3.bf16.msra.mxu0 %v2630_v47 }
 0xf9f   : > { %3508 = vmatprep.subr.bf16.mxu1 %v2623_v48  ;;  %3530 = vmatprep.subr.bf16.mxu0 %v2639_v42  ;;  %v2628_v48 = vunpack.c.h.s8.bf16 %v2540_v17  ;;  %v2644_v42 = vunpack.c.h.s8.bf16 %v2548_v18 }
 0xfa2   : > { %3509 = vmatpush3.bf16.msra.mxu1 %v2615_v43  ;;  %3531 = vmatpush3.bf16.msra.mxu0 %v2631_v53 }
 0xfa3   : > { %3510 = vmatprep.subr.bf16.mxu1 %v2624_v54  ;;  %3532 = vmatprep.subr.bf16.mxu0 %v2640_v56  ;;  %v2553_v54 = vld [vmem:[%s4799_s22 + $0x120] sm:$0xff] }
 0xfa4   : > { %v2561_v56 = vld [vmem:[%s4799_s22 + $0x160] sm:$0xff] }
 0xfa5   : > { %v2670_v24 = vunpack.c.h.s8.bf16 %v2561_v56 }
 0xfa6   : > { %3511 = vmatpush3.bf16.msra.mxu1 %v2616_v59  ;;  %3533 = vmatpush3.bf16.msra.mxu0 %v2632_v60 }
 0xfa7   : > { %3512 = vmatprep.subr.bf16.mxu1 %v2625_v61  ;;  %3534 = vmatprep.subr.bf16.mxu0 %v2641_v1 }
 0xfaa   : > { %3513 = vmatpush3.bf16.msra.mxu1 %v2617_v6  ;;  %3535 = vmatpush3.bf16.msra.mxu0 %v2633_v7  ;;  %v2653_v7 = vunpack.c.l.s8.bf16 %v2553_v54 }
 0xfab   : > { %3514 = vmatprep.subr.bf16.mxu1 %v2626_v10  ;;  %3536 = vmatprep.subr.bf16.mxu0 %v2642_v11  ;;  %v2669_v10 = vunpack.c.l.s8.bf16 %v2561_v56  ;;  %v2549_v11 = vld [vmem:[%s4799_s22 + $0x100] sm:$0xff] }
 0xfac   : > { %v2645_v21 = vunpack.c.l.s8.bf16 %v2549_v11 }
 0xfae   : > { %v1949_v36 = vpop.f32.mrb[24].mxu1  ;;  %v1990_v37 = vpop.f32.mrb[12].mxu0  ;;  %3515 = vmatpush3.bf16.msra.mxu1 %v2618_v22  ;;  %3537 = vmatpush3.bf16.msra.mxu0 %v2634_v23  ;;  %v2661_v22 = vunpack.c.l.s8.bf16 %v2557_v14  ;;  %v2654_v23 = vunpack.c.h.s8.bf16 %v2553_v54 }
 0xfaf   : > { %v2313_v44 = vmul.f32 %v2264_v26, %v1949_v36  ;;  %v2315_v45 = vmul.f32 %v2272_v27, %v1990_v37  ;;  %v1951_v46 = vpop.f32.mrb[25].mxu1  ;;  %v1992_v47 = vpop.f32.mrb[13].mxu0  ;;  %3516 = vmatprep.subr.bf16.mxu1 %v2627_v34  ;;  %3538 = vmatprep.subr.bf16.mxu0 %v2643_v19  ;;  %v2562_v26 = vld [vmem:[%s4799_s22 + $0x168] sm:$0xff]  ;;  %v2646_v27 = vunpack.c.h.s8.bf16 %v2549_v11  ;;  %v2662_v34 = vunpack.c.h.s8.bf16 %v2557_v14  ;;  %v2555_v37 = vld [vmem:[%s4799_s22 + $0x130] sm:$0xff]  ;;  %v2552_v11 = vld [vmem:[%s4799_s22 + $0x118] sm:$0xff] }
 0xfb0   : > { %v2314_v35 = vmul.f32 %v2268_v29, %v1951_v46  ;;  %v2316_v52 = vmul.f32 %v2276_v30, %v1992_v47  ;;  %v1953_v43 = vpop.f32.mrb[26].mxu1  ;;  %v1994_v53 = vpop.f32.mrb[14].mxu0  ;;  %v2655_v19 = vunpack.c.l.s8.bf16 %v2554_v25  ;;  %v2671_v28 = vunpack.c.l.s8.bf16 %v2562_v26  ;;  %v2558_v29 = vld [vmem:[%s4799_s22 + $0x148] sm:$0xff]  ;;  %v2559_v46 = vld [vmem:[%s4799_s22 + $0x150] sm:$0xff]  ;;  %v2560_v14 = vld [vmem:[%s4799_s22 + $0x158] sm:$0xff] }
 0xfb1   : > { %v2473_v57 = vadd.f32 %v2424_v32, %v2313_v44  ;;  %v2475_v58 = vadd.f32 %v2432_v33, %v2315_v45  ;;  %v1954_v59 = vpop.f32.mrb[27].mxu1  ;;  %v1995_v60 = vpop.f32.mrb[15].mxu0  ;;  %v2647_v30 = vunpack.c.l.s8.bf16 %v2550_v12  ;;  %v2663_v32 = vunpack.c.l.s8.bf16 %v2558_v29  ;;  %v2551_v45 = vld [vmem:[%s4799_s22 + $0x110] sm:$0xff] }
 0xfb2   : > { %v2474_v61 = vadd.f32 %v2428_v38, %v2314_v35  ;;  %v2476_v1 = vadd.f32 %v2436_v39, %v2316_v52  ;;  %3517 = vmatpush3.bf16.msra.mxu1 %v2619_v40  ;;  %3539 = vmatpush3.bf16.msra.mxu0 %v2635_v41  ;;  %v2656_v33 = vunpack.c.h.s8.bf16 %v2554_v25  ;;  %v2672_v36 = vunpack.c.h.s8.bf16 %v2562_v26  ;;  %v2563_v38 = vld [vmem:[%s4799_s22 + $0x170] sm:$0xff] }
 0xfb3   : > { %v2489_v55 = vmax.f32 %v2473_v57, 0.0  ;;  %v2491_v6 = vmax.f32 %v2475_v58, 0.0  ;;  %3518 = vmatprep.subr.bf16.mxu1 %v2628_v48  ;;  %3540 = vmatprep.subr.bf16.mxu0 %v2644_v42  ;;  %v2648_v39 = vunpack.c.h.s8.bf16 %v2550_v12  ;;  %v2664_v40 = vunpack.c.h.s8.bf16 %v2558_v29  ;;  %v1638_v47 = vld [vmem:[%s4467_s4 + $0x10] sm:$0xff]  ;;  %v2556_v57 = vld [vmem:[%s4799_s22 + $0x138] sm:$0xff] }
 0xfb4   : > { %v2490_v16 = vmax.f32 %v2474_v61, 0.0  ;;  %v2492_v15 = vmax.f32 %v2476_v1, 0.0  ;;  %v2657_v41 = vunpack.c.l.s8.bf16 %v2555_v37  ;;  %v2673_v44 = vunpack.c.l.s8.bf16 %v2563_v38  ;;  %v2564_v58 = vld [vmem:[%s4799_s22 + $0x178] sm:$0xff] }
 0xfb5   : > { %v2505_v9 = vpack.c.bf16 %v2489_v55, %v2489_v55  ;;  %v2507_v17 = vpack.c.bf16 %v2491_v6, %v2491_v6  ;;  %v2649_v48 = vunpack.c.l.s8.bf16 %v2551_v45  ;;  %v2665_v42 = vunpack.c.l.s8.bf16 %v2559_v46 }
 0xfb6   : > { %v2506_v18 = vpack.c.bf16 %v2490_v16, %v2490_v16  ;;  %v2508_v20 = vpack.c.bf16 %v2492_v15, %v2492_v15  ;;  %3519 = vmatpush3.bf16.msra.mxu1 %v2620_v2  ;;  %3541 = vmatpush3.bf16.msra.mxu0 %v2636_v3  ;;  %v2658_v35 = vunpack.c.h.s8.bf16 %v2555_v37  ;;  %v2674_v52 = vunpack.c.h.s8.bf16 %v2563_v38 }
 0xfb7   : > { %3548 = vmatprep.subr.bf16.mxu1 %v2653_v7  ;;  %3570 = vmatprep.subr.bf16.mxu0 %v2669_v10  ;;  %v2200_v43 = vrot.slane %v1638_v47, %v4667_v62  ;;  %v2208_v53 = vrot.slane %v1638_v47, %v4788_v5  ;;  %v2204_v54 = vrot.slane %v1638_v47, %v4778_v49  ;;  %v2650_v61 = vunpack.c.h.s8.bf16 %v2551_v45 }
 0xfb8   : > { %2821 = vmatprep.mubr.bf16.mxu1 %v2506_v18  ;;  %2861 = vmatprep.mubr.bf16.mxu0 %v2508_v20  ;;  %v2212_v56 = vrot.slane %v1638_v47, %v4911_v50  ;;  %v2360_v59 = vrot.slane %v1638_v47, %v4673_v0  ;;  %v2368_v60 = vrot.slane %v1638_v47, %v4785_v4  ;;  %v2666_v1 = vunpack.c.h.s8.bf16 %v2559_v46 }
 0xfb9   : > { %2822 = vmatmul.mubr.bf16.vlgmr.msra.gmra.mrb[40].mxu1 %v2505_v9  ;;  %2862 = vmatmul.mubr.bf16.vlgmr.msra.gmra.mrb[28].mxu0 %v2507_v17  ;;  %v2364_v2 = vrot.slane %v1638_v47, %v4682_v8  ;;  %v2372_v3 = vrot.slane %v1638_v47, %v4914_v51  ;;  %v2280_v55 = vrot.slane %v2200_v43, %v4667_v62  ;;  %v2659_v7 = vunpack.c.l.s8.bf16 %v2556_v57  ;;  %v2573_v43 = vld [vmem:[%s4799_s22 + $0x1c0] sm:$0xff] }
 0xfba   : > { %3549 = vmatpush3.bf16.msra.mxu1 %v2645_v21  ;;  %3571 = vmatpush3.bf16.msra.mxu0 %v2661_v22  ;;  %v2288_v6 = vrot.slane %v2208_v53, %v4667_v62  ;;  %v2675_v10 = vunpack.c.l.s8.bf16 %v2564_v58  ;;  %v2284_v16 = vrot.slane %v2204_v54, %v4667_v62  ;;  %v2292_v15 = vrot.slane %v2212_v56, %v4667_v62 }
 0xfbb   : > { %3550 = vmatprep.subr.bf16.mxu1 %v2654_v23  ;;  %3572 = vmatprep.subr.bf16.mxu0 %v2670_v24  ;;  %v2440_v9 = vrot.slane %v2360_v59, %v4673_v0  ;;  %v2448_v17 = vrot.slane %v2368_v60, %v4673_v0  ;;  %v2444_v21 = vrot.slane %v2364_v2, %v4673_v0  ;;  %v2651_v23 = vunpack.c.l.s8.bf16 %v2552_v11 }
 0xfbc   : > { %v2452_v22 = vrot.slane %v2372_v3, %v4673_v0  ;;  %v2667_v24 = vunpack.c.l.s8.bf16 %v2560_v14  ;;  %v2652_v45 = vunpack.c.h.s8.bf16 %v2552_v11  ;;  %v2668_v46 = vunpack.c.h.s8.bf16 %v2560_v14  ;;  %v2570_v3 = vld [vmem:[%s4799_s22 + $0x1a8] sm:$0xff] }
 0xfbd   : > { %v2566_v14 = vld [vmem:[%s4799_s22 + $0x188] sm:$0xff] }
 0xfbe   : > { %3551 = vmatpush3.bf16.msra.mxu1 %v2646_v27  ;;  %3573 = vmatpush3.bf16.msra.mxu0 %v2662_v34 }
 0xfbf   : > { %3552 = vmatprep.subr.bf16.mxu1 %v2655_v19  ;;  %3574 = vmatprep.subr.bf16.mxu0 %v2671_v28  ;;  %v2660_v19 = vunpack.c.h.s8.bf16 %v2556_v57  ;;  %v2676_v28 = vunpack.c.h.s8.bf16 %v2564_v58 }
 0xfc2   : > { %3553 = vmatpush3.bf16.msra.mxu1 %v2647_v30  ;;  %3575 = vmatpush3.bf16.msra.mxu0 %v2663_v32 }
 0xfc3   : > { %3554 = vmatprep.subr.bf16.mxu1 %v2656_v33  ;;  %3576 = vmatprep.subr.bf16.mxu0 %v2672_v36  ;;  %v2569_v33 = vld [vmem:[%s4799_s22 + $0x1a0] sm:$0xff] }
 0xfc4   : > { %v2577_v36 = vld [vmem:[%s4799_s22 + $0x1e0] sm:$0xff] }
 0xfc5   : > { %v2702_v2 = vunpack.c.h.s8.bf16 %v2577_v36 }
 0xfc6   : > { %3555 = vmatpush3.bf16.msra.mxu1 %v2648_v39  ;;  %3577 = vmatpush3.bf16.msra.mxu0 %v2664_v40 }
 0xfc7   : > { %3556 = vmatprep.subr.bf16.mxu1 %v2657_v41  ;;  %3578 = vmatprep.subr.bf16.mxu0 %v2673_v44 }
 0xfca   : > { %3557 = vmatpush3.bf16.msra.mxu1 %v2649_v48  ;;  %3579 = vmatpush3.bf16.msra.mxu0 %v2665_v42  ;;  %v2685_v42 = vunpack.c.l.s8.bf16 %v2569_v33 }
 0xfcb   : > { %3558 = vmatprep.subr.bf16.mxu1 %v2658_v35  ;;  %3580 = vmatprep.subr.bf16.mxu0 %v2674_v52  ;;  %v2701_v35 = vunpack.c.l.s8.bf16 %v2577_v36  ;;  %v2565_v52 = vld [vmem:[%s4799_s22 + $0x180] sm:$0xff] }
 0xfcc   : > { %v2677_v60 = vunpack.c.l.s8.bf16 %v2565_v52 }
 0xfce   : > { %v2031_v18 = vpop.f32.mrb[28].mxu1  ;;  %v2072_v20 = vpop.f32.mrb[16].mxu0  ;;  %3559 = vmatpush3.bf16.msra.mxu1 %v2650_v61  ;;  %3581 = vmatpush3.bf16.msra.mxu0 %v2666_v1  ;;  %v2693_v61 = vunpack.c.l.s8.bf16 %v2573_v43  ;;  %v2686_v1 = vunpack.c.h.s8.bf16 %v2569_v33 }
 0xfcf   : > { %v2317_v25 = vmul.f32 %v2280_v55, %v2031_v18  ;;  %v2319_v26 = vmul.f32 %v2288_v6, %v2072_v20  ;;  %v2033_v27 = vpop.f32.mrb[29].mxu1  ;;  %v2074_v34 = vpop.f32.mrb[17].mxu0  ;;  %3560 = vmatprep.subr.bf16.mxu1 %v2659_v7  ;;  %3582 = vmatprep.subr.bf16.mxu0 %v2675_v10  ;;  %v2578_v55 = vld [vmem:[%s4799_s22 + $0x1e8] sm:$0xff]  ;;  %v2678_v6 = vunpack.c.h.s8.bf16 %v2565_v52  ;;  %v2694_v7 = vunpack.c.h.s8.bf16 %v2573_v43  ;;  %v2571_v20 = vld [vmem:[%s4799_s22 + $0x1b0] sm:$0xff] }
 0xfd0   : > { %v2318_v12 = vmul.f32 %v2284_v16, %v2033_v27  ;;  %v2320_v29 = vmul.f32 %v2292_v15, %v2074_v34  ;;  %v2035_v30 = vpop.f32.mrb[30].mxu1  ;;  %v2076_v32 = vpop.f32.mrb[18].mxu0  ;;  %v2687_v10 = vunpack.c.l.s8.bf16 %v2570_v3  ;;  %v2703_v11 = vunpack.c.l.s8.bf16 %v2578_v55  ;;  %v2574_v16 = vld [vmem:[%s4799_s22 + $0x1c8] sm:$0xff]  ;;  %v2575_v27 = vld [vmem:[%s4799_s22 + $0x1d0] sm:$0xff]  ;;  %v1639_v34 = vld [vmem:[%s4467_s4 + $0x18] sm:$0xff] }
 0xfd1   : > { %v2477_v37 = vadd.f32 %v2440_v9, %v2317_v25  ;;  %v2479_v38 = vadd.f32 %v2448_v17, %v2319_v26  ;;  %v2036_v39 = vpop.f32.mrb[31].mxu1  ;;  %v2077_v40 = vpop.f32.mrb[19].mxu0  ;;  %v2679_v15 = vunpack.c.l.s8.bf16 %v2566_v14  ;;  %v2695_v9 = vunpack.c.l.s8.bf16 %v2574_v16  ;;  %v2567_v26 = vld [vmem:[%s4799_s22 + $0x190] sm:$0xff] }
 0xfd2   : > { %v2478_v41 = vadd.f32 %v2444_v21, %v2318_v12  ;;  %v2480_v44 = vadd.f32 %v2452_v22, %v2320_v29  ;;  %3561 = vmatpush3.bf16.msra.mxu1 %v2651_v23  ;;  %3583 = vmatpush3.bf16.msra.mxu0 %v2667_v24  ;;  %v2688_v17 = vunpack.c.h.s8.bf16 %v2570_v3  ;;  %v2704_v18 = vunpack.c.h.s8.bf16 %v2578_v55  ;;  %v2579_v21 = vld [vmem:[%s4799_s22 + $0x1f0] sm:$0xff] }
 0xfd3   : > { %v2493_v47 = vmax.f32 %v2477_v37, 0.0  ;;  %v2495_v48 = vmax.f32 %v2479_v38, 0.0  ;;  %3562 = vmatprep.subr.bf16.mxu1 %v2660_v19  ;;  %3584 = vmatprep.subr.bf16.mxu0 %v2676_v28  ;;  %v2680_v22 = vunpack.c.h.s8.bf16 %v2566_v14  ;;  %v2696_v23 = vunpack.c.h.s8.bf16 %v2574_v16  ;;  %v2572_v37 = vld [vmem:[%s4799_s22 + $0x1b8] sm:$0xff] }
 0xfd4   : > { %v2494_v53 = vmax.f32 %v2478_v41, 0.0  ;;  %v2496_v54 = vmax.f32 %v2480_v44, 0.0  ;;  %v2689_v24 = vunpack.c.l.s8.bf16 %v2571_v20  ;;  %v2705_v25 = vunpack.c.l.s8.bf16 %v2579_v21  ;;  %v2580_v38 = vld [vmem:[%s4799_s22 + $0x1f8] sm:$0xff] }
 0xfd5   : > { %v2509_v56 = vpack.c.bf16 %v2493_v47, %v2493_v47  ;;  %v2511_v57 = vpack.c.bf16 %v2495_v48, %v2495_v48  ;;  %v2681_v19 = vunpack.c.l.s8.bf16 %v2567_v26  ;;  %v2697_v28 = vunpack.c.l.s8.bf16 %v2575_v27 }
 0xfd6   : > { %v2510_v58 = vpack.c.bf16 %v2494_v53, %v2494_v53  ;;  %v2512_v59 = vpack.c.bf16 %v2496_v54, %v2496_v54  ;;  %3563 = vmatpush3.bf16.msra.mxu1 %v2652_v45  ;;  %3585 = vmatpush3.bf16.msra.mxu0 %v2668_v46  ;;  %v2690_v12 = vunpack.c.h.s8.bf16 %v2571_v20  ;;  %v2706_v29 = vunpack.c.h.s8.bf16 %v2579_v21 }
 0xfd7   : > { %3592 = vmatprep.subr.bf16.mxu1 %v2685_v42  ;;  %3614 = vmatprep.subr.bf16.mxu0 %v2701_v35  ;;  %v2216_v30 = vrot.slane %v1639_v34, %v4667_v62  ;;  %v2224_v32 = vrot.slane %v1639_v34, %v4788_v5  ;;  %v2220_v33 = vrot.slane %v1639_v34, %v4778_v49  ;;  %v2682_v41 = vunpack.c.h.s8.bf16 %v2567_v26  ;;  %v2568_v42 = vld [vmem:[%s4799_s22 + $0x198] sm:$0xff] }
 0xfd8   : > { %2901 = vmatprep.mubr.bf16.mxu1 %v2510_v58  ;;  %2941 = vmatprep.mubr.bf16.mxu0 %v2512_v59  ;;  %v2228_v36 = vrot.slane %v1639_v34, %v4911_v50  ;;  %v2376_v39 = vrot.slane %v1639_v34, %v4673_v0  ;;  %v2384_v40 = vrot.slane %v1639_v34, %v4785_v4  ;;  %v2698_v44 = vunpack.c.h.s8.bf16 %v2575_v27  ;;  %v2576_v35 = vld [vmem:[%s4799_s22 + $0x1d8] sm:$0xff] }
 0xfd9   : > { %2902 = vmatmul.mubr.bf16.vlgmr.msra.gmra.mrb[44].mxu1 %v2509_v56  ;;  %2942 = vmatmul.mubr.bf16.vlgmr.msra.gmra.mrb[32].mxu0 %v2511_v57  ;;  %v2380_v45 = vrot.slane %v1639_v34, %v4682_v8  ;;  %v2388_v5 = vrot.slane %v1639_v34, %v4914_v51  ;;  %v2296_v49 = vrot.slane %v2216_v30, %v4667_v62  ;;  %v2691_v47 = vunpack.c.l.s8.bf16 %v2572_v37 }
 0xfda   : > { %3593 = vmatpush3.bf16.msra.mxu1 %v2677_v60  ;;  %3615 = vmatpush3.bf16.msra.mxu0 %v2693_v61  ;;  %v2304_v46 = vrot.slane %v2224_v32, %v4667_v62  ;;  %v2707_v48 = vunpack.c.l.s8.bf16 %v2580_v38  ;;  %v2300_v4 = vrot.slane %v2220_v33, %v4667_v62  ;;  %v2308_v52 = vrot.slane %v2228_v36, %v4667_v62 }
 0xfdb   : > { %3594 = vmatprep.subr.bf16.mxu1 %v2686_v1  ;;  %3616 = vmatprep.subr.bf16.mxu0 %v2702_v2  ;;  %v2456_v43 = vrot.slane %v2376_v39, %v4673_v0  ;;  %v2464_v8 = vrot.slane %v2384_v40, %v4673_v0  ;;  %v2460_v56 = vrot.slane %v2380_v45, %v4673_v0  ;;  %v2683_v58 = vunpack.c.l.s8.bf16 %v2568_v42 }
 0xfdc   : > { %v2468_v57 = vrot.slane %v2388_v5, %v4673_v0  ;;  %v2699_v59 = vunpack.c.l.s8.bf16 %v2576_v35  ;;  %v2692_v3 = vunpack.c.h.s8.bf16 %v2572_v37  ;;  %v2708_v55 = vunpack.c.h.s8.bf16 %v2580_v38 }
 0xfdd   : > { %v2684_v20 = vunpack.c.h.s8.bf16 %v2568_v42  ;;  %v2700_v21 = vunpack.c.h.s8.bf16 %v2576_v35 }
 0xfde   : > { %3595 = vmatpush3.bf16.msra.mxu1 %v2678_v6  ;;  %3617 = vmatpush3.bf16.msra.mxu0 %v2694_v7 }
 0xfdf   : > { %3596 = vmatprep.subr.bf16.mxu1 %v2687_v10  ;;  %3618 = vmatprep.subr.bf16.mxu0 %v2703_v11 }
 0xfe2   : > { %3597 = vmatpush3.bf16.msra.mxu1 %v2679_v15  ;;  %3619 = vmatpush3.bf16.msra.mxu0 %v2695_v9 }
 0xfe3   : > { %3598 = vmatprep.subr.bf16.mxu1 %v2688_v17  ;;  %3620 = vmatprep.subr.bf16.mxu0 %v2704_v18 }
 0xfe6   : > { %3599 = vmatpush3.bf16.msra.mxu1 %v2680_v22  ;;  %3621 = vmatpush3.bf16.msra.mxu0 %v2696_v23 }
 0xfe7   : > { %3600 = vmatprep.subr.bf16.mxu1 %v2689_v24  ;;  %3622 = vmatprep.subr.bf16.mxu0 %v2705_v25 }
 0xfea   : > { %3601 = vmatpush3.bf16.msra.mxu1 %v2681_v19  ;;  %3623 = vmatpush3.bf16.msra.mxu0 %v2697_v28 }
 0xfeb   : > { %3602 = vmatprep.subr.bf16.mxu1 %v2690_v12  ;;  %3624 = vmatprep.subr.bf16.mxu0 %v2706_v29 }
 0xfee   : > { %v2113_v53 = vpop.f32.mrb[32].mxu1  ;;  %v2154_v54 = vpop.f32.mrb[20].mxu0  ;;  %3603 = vmatpush3.bf16.msra.mxu1 %v2682_v41  ;;  %3625 = vmatpush3.bf16.msra.mxu0 %v2698_v44 }
 0xfef   : > { %v2321_v60 = vmul.f32 %v2296_v49, %v2113_v53  ;;  %v2323_v61 = vmul.f32 %v2304_v46, %v2154_v54  ;;  %v2115_v1 = vpop.f32.mrb[33].mxu1  ;;  %v2156_v2 = vpop.f32.mrb[21].mxu0  ;;  %3604 = vmatprep.subr.bf16.mxu1 %v2691_v47  ;;  %3626 = vmatprep.subr.bf16.mxu0 %v2707_v48 }
 0xff0   : > { %v2322_v6 = vmul.f32 %v2300_v4, %v2115_v1  ;;  %v2324_v7 = vmul.f32 %v2308_v52, %v2156_v2  ;;  %v2117_v10 = vpop.f32.mrb[34].mxu1  ;;  %v2158_v11 = vpop.f32.mrb[22].mxu0 }
 0xff1   : > { %v2481_v14 = vadd.f32 %v2456_v43, %v2321_v60  ;;  %v2483_v16 = vadd.f32 %v2464_v8, %v2323_v61  ;;  %v2118_v15 = vpop.f32.mrb[35].mxu1  ;;  %v2159_v9 = vpop.f32.mrb[23].mxu0 }
 0xff2   : > { %v2482_v17 = vadd.f32 %v2460_v56, %v2322_v6  ;;  %v2484_v18 = vadd.f32 %v2468_v57, %v2324_v7  ;;  %3605 = vmatpush3.bf16.msra.mxu1 %v2683_v58  ;;  %3627 = vmatpush3.bf16.msra.mxu0 %v2699_v59 }
 0xff3   : > { %v2497_v22 = vmax.f32 %v2481_v14, 0.0  ;;  %v2499_v23 = vmax.f32 %v2483_v16, 0.0  ;;  %3606 = vmatprep.subr.bf16.mxu1 %v2692_v3  ;;  %3628 = vmatprep.subr.bf16.mxu0 %v2708_v55 }
 0xff4   : > { %v2498_v24 = vmax.f32 %v2482_v17, 0.0  ;;  %v2500_v25 = vmax.f32 %v2484_v18, 0.0  ;;  %v3032_v18 = vrot.slane %v4617_v31, %v4667_v62  ;;  %v3054_v62 = vrot.slane %v4670_v63, %v4914_v51  ;;  %v3067_v51 = vld [vmem:[#allocation7 + $0x90] sm:$0x1] (!%p3391_p11) }
 0xff5   : > { %v2515_v26 = vpack.c.bf16 %v2499_v23, %v2499_v23  ;;  %v2513_v19 = vpack.c.bf16 %v2497_v22, %v2497_v22 }
 0xff6   : > { %v2514_v27 = vpack.c.bf16 %v2498_v24, %v2498_v24  ;;  %v2516_v34 = vpack.c.bf16 %v2500_v25, %v2500_v25  ;;  %3607 = vmatpush3.bf16.msra.mxu1 %v2684_v20  ;;  %3629 = vmatpush3.bf16.msra.mxu0 %v2700_v21  ;;  %v3037_v21 = vrot.slane %v4617_v31, %v4673_v0 }
 0xff7   : > { %v3059_v31 = vrot.slane %v4670_v63, %v4911_v50 }
 0xff8   : > { %2981 = vmatprep.mubr.bf16.mxu1 %v2514_v27  ;;  %3021 = vmatprep.mubr.bf16.mxu0 %v2516_v34 }
 0xff9   : > { %2982 = vmatmul.mubr.bf16.vlgmr.msra.gmra.mrb[48].mxu1 %v2513_v19  ;;  %3022 = vmatmul.mubr.bf16.vlgmr.msra.gmra.mrb[36].mxu0 %v2515_v26 }
0x106c   : > { %v3476_v28 = vpop.f32.mrb[36].mxu1  ;;  %v3498_v12 = vpop.f32.mrb[24].mxu0 }
0x106d   : > { %v3477_v29 = vpop.f32.mrb[37].mxu1  ;;  %v3499_v30 = vpop.f32.mrb[25].mxu0 }
0x106e   : > { %v3478_v32 = vadd.f32 %v3477_v29, %v3476_v28  ;;  %v3500_v33 = vadd.f32 %v3499_v30, %v3498_v12  ;;  %v3479_v36 = vpop.f32.mrb[38].mxu1  ;;  %v3501_v37 = vpop.f32.mrb[26].mxu0 }
0x106f   : > { %v3480_v38 = vpop.f32.mrb[39].mxu1  ;;  %v3502_v39 = vpop.f32.mrb[27].mxu0 }
0x1070   : > { %v2784_v40 = vadd.f32 %v3500_v33, %v3478_v32  ;;  %v3066_v32 = vld [vmem:[#allocation7 + $0x88] sm:$0xff] (!%p3391_p11)  ;;  %v4230_v33 = vmov (!%p3391_p11), 0.0  }
0x1071   : > { %3753 = vmatprep.subr.mxu0 (!%p3391_p11), %v4230_v33  ;;  %3755 = vmatprep.mubr.msk.f32.mxu0 (!%p3391_p11), %vm4231_vm8, %v4230_v33 }
0x1072   : > { %3754 = vmatpush3.xpose.msra.mxu0 (!%p3391_p11), %v3066_v32 }
0x108c   : > { %v3520_v41 = vpop.f32.mrb[40].mxu1  ;;  %v3542_v44 = vpop.f32.mrb[28].mxu0 }
0x108d   : > { %v3521_v45 = vpop.f32.mrb[41].mxu1  ;;  %v3543_v5 = vpop.f32.mrb[29].mxu0 }
0x108e   : > { %v3522_v49 = vadd.f32 %v3521_v45, %v3520_v41  ;;  %v3544_v46 = vadd.f32 %v3543_v5, %v3542_v44  ;;  %v3523_v47 = vpop.f32.mrb[42].mxu1  ;;  %v3545_v48 = vpop.f32.mrb[30].mxu0 }
0x108f   : > { %v3524_v42 = vpop.f32.mrb[43].mxu1  ;;  %v3546_v35 = vpop.f32.mrb[31].mxu0 }
0x1090   : > { %v2824_v4 = vadd.f32 %v3522_v49, %v2784_v40 }
0x1092   : > { %v2864_v52 = vadd.f32 %v3544_v46, %v2824_v4 }
0x10ac   : > { %v3564_v43 = vpop.f32.mrb[44].mxu1  ;;  %v3586_v8 = vpop.f32.mrb[32].mxu0 }
0x10ad   : > { %v3565_v53 = vpop.f32.mrb[45].mxu1  ;;  %v3587_v54 = vpop.f32.mrb[33].mxu0 }
0x10ae   : > { %v3566_v56 = vadd.f32 %v3565_v53, %v3564_v43  ;;  %v3588_v57 = vadd.f32 %v3587_v54, %v3586_v8  ;;  %v3567_v58 = vpop.f32.mrb[46].mxu1  ;;  %v3589_v59 = vpop.f32.mrb[34].mxu0 }
0x10af   : > { %v3568_v60 = vpop.f32.mrb[47].mxu1  ;;  %v3590_v61 = vpop.f32.mrb[35].mxu0 }
0x10b0   : > { %v2904_v1 = vadd.f32 %v3566_v56, %v2864_v52 }
0x10b2   : > { %v2944_v2 = vadd.f32 %v3588_v57, %v2904_v1 }
0x10cc   : > { %v3608_v3 = vpop.f32.mrb[48].mxu1  ;;  %v3630_v55 = vpop.f32.mrb[36].mxu0 }
0x10cd   : > { %v3609_v6 = vpop.f32.mrb[49].mxu1  ;;  %v3631_v7 = vpop.f32.mrb[37].mxu0 }
0x10ce   : > { %v3610_v10 = vadd.f32 %v3609_v6, %v3608_v3  ;;  %v3632_v11 = vadd.f32 %v3631_v7, %v3630_v55  ;;  %v3611_v14 = vpop.f32.mrb[50].mxu1  ;;  %v3633_v16 = vpop.f32.mrb[38].mxu0 }
0x10cf   : > { %v3612_v15 = vpop.f32.mrb[51].mxu1  ;;  %v3634_v9 = vpop.f32.mrb[39].mxu0 }
0x10d0   : > { %v2984_v17 = vadd.f32 %v3610_v10, %v2944_v2 }
0x10d2   : > { %v3024_v20 = vadd.f32 %v3632_v11, %v2984_v17 }
0x10d4   : > { %v3033_v22 = vmul.f32 %v3032_v18, %v3024_v20 }
0x10d6   : > { %v3038_v23 = vadd.f32 %v3037_v21, %v3033_v22 }
0x10d8   : > { %v3039_v24 = vadd.f32 %v3038_v23, %v4794_v13 }
0x10da   : > { %3040 = vadd.xlane.f32.xlu0 %v3039_v24 }
0x1167   : > { %v3041_v25 = vpop.xlane.xlu0 %3040 }
0x1168   : > { %v3042_v26 = vmul.f32 0.0078125, %v3041_v25 }
0x116a   : > { %v3043_v27 = vsub.f32 %v3039_v24, %v3042_v26 }
0x116c   : > { %v3044_v34 = vmul.f32 %v3043_v27, %v3043_v27 }
0x116e   : > { %3045 = vadd.xlane.f32.xlu0 %v3044_v34 }
0x11fb   : > { %v3046_v19 = vpop.xlane.xlu0 %3045 }
0x11fc   : > { %v3047_v28 = vmul.f32 0.0078125, %v3046_v19 }
0x11fe   : > { %v3048_v12 = vadd.f32 1e-05, %v3047_v28 }
0x1200   : > { %3933 = vrsqrt.f32 %v3048_v12 }
0x120a   : > { %v3934_v29 = vpop.eup %3933 }
0x120b   : > { %v3050_v0 = vmul.f32 %v3934_v29, %v3043_v27  ;;  %3065 = sbr.rel (%p3391_p11) target bundleno = 5156 (0x1424), region = 88 }
0x120d   : > { %v3055_v30 = vmul.f32 %v3054_v62, %v3050_v0 }
0x120f   : > { %v3060_v13 = vadd.f32 %v3059_v31, %v3055_v30 }
0x1211   : > { %3061 = vst [vmem:[#allocation2] sm:$0xff] %v3060_v13  ;;  %v3069_v36 = vrot.slane (!%p3391_p11), %v3060_v13, 2 }
0x1213   : > { %3756 = vmatmul.mubr.f32.vlgmr.msra.gmra.mrb[0].mxu0 %v3069_v36 }
0x12e6   : > { %v3137_v37 = vpop.f32.mrb[0].mxu0 }
0x12e7   : > { %v3138_v38 = vadd.f32 %v3137_v37, %v3067_v51  ;;  %v3757_v63 = vpop.f32.mrb[1].mxu0 }
0x12e9   : > { %v3142_v50 = vsel %vm3141_vm9, %v3138_v38, -inf }
0x12ea   : > { %3143 = vmax.xlane.f32.xlu0 %v3142_v50 }
0x1377   : > { %v3144_v39 = vpop.xlane.xlu0 %3143 }
0x1378   : > { %v3145_v40 = vsub.f32 %v3138_v38, %v3144_v39 }
0x137a   : > { %v3146_v41 = vmul.f32 1.442695, %v3145_v40 }
0x137c   : > { %3935 = vpow2.f32 %v3146_v41 }
0x1386   : > { %v3936_v44 = vpop.eup %3935 }
0x1387   : > { %v3148_v45 = vsel %vm3141_vm9, %v3936_v44, 0.0 }
0x1388   : > { %3149 = vadd.xlane.f32.xlu0 %v3148_v45 }
0x1415   : > { %v3150_v5 = vpop.xlane.xlu0 %3149 }
0x1416   : > { %3937 = vrcp.f32 %v3150_v5 }
0x1420   : > { %v3938_v49 = vpop.eup %3937 }
0x1421   : > { %v3152_v46 = vmul.f32 %v3938_v49, %v3936_v44 }
0x1423   : > { %3153 = vst.msk [vmem:[#allocation13] sm:$0x1] %vm3141_vm9, %v3152_v46 }
0x1424 PF: > { %p3819_p7 = scmp.eq.s32.totalorder %s4358_s26, 1  ;;  %s4232_s4 = smov [#allocation13]  }
0x1425   : > { %s3161_s27 = sshll.u32 %s4232_s4, 4  ;;  %s3162_s27 = int_to_ptr.vmem [resolvable:$true] %s3161_s27 }
0x1426   : > { %s4135_s1 = scalar_lea.vmem %s3162_s27, 16  ;;  %s4141_s23 = scalar_lea.vmem %s3162_s27, 32 }
0x1427   : > { %p4136_p12 = scmp.ne.s32.totalorder %s3162_s27, %s4135_s1  ;;  %p4142_p5 = scmp.lt.s32.totalorder %s3162_s27, %s3162_s27 }
0x1428   : > { %p4143_p10 = scmp.lt.s32.totalorder %s4141_s23, %s4135_s1 }
0x1429   : > { %p4137_p2 = pnand %p4136_p12, %p3819_p7 }
0x142a   : > { %p4144_p9 = por %p4143_p10, %p4142_p5 }
0x142b   : > { %p4138_p3 = pneg %p4137_p2 }
0x142d   : > { %p4145_p8 = pnand %p4144_p9, %p4138_p3 }
0x142f   : > { %4148 = shalt.err (!%p4145_p8)
}
0x1430   : > { %s4149_s29 = scalar_lea.hbm %s5088_s8, 16 }
0x1431   : > { %p4150_p0 = scmp.ne.s32.totalorder %s5088_s8, %s4149_s29  ;;  %p4155_p1 = scmp.lt.u32.totalorder %s4149_s29, %s5088_s8 }
0x1433   : > { %p4151_p13 = pnand %p4150_p0, %p3819_p7 }
0x1435   : > { %p4152_p6 = pneg %p4151_p13 }
0x1437   : > { %p4157_p4 = pnand %p4155_p1, %p4152_p6 }
0x1439   : > { %4160 = shalt.err (!%p4157_p4)
}
0x143a   : > { %3800 = dma.vmem_to_hbm [thread:$0]  (%p3819_p7), %s3162_s27, 16, %s5088_s8, [#allocation9]  }
0x143b   : > { %4190 = dma.done.wait (%p3819_p7), [#allocation9], 16  }
0x143c   : > { %4192 = vsyncadd (%p3819_p7), [#allocation9], 4294967280 }
0x143d PF: > { %s5134_s14 = sld [smem:[#allocation29_spill]]  ;;  %s5135_s29 = sld [smem:[#allocation30_spill]] }
0x143e   : > { %p20_p11 = scmp.ge.s32.totalorder %s4299_s9, 4   ;;  %s5136_s27 = smov %s4199_s28 }
0x143f   : > { %s5138_s30 = smov %s4299_s9 }
0x1440   :  { %22 = sbr.rel (!%p20_p11) target bundleno = 11 (0xb), region = 149 }
0x1443   : > { %s5137_s28 = smov %s5134_s14 }
0x1447   :  { %3174 = vsyncpa [#allocation8], 1 }
0x1448   :  { %3176 = vsyncpa [#allocation8 + $0x1], 1 }
0x1449   :  { %3177 = vsyncpa [#allocation11], 1 }
0x144a   :  { %3179 = vsyncpa [#allocation11 + $0x1], 1 }
0x144b   :  { %3180 = vsyncpa [#allocation9], 1 }
0x144c   :  { %3182 = vsyncpa [#allocation9 + $0x1], 1 }
0x144d   :  { %3183 = vsyncmov [#allocation6] }
0x1450   :  { %s3184_s26 = vpop.sfrf %3183 }
0x1451   :  { %p3396_p7 = scmp.ne.s32.totalorder %s3184_s26, 0 }
0x1453   :  { %3188 = shalt.err (%p3396_p7)  }
0x1454   :  { %3190 = vsyncmov [#allocation6 + $0x1] }
0x1457   :  { %s3191_s3 = vpop.sfrf %3190 }
0x1458   :  { %p3397_p12 = scmp.ne.s32.totalorder %s3191_s3, 0 }
0x145a   :  { %3195 = shalt.err (%p3397_p12)  }
0x145b   :  { %3197 = vsyncmov [#allocation6 + $0x2] }
0x145e   :  { %s3198_s16 = vpop.sfrf %3197 }
0x145f   :  { %p3398_p2 = scmp.ne.s32.totalorder %s3198_s16, 0 }
0x1461   :  { %3202 = shalt.err (%p3398_p2)  }
0x1462   :  { %3204 = vsyncmov [#allocation6 + $0x3] }
0x1465   :  { %s3205_s9 = vpop.sfrf %3204 }
0x1466   :  { %p3399_p3 = scmp.ne.s32.totalorder %s3205_s9, 0 }
0x1468   :  { %3209 = shalt.err (%p3399_p3)  }

</bundles_post_ra>
